<compile_context>
chip_gen: v7x
topology: tpu7x:2x2x1
jax: 0.10.0
libtpu: 0.0.40
codegen_flags: <defaults>
</compile_context>

<pallas_src>
import functools

import jax
import jax.numpy as jnp
from jax.experimental import pallas as pl
from jax.experimental.pallas import tpu as pltpu


LANE = 128


def _round_up(v, m):
    return (v + m - 1) // m * m


def lstm_ln_kernel(x_ref, wih_ref, whh_ref, b_ref, gamma_ref, beta_ref,
                   o_ref, h_sc, c_sc, *, time_block, hidden, hidden_p):
    """One grid step = `time_block` LSTM steps + LayerNorm (batch-first layout).

    x_ref:     (B, TB, In_p)  bf16  current time block of the input
    wih_ref:   (In_p, 4*H_p)  bf16  W_ih^T, per-gate zero padded (resident)
    whh_ref:   (H_p, 4*H_p)   bf16  W_hh^T, per-gate zero padded (resident)
    b_ref:     (1, 4*H_p)     f32   b_ih + b_hh (padded lanes are 0)
    gamma_ref: (1, H_p)       f32   LayerNorm weight (padded lanes are 0)
    beta_ref:  (1, H_p)       f32   LayerNorm bias   (padded lanes are 0)
    o_ref:     (B, TB, H_p)         output block
    h_sc,c_sc: (B, H_p)       f32   recurrent state, persists across grid steps
    """
    TB, H, H_p = time_block, hidden, hidden_p
    B = x_ref.shape[0]
    In_p = x_ref.shape[2]

    @pl.when(pl.program_id(0) == 0)
    def _():
        h_sc[...] = jnp.zeros_like(h_sc)
        c_sc[...] = jnp.zeros_like(c_sc)

    # ---- hoisted input projection: one big MXU matmul per time block --------
    # (B, TB, In_p) -> (B*TB, In_p); TB is a multiple of 8 so this reshape is
    # cheap (sublane tiles just stack).
    x2d = x_ref[...].reshape(B * TB, In_p)                          # bf16
    gx = jnp.dot(x2d, wih_ref[...], preferred_element_type=jnp.float32)
    gx = gx + b_ref[...]                                            # (B*TB, 4H_p)
    gx = gx.reshape(B, TB, 4 * H_p)

    # Loop-invariant loads / constants (hoisted out of the recurrence).
    whh = whh_ref[...]                                              # bf16
    gamma = gamma_ref[...]
    beta = beta_ref[...]
    lane_mask = jax.lax.broadcasted_iota(jnp.int32, (B, H_p), 1) < H
    inv_h = 1.0 / H

    # ---- recurrence over the TB steps of this block (statically unrolled) ---
    for t in range(TB):
        gates = gx[:, t, :] + jnp.dot(h_sc[...].astype(jnp.bfloat16), whh,
                                      preferred_element_type=jnp.float32)

        # PyTorch gate order i, f, g, o; slices are lane-aligned (H_p % 128 == 0).
        i_g = jax.nn.sigmoid(gates[:, 0 * H_p:1 * H_p])
        f_g = jax.nn.sigmoid(gates[:, 1 * H_p:2 * H_p])
        g_g = jnp.tanh(gates[:, 2 * H_p:3 * H_p])
        o_g = jax.nn.sigmoid(gates[:, 3 * H_p:4 * H_p])

        c_new = f_g * c_sc[...] + i_g * g_g
        h_new = o_g * jnp.tanh(c_new)
        c_sc[...] = c_new
        h_sc[...] = h_new
        # Padded hidden lanes stay exactly 0: zero-padded weights/bias give
        # pre-activation 0 there, so h_pad = sigmoid(0) * tanh(0) = 0.

        # LayerNorm over the real H lanes only (eps = 1e-5, PyTorch default).
        mean = jnp.sum(h_new, axis=-1, keepdims=True) * inv_h
        cent = jnp.where(lane_mask, h_new - mean, 0.0)
        var = jnp.sum(cent * cent, axis=-1, keepdims=True) * inv_h
        y = cent * jax.lax.rsqrt(var + 1e-5) * gamma + beta

        # TODO(synk): nn.Dropout is identity at inference; no stochastic mask.
        o_ref[:, pl.ds(t, 1), :] = y.astype(o_ref.dtype)[:, None, :]


def depth_temporal_branch(x, w_ih, w_hh, b_ih, b_hh, gamma, beta, *, time_block=8):
    """x: [B, T, input_size] -> [B, T, hidden_size] (batch_first LSTM -> LayerNorm)."""
    B, T, In = x.shape
    H = gamma.shape[-1]
    assert w_ih.shape == (4 * H, In) and w_hh.shape == (4 * H, H)

    TB = time_block
    In_p = _round_up(In, LANE)
    H_p = _round_up(H, LANE)
    T_p = _round_up(T, TB)

    # Pad weights per gate so gate k occupies columns [k*H_p, (k+1)*H_p).
    def pad_gates(w, k_dim, k_dim_p):
        w4 = w.reshape(4, H, k_dim)
        w4 = jnp.pad(w4, ((0, 0), (0, H_p - H), (0, k_dim_p - k_dim)))
        return w4.reshape(4 * H_p, k_dim_p)

    wih_t = pad_gates(w_ih, In, In_p).T.astype(jnp.bfloat16)        # (In_p, 4H_p)
    whh_t = pad_gates(w_hh, H, H_p).T.astype(jnp.bfloat16)          # (H_p, 4H_p)
    bias = jnp.pad((b_ih + b_hh).reshape(4, H), ((0, 0), (0, H_p - H)))
    bias = bias.reshape(1, 4 * H_p).astype(jnp.float32)
    gamma_p = jnp.pad(gamma, (0, H_p - H)).reshape(1, H_p).astype(jnp.float32)
    beta_p = jnp.pad(beta, (0, H_p - H)).reshape(1, H_p).astype(jnp.float32)

    # Batch-first throughout (no transpose HBM round trips); bf16 x tiles.
    x_p = jnp.pad(x, ((0, 0), (0, T_p - T), (0, In_p - In))).astype(jnp.bfloat16)

    kernel = functools.partial(lstm_ln_kernel, time_block=TB, hidden=H, hidden_p=H_p)

    out = pl.pallas_call(
        kernel,
        out_shape=jax.ShapeDtypeStruct((B, T_p, H_p), x.dtype),
        grid_spec=pltpu.PrefetchScalarGridSpec(
            num_scalar_prefetch=0,
            grid=(T_p // TB,),
            in_specs=[
                pl.BlockSpec((B, TB, In_p), lambda i: (0, i, 0)),    # x time block
                pl.BlockSpec((In_p, 4 * H_p), lambda i: (0, 0)),     # W_ih^T (resident)
                pl.BlockSpec((H_p, 4 * H_p), lambda i: (0, 0)),      # W_hh^T (resident)
                pl.BlockSpec((1, 4 * H_p), lambda i: (0, 0)),        # bias
                pl.BlockSpec((1, H_p), lambda i: (0, 0)),            # gamma
                pl.BlockSpec((1, H_p), lambda i: (0, 0)),            # beta
            ],
            out_specs=pl.BlockSpec((B, TB, H_p), lambda i: (0, i, 0)),
            scratch_shapes=[
                pltpu.VMEM((B, H_p), jnp.float32),   # h state
                pltpu.VMEM((B, H_p), jnp.float32),   # c state
            ],
        ),
        compiler_params=pltpu.CompilerParams(
            dimension_semantics=("arbitrary",),      # time recurrence is sequential
            vmem_limit_bytes=32 * 1024 * 1024,       # keep weights resident (v5e default ~16MiB)
        ),
    )(x_p, wih_t, whh_t, bias, gamma_p, beta_p)

    return out[:, :T, :H]


def make_params(key, input_size, hidden_size):
    """Deterministic init matching PyTorch LSTM shapes: U(-1/sqrt(H), 1/sqrt(H))."""
    k = 1.0 / jnp.sqrt(hidden_size)
    keys = jax.random.split(key, 4)
    w_ih = jax.random.uniform(keys[0], (4 * hidden_size, input_size),
                              minval=-k, maxval=k, dtype=jnp.float32)
    w_hh = jax.random.uniform(keys[1], (4 * hidden_size, hidden_size),
                              minval=-k, maxval=k, dtype=jnp.float32)
    b_ih = jax.random.uniform(keys[2], (4 * hidden_size,),
                              minval=-k, maxval=k, dtype=jnp.float32)
    b_hh = jax.random.uniform(keys[3], (4 * hidden_size,),
                              minval=-k, maxval=k, dtype=jnp.float32)
    gamma = jnp.ones((hidden_size,), jnp.float32)
    beta = jnp.zeros((hidden_size,), jnp.float32)
    return w_ih, w_hh, b_ih, b_hh, gamma, beta


def reference(x, w_ih, w_hh, b_ih, b_hh, gamma, beta):
    """Pure-JAX LSTM + LayerNorm reference using the same bf16 matmul operands."""
    B, T, In = x.shape
    H = gamma.shape[-1]
    wih_t = w_ih.T.astype(jnp.bfloat16)
    whh_t = w_hh.T.astype(jnp.bfloat16)
    b = (b_ih + b_hh).astype(jnp.float32)

    def step(carry, x_t):
        h, c = carry
        g = (jnp.dot(x_t.astype(jnp.bfloat16), wih_t, preferred_element_type=jnp.float32)
             + jnp.dot(h.astype(jnp.bfloat16), whh_t, preferred_element_type=jnp.float32)
             + b)
        i = jax.nn.sigmoid(g[:, 0 * H:1 * H])
        f = jax.nn.sigmoid(g[:, 1 * H:2 * H])
        gg = jnp.tanh(g[:, 2 * H:3 * H])
        o = jax.nn.sigmoid(g[:, 3 * H:4 * H])
        c = f * c + i * gg
        h = o * jnp.tanh(c)
        mean = jnp.mean(h, axis=-1, keepdims=True)
        var = jnp.mean((h - mean) ** 2, axis=-1, keepdims=True)
        y = (h - mean) * jax.lax.rsqrt(var + 1e-5) * gamma + beta
        return (h, c), y

    h0 = jnp.zeros((B, H), jnp.float32)
    c0 = jnp.zeros((B, H), jnp.float32)
    _, ys = jax.lax.scan(step, (h0, c0), jnp.swapaxes(x, 0, 1))
    return jnp.swapaxes(ys, 0, 1)


if __name__ == "__main__":
    # Small, non-aligned shapes (exercise the padding path and the cross-block
    # recurrence carry: T=20 > time_block=8).
    B, T, IN, H = 2, 20, 96, 64

    root = jax.random.PRNGKey(0)
    kx, kp = jax.random.split(root)
    x = jax.random.normal(kx, (B, T, IN), dtype=jnp.float32)
    params = make_params(kp, IN, H)

    out = depth_temporal_branch(x, *params)
    out = jax.block_until_ready(out)

    assert out.shape == (B, T, H), out.shape
    assert bool(jnp.all(jnp.isfinite(out)))

    ref = reference(x, *params)
    err = float(jnp.max(jnp.abs(out - ref)))
    assert err < 5e-3, f"max abs err {err}"

    print("KERNEL_OK")
</pallas_src>

<mosaic_0001>
module attributes {stable_mosaic.version = 11 : i64} {
  func.func @lstm_ln_kernel(%arg0: i32, %arg1: memref<2x8x128xbf16, #tpu.memory_space<vmem>>, %arg2: memref<128x512xbf16, #tpu.memory_space<vmem>>, %arg3: memref<128x512xbf16, #tpu.memory_space<vmem>>, %arg4: memref<1x512xf32, #tpu.memory_space<vmem>>, %arg5: memref<1x128xf32, #tpu.memory_space<vmem>>, %arg6: memref<1x128xf32, #tpu.memory_space<vmem>>, %arg7: memref<2x8x128xf32, #tpu.memory_space<vmem>>, %arg8: memref<2x128xf32, #tpu.memory_space<vmem>>, %arg9: memref<2x128xf32, #tpu.memory_space<vmem>>) attributes {dimension_semantics = [#tpu.dimension_semantics<arbitrary>], iteration_bounds = array<i64: 3>, scalar_prefetch = 0 : i64, scratch_operands = 2 : i64, tpu.core_type = #tpu.core_type<tc>, window_params = [{transform_indices = @transform_0, window_bounds = array<i64: 2, 8, 128>}, {pipeline_mode = #tpu.pipeline_mode<synchronous>, transform_indices = @transform_1, window_bounds = array<i64: 128, 512>}, {pipeline_mode = #tpu.pipeline_mode<synchronous>, transform_indices = @transform_2, window_bounds = array<i64: 128, 512>}, {pipeline_mode = #tpu.pipeline_mode<synchronous>, transform_indices = @transform_3, window_bounds = array<i64: 1, 512>}, {pipeline_mode = #tpu.pipeline_mode<synchronous>, transform_indices = @transform_4, window_bounds = array<i64: 1, 128>}, {pipeline_mode = #tpu.pipeline_mode<synchronous>, transform_indices = @transform_5, window_bounds = array<i64: 1, 128>}, {transform_indices = @transform_6, window_bounds = array<i64: 2, 8, 128>}]} {
    %c0_i32 = arith.constant 0 : i32
    %0 = arith.cmpi eq, %arg0, %c0_i32 : i32
    %1 = arith.extui %0 : i1 to i32
    %c0_i32_0 = arith.constant 0 : i32
    %2 = arith.cmpi ne, %1, %c0_i32_0 : i32
    scf.if %2 {
      %cst_174 = arith.constant 0.000000e+00 : f32
      %481 = vector.broadcast %cst_174 : f32 to vector<2x128xf32>
      %c0_175 = arith.constant 0 : index
      %c0_176 = arith.constant 0 : index
      %482 = vector.load %arg8[%c0_175, %c0_176] : memref<2x128xf32, #tpu.memory_space<vmem>>, vector<2x128xf32>
      tpu.vector_store %arg8[%c0_175, %c0_176], %481 {strides = array<i32>} : memref<2x128xf32, #tpu.memory_space<vmem>>, vector<2x128xf32>,
      %cst_177 = arith.constant 0.000000e+00 : f32
      %483 = vector.broadcast %cst_177 : f32 to vector<2x128xf32>
      %c0_178 = arith.constant 0 : index
      %c0_179 = arith.constant 0 : index
      %484 = vector.load %arg9[%c0_178, %c0_179] : memref<2x128xf32, #tpu.memory_space<vmem>>, vector<2x128xf32>
      tpu.vector_store %arg9[%c0_178, %c0_179], %483 {strides = array<i32>} : memref<2x128xf32, #tpu.memory_space<vmem>>, vector<2x128xf32>,
    } else {
    }
    %c0 = arith.constant 0 : index
    %c0_1 = arith.constant 0 : index
    %c0_2 = arith.constant 0 : index
    %3 = vector.load %arg1[%c0, %c0_1, %c0_2] : memref<2x8x128xbf16, #tpu.memory_space<vmem>>, vector<2x8x128xbf16>
    %4 = vector.shape_cast %3 : vector<2x8x128xbf16> to vector<16x128xbf16>
    %c0_3 = arith.constant 0 : index
    %c0_4 = arith.constant 0 : index
    %5 = vector.load %arg2[%c0_3, %c0_4] : memref<128x512xbf16, #tpu.memory_space<vmem>>, vector<128x512xbf16>
    %cst = arith.constant dense<0.000000e+00> : vector<16x512xf32>
    %6 = tpu.matmul %4, %5, %cst {dimension_numbers = #tpu.dot_dimension_numbers<[1], [0], [0], [1], [0, 0, 1, 1], [], []>} : vector<16x128xbf16>, vector<128x512xbf16>, vector<16x512xf32> -> vector<16x512xf32>
    %c0_5 = arith.constant 0 : index
    %c0_6 = arith.constant 0 : index
    %7 = vector.load %arg4[%c0_5, %c0_6] : memref<1x512xf32, #tpu.memory_space<vmem>>, vector<1x512xf32>
    %8 = vector.broadcast %7 : vector<1x512xf32> to vector<16x512xf32>
    %9 = arith.addf %6, %8 : vector<16x512xf32>
    %10 = vector.shape_cast %9 : vector<16x512xf32> to vector<2x8x512xf32>
    %c0_7 = arith.constant 0 : index
    %c0_8 = arith.constant 0 : index
    %11 = vector.load %arg3[%c0_7, %c0_8] : memref<128x512xbf16, #tpu.memory_space<vmem>>, vector<128x512xbf16>
    %c0_9 = arith.constant 0 : index
    %c0_10 = arith.constant 0 : index
    %12 = vector.load %arg5[%c0_9, %c0_10] : memref<1x128xf32, #tpu.memory_space<vmem>>, vector<1x128xf32>
    %c0_11 = arith.constant 0 : index
    %c0_12 = arith.constant 0 : index
    %13 = vector.load %arg6[%c0_11, %c0_12] : memref<1x128xf32, #tpu.memory_space<vmem>>, vector<1x128xf32>
    %14 = tpu.iota {dimensions = array<i32: 1>} : vector<2x128xi32>
    %c64_i32 = arith.constant 64 : i32
    %15 = vector.broadcast %c64_i32 : i32 to vector<2x128xi32>
    %16 = arith.cmpi slt, %14, %15 : vector<2x128xi32>
    %17 = vector.extract_strided_slice %10 {offsets = [0, 0, 0], sizes = [2, 1, 512], strides = [1, 1, 1]} : vector<2x8x512xf32> to vector<2x1x512xf32>
    %18 = vector.shape_cast %17 : vector<2x1x512xf32> to vector<2x512xf32>
    %c0_13 = arith.constant 0 : index
    %c0_14 = arith.constant 0 : index
    %19 = vector.load %arg8[%c0_13, %c0_14] : memref<2x128xf32, #tpu.memory_space<vmem>>, vector<2x128xf32>
    %20 = arith.truncf %19 : vector<2x128xf32> to vector<2x128xbf16>
    %cst_15 = arith.constant dense<0.000000e+00> : vector<2x512xf32>
    %21 = tpu.matmul %20, %11, %cst_15 {dimension_numbers = #tpu.dot_dimension_numbers<[1], [0], [0], [1], [0, 0, 1, 1], [], []>} : vector<2x128xbf16>, vector<128x512xbf16>, vector<2x512xf32> -> vector<2x512xf32>
    %22 = arith.addf %18, %21 : vector<2x512xf32>
    %23 = vector.extract_strided_slice %22 {offsets = [0, 0], sizes = [2, 128], strides = [1, 1]} : vector<2x512xf32> to vector<2x128xf32>
    %24 = arith.negf %23 : vector<2x128xf32>
    %25 = math.exp %24 : vector<2x128xf32>
    %cst_16 = arith.constant 1.000000e+00 : f32
    %26 = vector.broadcast %cst_16 : f32 to vector<2x128xf32>
    %27 = arith.addf %26, %25 : vector<2x128xf32>
    %28 = arith.divf %26, %27 : vector<2x128xf32>
    %29 = vector.extract_strided_slice %22 {offsets = [0, 128], sizes = [2, 128], strides = [1, 1]} : vector<2x512xf32> to vector<2x128xf32>
    %30 = arith.negf %29 : vector<2x128xf32>
    %31 = math.exp %30 : vector<2x128xf32>
    %cst_17 = arith.constant 1.000000e+00 : f32
    %32 = vector.broadcast %cst_17 : f32 to vector<2x128xf32>
    %33 = arith.addf %32, %31 : vector<2x128xf32>
    %34 = arith.divf %32, %33 : vector<2x128xf32>
    %35 = vector.extract_strided_slice %22 {offsets = [0, 256], sizes = [2, 128], strides = [1, 1]} : vector<2x512xf32> to vector<2x128xf32>
    %36 = math.tanh %35 : vector<2x128xf32>
    %37 = vector.extract_strided_slice %22 {offsets = [0, 384], sizes = [2, 128], strides = [1, 1]} : vector<2x512xf32> to vector<2x128xf32>
    %38 = arith.negf %37 : vector<2x128xf32>
    %39 = math.exp %38 : vector<2x128xf32>
    %cst_18 = arith.constant 1.000000e+00 : f32
    %40 = vector.broadcast %cst_18 : f32 to vector<2x128xf32>
    %41 = arith.addf %40, %39 : vector<2x128xf32>
    %42 = arith.divf %40, %41 : vector<2x128xf32>
    %c0_19 = arith.constant 0 : index
    %c0_20 = arith.constant 0 : index
    %43 = vector.load %arg9[%c0_19, %c0_20] : memref<2x128xf32, #tpu.memory_space<vmem>>, vector<2x128xf32>
    %44 = arith.mulf %34, %43 : vector<2x128xf32>
    %45 = arith.mulf %28, %36 : vector<2x128xf32>
    %46 = arith.addf %44, %45 : vector<2x128xf32>
    %47 = math.tanh %46 : vector<2x128xf32>
    %48 = arith.mulf %42, %47 : vector<2x128xf32>
    %c0_21 = arith.constant 0 : index
    %c0_22 = arith.constant 0 : index
    %49 = vector.load %arg9[%c0_21, %c0_22] : memref<2x128xf32, #tpu.memory_space<vmem>>, vector<2x128xf32>
    tpu.vector_store %arg9[%c0_21, %c0_22], %46 {strides = array<i32>} : memref<2x128xf32, #tpu.memory_space<vmem>>, vector<2x128xf32>,
    %c0_23 = arith.constant 0 : index
    %c0_24 = arith.constant 0 : index
    %50 = vector.load %arg8[%c0_23, %c0_24] : memref<2x128xf32, #tpu.memory_space<vmem>>, vector<2x128xf32>
    tpu.vector_store %arg8[%c0_23, %c0_24], %48 {strides = array<i32>} : memref<2x128xf32, #tpu.memory_space<vmem>>, vector<2x128xf32>,
    %cst_25 = arith.constant dense<0.000000e+00> : vector<2xf32>
    %51 = vector.multi_reduction <add>, %48, %cst_25 [1] : vector<2x128xf32> to vector<2xf32>
    %52 = vector.shape_cast %51 : vector<2xf32> to vector<2x1xf32>
    %cst_26 = arith.constant 1.562500e-02 : f32
    %53 = vector.broadcast %cst_26 : f32 to vector<2x1xf32>
    %54 = arith.mulf %52, %53 : vector<2x1xf32>
    %55 = vector.broadcast %54 : vector<2x1xf32> to vector<2x128xf32>
    %56 = arith.subf %48, %55 : vector<2x128xf32>
    %cst_27 = arith.constant 0.000000e+00 : f32
    %57 = vector.broadcast %cst_27 : f32 to vector<2x128xf32>
    %58 = arith.select %16, %56, %57 : vector<2x128xi1>, vector<2x128xf32>
    %59 = arith.mulf %58, %58 : vector<2x128xf32>
    %cst_28 = arith.constant dense<0.000000e+00> : vector<2xf32>
    %60 = vector.multi_reduction <add>, %59, %cst_28 [1] : vector<2x128xf32> to vector<2xf32>
    %61 = vector.shape_cast %60 : vector<2xf32> to vector<2x1xf32>
    %cst_29 = arith.constant 1.562500e-02 : f32
    %62 = vector.broadcast %cst_29 : f32 to vector<2x1xf32>
    %63 = arith.mulf %61, %62 : vector<2x1xf32>
    %cst_30 = arith.constant 9.99999974E-6 : f32
    %64 = vector.broadcast %cst_30 : f32 to vector<2x1xf32>
    %65 = arith.addf %63, %64 : vector<2x1xf32>
    %66 = math.rsqrt %65 : vector<2x1xf32>
    %67 = vector.broadcast %66 : vector<2x1xf32> to vector<2x128xf32>
    %68 = arith.mulf %58, %67 : vector<2x128xf32>
    %69 = vector.broadcast %12 : vector<1x128xf32> to vector<2x128xf32>
    %70 = arith.mulf %68, %69 : vector<2x128xf32>
    %71 = vector.broadcast %13 : vector<1x128xf32> to vector<2x128xf32>
    %72 = arith.addf %70, %71 : vector<2x128xf32>
    %73 = vector.shape_cast %72 : vector<2x128xf32> to vector<2x1x128xf32>
    %c0_31 = arith.constant 0 : index
    %c0_32 = arith.constant 0 : index
    %c0_33 = arith.constant 0 : index
    %74 = vector.load %arg7[%c0_31, %c0_32, %c0_33] : memref<2x8x128xf32, #tpu.memory_space<vmem>>, vector<2x1x128xf32>
    tpu.vector_store %arg7[%c0_31, %c0_32, %c0_33], %73 {strides = array<i32>} : memref<2x8x128xf32, #tpu.memory_space<vmem>>, vector<2x1x128xf32>,
    %75 = vector.extract_strided_slice %10 {offsets = [0, 1, 0], sizes = [2, 1, 512], strides = [1, 1, 1]} : vector<2x8x512xf32> to vector<2x1x512xf32>
    %76 = vector.shape_cast %75 : vector<2x1x512xf32> to vector<2x512xf32>
    %c0_34 = arith.constant 0 : index
    %c0_35 = arith.constant 0 : index
    %77 = vector.load %arg8[%c0_34, %c0_35] : memref<2x128xf32, #tpu.memory_space<vmem>>, vector<2x128xf32>
    %78 = arith.truncf %77 : vector<2x128xf32> to vector<2x128xbf16>
    %cst_36 = arith.constant dense<0.000000e+00> : vector<2x512xf32>
    %79 = tpu.matmul %78, %11, %cst_36 {dimension_numbers = #tpu.dot_dimension_numbers<[1], [0], [0], [1], [0, 0, 1, 1], [], []>} : vector<2x128xbf16>, vector<128x512xbf16>, vector<2x512xf32> -> vector<2x512xf32>
    %80 = arith.addf %76, %79 : vector<2x512xf32>
    %81 = vector.extract_strided_slice %80 {offsets = [0, 0], sizes = [2, 128], strides = [1, 1]} : vector<2x512xf32> to vector<2x128xf32>
    %82 = arith.negf %81 : vector<2x128xf32>
    %83 = math.exp %82 : vector<2x128xf32>
    %cst_37 = arith.constant 1.000000e+00 : f32
    %84 = vector.broadcast %cst_37 : f32 to vector<2x128xf32>
    %85 = arith.addf %84, %83 : vector<2x128xf32>
    %86 = arith.divf %84, %85 : vector<2x128xf32>
    %87 = vector.extract_strided_slice %80 {offsets = [0, 128], sizes = [2, 128], strides = [1, 1]} : vector<2x512xf32> to vector<2x128xf32>
    %88 = arith.negf %87 : vector<2x128xf32>
    %89 = math.exp %88 : vector<2x128xf32>
    %cst_38 = arith.constant 1.000000e+00 : f32
    %90 = vector.broadcast %cst_38 : f32 to vector<2x128xf32>
    %91 = arith.addf %90, %89 : vector<2x128xf32>
    %92 = arith.divf %90, %91 : vector<2x128xf32>
    %93 = vector.extract_strided_slice %80 {offsets = [0, 256], sizes = [2, 128], strides = [1, 1]} : vector<2x512xf32> to vector<2x128xf32>
    %94 = math.tanh %93 : vector<2x128xf32>
    %95 = vector.extract_strided_slice %80 {offsets = [0, 384], sizes = [2, 128], strides = [1, 1]} : vector<2x512xf32> to vector<2x128xf32>
    %96 = arith.negf %95 : vector<2x128xf32>
    %97 = math.exp %96 : vector<2x128xf32>
    %cst_39 = arith.constant 1.000000e+00 : f32
    %98 = vector.broadcast %cst_39 : f32 to vector<2x128xf32>
    %99 = arith.addf %98, %97 : vector<2x128xf32>
    %100 = arith.divf %98, %99 : vector<2x128xf32>
    %c0_40 = arith.constant 0 : index
    %c0_41 = arith.constant 0 : index
    %101 = vector.load %arg9[%c0_40, %c0_41] : memref<2x128xf32, #tpu.memory_space<vmem>>, vector<2x128xf32>
    %102 = arith.mulf %92, %101 : vector<2x128xf32>
    %103 = arith.mulf %86, %94 : vector<2x128xf32>
    %104 = arith.addf %102, %103 : vector<2x128xf32>
    %105 = math.tanh %104 : vector<2x128xf32>
    %106 = arith.mulf %100, %105 : vector<2x128xf32>
    %c0_42 = arith.constant 0 : index
    %c0_43 = arith.constant 0 : index
    %107 = vector.load %arg9[%c0_42, %c0_43] : memref<2x128xf32, #tpu.memory_space<vmem>>, vector<2x128xf32>
    tpu.vector_store %arg9[%c0_42, %c0_43], %104 {strides = array<i32>} : memref<2x128xf32, #tpu.memory_space<vmem>>, vector<2x128xf32>,
    %c0_44 = arith.constant 0 : index
    %c0_45 = arith.constant 0 : index
    %108 = vector.load %arg8[%c0_44, %c0_45] : memref<2x128xf32, #tpu.memory_space<vmem>>, vector<2x128xf32>
    tpu.vector_store %arg8[%c0_44, %c0_45], %106 {strides = array<i32>} : memref<2x128xf32, #tpu.memory_space<vmem>>, vector<2x128xf32>,
    %cst_46 = arith.constant dense<0.000000e+00> : vector<2xf32>
    %109 = vector.multi_reduction <add>, %106, %cst_46 [1] : vector<2x128xf32> to vector<2xf32>
    %110 = vector.shape_cast %109 : vector<2xf32> to vector<2x1xf32>
    %cst_47 = arith.constant 1.562500e-02 : f32
    %111 = vector.broadcast %cst_47 : f32 to vector<2x1xf32>
    %112 = arith.mulf %110, %111 : vector<2x1xf32>
    %113 = vector.broadcast %112 : vector<2x1xf32> to vector<2x128xf32>
    %114 = arith.subf %106, %113 : vector<2x128xf32>
    %cst_48 = arith.constant 0.000000e+00 : f32
    %115 = vector.broadcast %cst_48 : f32 to vector<2x128xf32>
    %116 = arith.select %16, %114, %115 : vector<2x128xi1>, vector<2x128xf32>
    %117 = arith.mulf %116, %116 : vector<2x128xf32>
    %cst_49 = arith.constant dense<0.000000e+00> : vector<2xf32>
    %118 = vector.multi_reduction <add>, %117, %cst_49 [1] : vector<2x128xf32> to vector<2xf32>
    %119 = vector.shape_cast %118 : vector<2xf32> to vector<2x1xf32>
    %cst_50 = arith.constant 1.562500e-02 : f32
    %120 = vector.broadcast %cst_50 : f32 to vector<2x1xf32>
    %121 = arith.mulf %119, %120 : vector<2x1xf32>
    %cst_51 = arith.constant 9.99999974E-6 : f32
    %122 = vector.broadcast %cst_51 : f32 to vector<2x1xf32>
    %123 = arith.addf %121, %122 : vector<2x1xf32>
    %124 = math.rsqrt %123 : vector<2x1xf32>
    %125 = vector.broadcast %124 : vector<2x1xf32> to vector<2x128xf32>
    %126 = arith.mulf %116, %125 : vector<2x128xf32>
    %127 = vector.broadcast %12 : vector<1x128xf32> to vector<2x128xf32>
    %128 = arith.mulf %126, %127 : vector<2x128xf32>
    %129 = vector.broadcast %13 : vector<1x128xf32> to vector<2x128xf32>
    %130 = arith.addf %128, %129 : vector<2x128xf32>
    %131 = vector.shape_cast %130 : vector<2x128xf32> to vector<2x1x128xf32>
    %c0_52 = arith.constant 0 : index
    %c1 = arith.constant 1 : index
    %c0_53 = arith.constant 0 : index
    %132 = vector.load %arg7[%c0_52, %c1, %c0_53] : memref<2x8x128xf32, #tpu.memory_space<vmem>>, vector<2x1x128xf32>
    tpu.vector_store %arg7[%c0_52, %c1, %c0_53], %131 {strides = array<i32>} : memref<2x8x128xf32, #tpu.memory_space<vmem>>, vector<2x1x128xf32>,
    %133 = vector.extract_strided_slice %10 {offsets = [0, 2, 0], sizes = [2, 1, 512], strides = [1, 1, 1]} : vector<2x8x512xf32> to vector<2x1x512xf32>
    %134 = vector.shape_cast %133 : vector<2x1x512xf32> to vector<2x512xf32>
    %c0_54 = arith.constant 0 : index
    %c0_55 = arith.constant 0 : index
    %135 = vector.load %arg8[%c0_54, %c0_55] : memref<2x128xf32, #tpu.memory_space<vmem>>, vector<2x128xf32>
    %136 = arith.truncf %135 : vector<2x128xf32> to vector<2x128xbf16>
    %cst_56 = arith.constant dense<0.000000e+00> : vector<2x512xf32>
    %137 = tpu.matmul %136, %11, %cst_56 {dimension_numbers = #tpu.dot_dimension_numbers<[1], [0], [0], [1], [0, 0, 1, 1], [], []>} : vector<2x128xbf16>, vector<128x512xbf16>, vector<2x512xf32> -> vector<2x512xf32>
    %138 = arith.addf %134, %137 : vector<2x512xf32>
    %139 = vector.extract_strided_slice %138 {offsets = [0, 0], sizes = [2, 128], strides = [1, 1]} : vector<2x512xf32> to vector<2x128xf32>
    %140 = arith.negf %139 : vector<2x128xf32>
    %141 = math.exp %140 : vector<2x128xf32>
    %cst_57 = arith.constant 1.000000e+00 : f32
    %142 = vector.broadcast %cst_57 : f32 to vector<2x128xf32>
    %143 = arith.addf %142, %141 : vector<2x128xf32>
    %144 = arith.divf %142, %143 : vector<2x128xf32>
    %145 = vector.extract_strided_slice %138 {offsets = [0, 128], sizes = [2, 128], strides = [1, 1]} : vector<2x512xf32> to vector<2x128xf32>
    %146 = arith.negf %145 : vector<2x128xf32>
    %147 = math.exp %146 : vector<2x128xf32>
    %cst_58 = arith.constant 1.000000e+00 : f32
    %148 = vector.broadcast %cst_58 : f32 to vector<2x128xf32>
    %149 = arith.addf %148, %147 : vector<2x128xf32>
    %150 = arith.divf %148, %149 : vector<2x128xf32>
    %151 = vector.extract_strided_slice %138 {offsets = [0, 256], sizes = [2, 128], strides = [1, 1]} : vector<2x512xf32> to vector<2x128xf32>
    %152 = math.tanh %151 : vector<2x128xf32>
    %153 = vector.extract_strided_slice %138 {offsets = [0, 384], sizes = [2, 128], strides = [1, 1]} : vector<2x512xf32> to vector<2x128xf32>
    %154 = arith.negf %153 : vector<2x128xf32>
    %155 = math.exp %154 : vector<2x128xf32>
    %cst_59 = arith.constant 1.000000e+00 : f32
    %156 = vector.broadcast %cst_59 : f32 to vector<2x128xf32>
    %157 = arith.addf %156, %155 : vector<2x128xf32>
    %158 = arith.divf %156, %157 : vector<2x128xf32>
    %c0_60 = arith.constant 0 : index
    %c0_61 = arith.constant 0 : index
    %159 = vector.load %arg9[%c0_60, %c0_61] : memref<2x128xf32, #tpu.memory_space<vmem>>, vector<2x128xf32>
    %160 = arith.mulf %150, %159 : vector<2x128xf32>
    %161 = arith.mulf %144, %152 : vector<2x128xf32>
    %162 = arith.addf %160, %161 : vector<2x128xf32>
    %163 = math.tanh %162 : vector<2x128xf32>
    %164 = arith.mulf %158, %163 : vector<2x128xf32>
    %c0_62 = arith.constant 0 : index
    %c0_63 = arith.constant 0 : index
    %165 = vector.load %arg9[%c0_62, %c0_63] : memref<2x128xf32, #tpu.memory_space<vmem>>, vector<2x128xf32>
    tpu.vector_store %arg9[%c0_62, %c0_63], %162 {strides = array<i32>} : memref<2x128xf32, #tpu.memory_space<vmem>>, vector<2x128xf32>,
    %c0_64 = arith.constant 0 : index
    %c0_65 = arith.constant 0 : index
    %166 = vector.load %arg8[%c0_64, %c0_65] : memref<2x128xf32, #tpu.memory_space<vmem>>, vector<2x128xf32>
    tpu.vector_store %arg8[%c0_64, %c0_65], %164 {strides = array<i32>} : memref<2x128xf32, #tpu.memory_space<vmem>>, vector<2x128xf32>,
    %cst_66 = arith.constant dense<0.000000e+00> : vector<2xf32>
    %167 = vector.multi_reduction <add>, %164, %cst_66 [1] : vector<2x128xf32> to vector<2xf32>
    %168 = vector.shape_cast %167 : vector<2xf32> to vector<2x1xf32>
    %cst_67 = arith.constant 1.562500e-02 : f32
    %169 = vector.broadcast %cst_67 : f32 to vector<2x1xf32>
    %170 = arith.mulf %168, %169 : vector<2x1xf32>
    %171 = vector.broadcast %170 : vector<2x1xf32> to vector<2x128xf32>
    %172 = arith.subf %164, %171 : vector<2x128xf32>
    %cst_68 = arith.constant 0.000000e+00 : f32
    %173 = vector.broadcast %cst_68 : f32 to vector<2x128xf32>
    %174 = arith.select %16, %172, %173 : vector<2x128xi1>, vector<2x128xf32>
    %175 = arith.mulf %174, %174 : vector<2x128xf32>
    %cst_69 = arith.constant dense<0.000000e+00> : vector<2xf32>
    %176 = vector.multi_reduction <add>, %175, %cst_69 [1] : vector<2x128xf32> to vector<2xf32>
    %177 = vector.shape_cast %176 : vector<2xf32> to vector<2x1xf32>
    %cst_70 = arith.constant 1.562500e-02 : f32
    %178 = vector.broadcast %cst_70 : f32 to vector<2x1xf32>
    %179 = arith.mulf %177, %178 : vector<2x1xf32>
    %cst_71 = arith.constant 9.99999974E-6 : f32
    %180 = vector.broadcast %cst_71 : f32 to vector<2x1xf32>
    %181 = arith.addf %179, %180 : vector<2x1xf32>
    %182 = math.rsqrt %181 : vector<2x1xf32>
    %183 = vector.broadcast %182 : vector<2x1xf32> to vector<2x128xf32>
    %184 = arith.mulf %174, %183 : vector<2x128xf32>
    %185 = vector.broadcast %12 : vector<1x128xf32> to vector<2x128xf32>
    %186 = arith.mulf %184, %185 : vector<2x128xf32>
    %187 = vector.broadcast %13 : vector<1x128xf32> to vector<2x128xf32>
    %188 = arith.addf %186, %187 : vector<2x128xf32>
    %189 = vector.shape_cast %188 : vector<2x128xf32> to vector<2x1x128xf32>
    %c0_72 = arith.constant 0 : index
    %c2 = arith.constant 2 : index
    %c0_73 = arith.constant 0 : index
    %190 = vector.load %arg7[%c0_72, %c2, %c0_73] : memref<2x8x128xf32, #tpu.memory_space<vmem>>, vector<2x1x128xf32>
    tpu.vector_store %arg7[%c0_72, %c2, %c0_73], %189 {strides = array<i32>} : memref<2x8x128xf32, #tpu.memory_space<vmem>>, vector<2x1x128xf32>,
    %191 = vector.extract_strided_slice %10 {offsets = [0, 3, 0], sizes = [2, 1, 512], strides = [1, 1, 1]} : vector<2x8x512xf32> to vector<2x1x512xf32>
    %192 = vector.shape_cast %191 : vector<2x1x512xf32> to vector<2x512xf32>
    %c0_74 = arith.constant 0 : index
    %c0_75 = arith.constant 0 : index
    %193 = vector.load %arg8[%c0_74, %c0_75] : memref<2x128xf32, #tpu.memory_space<vmem>>, vector<2x128xf32>
    %194 = arith.truncf %193 : vector<2x128xf32> to vector<2x128xbf16>
    %cst_76 = arith.constant dense<0.000000e+00> : vector<2x512xf32>
    %195 = tpu.matmul %194, %11, %cst_76 {dimension_numbers = #tpu.dot_dimension_numbers<[1], [0], [0], [1], [0, 0, 1, 1], [], []>} : vector<2x128xbf16>, vector<128x512xbf16>, vector<2x512xf32> -> vector<2x512xf32>
    %196 = arith.addf %192, %195 : vector<2x512xf32>
    %197 = vector.extract_strided_slice %196 {offsets = [0, 0], sizes = [2, 128], strides = [1, 1]} : vector<2x512xf32> to vector<2x128xf32>
    %198 = arith.negf %197 : vector<2x128xf32>
    %199 = math.exp %198 : vector<2x128xf32>
    %cst_77 = arith.constant 1.000000e+00 : f32
    %200 = vector.broadcast %cst_77 : f32 to vector<2x128xf32>
    %201 = arith.addf %200, %199 : vector<2x128xf32>
    %202 = arith.divf %200, %201 : vector<2x128xf32>
    %203 = vector.extract_strided_slice %196 {offsets = [0, 128], sizes = [2, 128], strides = [1, 1]} : vector<2x512xf32> to vector<2x128xf32>
    %204 = arith.negf %203 : vector<2x128xf32>
    %205 = math.exp %204 : vector<2x128xf32>
    %cst_78 = arith.constant 1.000000e+00 : f32
    %206 = vector.broadcast %cst_78 : f32 to vector<2x128xf32>
    %207 = arith.addf %206, %205 : vector<2x128xf32>
    %208 = arith.divf %206, %207 : vector<2x128xf32>
    %209 = vector.extract_strided_slice %196 {offsets = [0, 256], sizes = [2, 128], strides = [1, 1]} : vector<2x512xf32> to vector<2x128xf32>
    %210 = math.tanh %209 : vector<2x128xf32>
    %211 = vector.extract_strided_slice %196 {offsets = [0, 384], sizes = [2, 128], strides = [1, 1]} : vector<2x512xf32> to vector<2x128xf32>
    %212 = arith.negf %211 : vector<2x128xf32>
    %213 = math.exp %212 : vector<2x128xf32>
    %cst_79 = arith.constant 1.000000e+00 : f32
    %214 = vector.broadcast %cst_79 : f32 to vector<2x128xf32>
    %215 = arith.addf %214, %213 : vector<2x128xf32>
    %216 = arith.divf %214, %215 : vector<2x128xf32>
    %c0_80 = arith.constant 0 : index
    %c0_81 = arith.constant 0 : index
    %217 = vector.load %arg9[%c0_80, %c0_81] : memref<2x128xf32, #tpu.memory_space<vmem>>, vector<2x128xf32>
    %218 = arith.mulf %208, %217 : vector<2x128xf32>
    %219 = arith.mulf %202, %210 : vector<2x128xf32>
    %220 = arith.addf %218, %219 : vector<2x128xf32>
    %221 = math.tanh %220 : vector<2x128xf32>
    %222 = arith.mulf %216, %221 : vector<2x128xf32>
    %c0_82 = arith.constant 0 : index
    %c0_83 = arith.constant 0 : index
    %223 = vector.load %arg9[%c0_82, %c0_83] : memref<2x128xf32, #tpu.memory_space<vmem>>, vector<2x128xf32>
    tpu.vector_store %arg9[%c0_82, %c0_83], %220 {strides = array<i32>} : memref<2x128xf32, #tpu.memory_space<vmem>>, vector<2x128xf32>,
    %c0_84 = arith.constant 0 : index
    %c0_85 = arith.constant 0 : index
    %224 = vector.load %arg8[%c0_84, %c0_85] : memref<2x128xf32, #tpu.memory_space<vmem>>, vector<2x128xf32>
    tpu.vector_store %arg8[%c0_84, %c0_85], %222 {strides = array<i32>} : memref<2x128xf32, #tpu.memory_space<vmem>>, vector<2x128xf32>,
    %cst_86 = arith.constant dense<0.000000e+00> : vector<2xf32>
    %225 = vector.multi_reduction <add>, %222, %cst_86 [1] : vector<2x128xf32> to vector<2xf32>
    %226 = vector.shape_cast %225 : vector<2xf32> to vector<2x1xf32>
    %cst_87 = arith.constant 1.562500e-02 : f32
    %227 = vector.broadcast %cst_87 : f32 to vector<2x1xf32>
    %228 = arith.mulf %226, %227 : vector<2x1xf32>
    %229 = vector.broadcast %228 : vector<2x1xf32> to vector<2x128xf32>
    %230 = arith.subf %222, %229 : vector<2x128xf32>
    %cst_88 = arith.constant 0.000000e+00 : f32
    %231 = vector.broadcast %cst_88 : f32 to vector<2x128xf32>
    %232 = arith.select %16, %230, %231 : vector<2x128xi1>, vector<2x128xf32>
    %233 = arith.mulf %232, %232 : vector<2x128xf32>
    %cst_89 = arith.constant dense<0.000000e+00> : vector<2xf32>
    %234 = vector.multi_reduction <add>, %233, %cst_89 [1] : vector<2x128xf32> to vector<2xf32>
    %235 = vector.shape_cast %234 : vector<2xf32> to vector<2x1xf32>
    %cst_90 = arith.constant 1.562500e-02 : f32
    %236 = vector.broadcast %cst_90 : f32 to vector<2x1xf32>
    %237 = arith.mulf %235, %236 : vector<2x1xf32>
    %cst_91 = arith.constant 9.99999974E-6 : f32
    %238 = vector.broadcast %cst_91 : f32 to vector<2x1xf32>
    %239 = arith.addf %237, %238 : vector<2x1xf32>
    %240 = math.rsqrt %239 : vector<2x1xf32>
    %241 = vector.broadcast %240 : vector<2x1xf32> to vector<2x128xf32>
    %242 = arith.mulf %232, %241 : vector<2x128xf32>
    %243 = vector.broadcast %12 : vector<1x128xf32> to vector<2x128xf32>
    %244 = arith.mulf %242, %243 : vector<2x128xf32>
    %245 = vector.broadcast %13 : vector<1x128xf32> to vector<2x128xf32>
    %246 = arith.addf %244, %245 : vector<2x128xf32>
    %247 = vector.shape_cast %246 : vector<2x128xf32> to vector<2x1x128xf32>
    %c0_92 = arith.constant 0 : index
    %c3 = arith.constant 3 : index
    %c0_93 = arith.constant 0 : index
    %248 = vector.load %arg7[%c0_92, %c3, %c0_93] : memref<2x8x128xf32, #tpu.memory_space<vmem>>, vector<2x1x128xf32>
    tpu.vector_store %arg7[%c0_92, %c3, %c0_93], %247 {strides = array<i32>} : memref<2x8x128xf32, #tpu.memory_space<vmem>>, vector<2x1x128xf32>,
    %249 = vector.extract_strided_slice %10 {offsets = [0, 4, 0], sizes = [2, 1, 512], strides = [1, 1, 1]} : vector<2x8x512xf32> to vector<2x1x512xf32>
    %250 = vector.shape_cast %249 : vector<2x1x512xf32> to vector<2x512xf32>
    %c0_94 = arith.constant 0 : index
    %c0_95 = arith.constant 0 : index
    %251 = vector.load %arg8[%c0_94, %c0_95] : memref<2x128xf32, #tpu.memory_space<vmem>>, vector<2x128xf32>
    %252 = arith.truncf %251 : vector<2x128xf32> to vector<2x128xbf16>
    %cst_96 = arith.constant dense<0.000000e+00> : vector<2x512xf32>
    %253 = tpu.matmul %252, %11, %cst_96 {dimension_numbers = #tpu.dot_dimension_numbers<[1], [0], [0], [1], [0, 0, 1, 1], [], []>} : vector<2x128xbf16>, vector<128x512xbf16>, vector<2x512xf32> -> vector<2x512xf32>
    %254 = arith.addf %250, %253 : vector<2x512xf32>
    %255 = vector.extract_strided_slice %254 {offsets = [0, 0], sizes = [2, 128], strides = [1, 1]} : vector<2x512xf32> to vector<2x128xf32>
    %256 = arith.negf %255 : vector<2x128xf32>
    %257 = math.exp %256 : vector<2x128xf32>
    %cst_97 = arith.constant 1.000000e+00 : f32
    %258 = vector.broadcast %cst_97 : f32 to vector<2x128xf32>
    %259 = arith.addf %258, %257 : vector<2x128xf32>
    %260 = arith.divf %258, %259 : vector<2x128xf32>
    %261 = vector.extract_strided_slice %254 {offsets = [0, 128], sizes = [2, 128], strides = [1, 1]} : vector<2x512xf32> to vector<2x128xf32>
    %262 = arith.negf %261 : vector<2x128xf32>
    %263 = math.exp %262 : vector<2x128xf32>
    %cst_98 = arith.constant 1.000000e+00 : f32
    %264 = vector.broadcast %cst_98 : f32 to vector<2x128xf32>
    %265 = arith.addf %264, %263 : vector<2x128xf32>
    %266 = arith.divf %264, %265 : vector<2x128xf32>
    %267 = vector.extract_strided_slice %254 {offsets = [0, 256], sizes = [2, 128], strides = [1, 1]} : vector<2x512xf32> to vector<2x128xf32>
    %268 = math.tanh %267 : vector<2x128xf32>
    %269 = vector.extract_strided_slice %254 {offsets = [0, 384], sizes = [2, 128], strides = [1, 1]} : vector<2x512xf32> to vector<2x128xf32>
    %270 = arith.negf %269 : vector<2x128xf32>
    %271 = math.exp %270 : vector<2x128xf32>
    %cst_99 = arith.constant 1.000000e+00 : f32
    %272 = vector.broadcast %cst_99 : f32 to vector<2x128xf32>
    %273 = arith.addf %272, %271 : vector<2x128xf32>
    %274 = arith.divf %272, %273 : vector<2x128xf32>
    %c0_100 = arith.constant 0 : index
    %c0_101 = arith.constant 0 : index
    %275 = vector.load %arg9[%c0_100, %c0_101] : memref<2x128xf32, #tpu.memory_space<vmem>>, vector<2x128xf32>
    %276 = arith.mulf %266, %275 : vector<2x128xf32>
    %277 = arith.mulf %260, %268 : vector<2x128xf32>
    %278 = arith.addf %276, %277 : vector<2x128xf32>
    %279 = math.tanh %278 : vector<2x128xf32>
    %280 = arith.mulf %274, %279 : vector<2x128xf32>
    %c0_102 = arith.constant 0 : index
    %c0_103 = arith.constant 0 : index
    %281 = vector.load %arg9[%c0_102, %c0_103] : memref<2x128xf32, #tpu.memory_space<vmem>>, vector<2x128xf32>
    tpu.vector_store %arg9[%c0_102, %c0_103], %278 {strides = array<i32>} : memref<2x128xf32, #tpu.memory_space<vmem>>, vector<2x128xf32>,
    %c0_104 = arith.constant 0 : index
    %c0_105 = arith.constant 0 : index
    %282 = vector.load %arg8[%c0_104, %c0_105] : memref<2x128xf32, #tpu.memory_space<vmem>>, vector<2x128xf32>
    tpu.vector_store %arg8[%c0_104, %c0_105], %280 {strides = array<i32>} : memref<2x128xf32, #tpu.memory_space<vmem>>, vector<2x128xf32>,
    %cst_106 = arith.constant dense<0.000000e+00> : vector<2xf32>
    %283 = vector.multi_reduction <add>, %280, %cst_106 [1] : vector<2x128xf32> to vector<2xf32>
    %284 = vector.shape_cast %283 : vector<2xf32> to vector<2x1xf32>
    %cst_107 = arith.constant 1.562500e-02 : f32
    %285 = vector.broadcast %cst_107 : f32 to vector<2x1xf32>
    %286 = arith.mulf %284, %285 : vector<2x1xf32>
    %287 = vector.broadcast %286 : vector<2x1xf32> to vector<2x128xf32>
    %288 = arith.subf %280, %287 : vector<2x128xf32>
    %cst_108 = arith.constant 0.000000e+00 : f32
    %289 = vector.broadcast %cst_108 : f32 to vector<2x128xf32>
    %290 = arith.select %16, %288, %289 : vector<2x128xi1>, vector<2x128xf32>
    %291 = arith.mulf %290, %290 : vector<2x128xf32>
    %cst_109 = arith.constant dense<0.000000e+00> : vector<2xf32>
    %292 = vector.multi_reduction <add>, %291, %cst_109 [1] : vector<2x128xf32> to vector<2xf32>
    %293 = vector.shape_cast %292 : vector<2xf32> to vector<2x1xf32>
    %cst_110 = arith.constant 1.562500e-02 : f32
    %294 = vector.broadcast %cst_110 : f32 to vector<2x1xf32>
    %295 = arith.mulf %293, %294 : vector<2x1xf32>
    %cst_111 = arith.constant 9.99999974E-6 : f32
    %296 = vector.broadcast %cst_111 : f32 to vector<2x1xf32>
    %297 = arith.addf %295, %296 : vector<2x1xf32>
    %298 = math.rsqrt %297 : vector<2x1xf32>
    %299 = vector.broadcast %298 : vector<2x1xf32> to vector<2x128xf32>
    %300 = arith.mulf %290, %299 : vector<2x128xf32>
    %301 = vector.broadcast %12 : vector<1x128xf32> to vector<2x128xf32>
    %302 = arith.mulf %300, %301 : vector<2x128xf32>
    %303 = vector.broadcast %13 : vector<1x128xf32> to vector<2x128xf32>
    %304 = arith.addf %302, %303 : vector<2x128xf32>
    %305 = vector.shape_cast %304 : vector<2x128xf32> to vector<2x1x128xf32>
    %c0_112 = arith.constant 0 : index
    %c4 = arith.constant 4 : index
    %c0_113 = arith.constant 0 : index
    %306 = vector.load %arg7[%c0_112, %c4, %c0_113] : memref<2x8x128xf32, #tpu.memory_space<vmem>>, vector<2x1x128xf32>
    tpu.vector_store %arg7[%c0_112, %c4, %c0_113], %305 {strides = array<i32>} : memref<2x8x128xf32, #tpu.memory_space<vmem>>, vector<2x1x128xf32>,
    %307 = vector.extract_strided_slice %10 {offsets = [0, 5, 0], sizes = [2, 1, 512], strides = [1, 1, 1]} : vector<2x8x512xf32> to vector<2x1x512xf32>
    %308 = vector.shape_cast %307 : vector<2x1x512xf32> to vector<2x512xf32>
    %c0_114 = arith.constant 0 : index
    %c0_115 = arith.constant 0 : index
    %309 = vector.load %arg8[%c0_114, %c0_115] : memref<2x128xf32, #tpu.memory_space<vmem>>, vector<2x128xf32>
    %310 = arith.truncf %309 : vector<2x128xf32> to vector<2x128xbf16>
    %cst_116 = arith.constant dense<0.000000e+00> : vector<2x512xf32>
    %311 = tpu.matmul %310, %11, %cst_116 {dimension_numbers = #tpu.dot_dimension_numbers<[1], [0], [0], [1], [0, 0, 1, 1], [], []>} : vector<2x128xbf16>, vector<128x512xbf16>, vector<2x512xf32> -> vector<2x512xf32>
    %312 = arith.addf %308, %311 : vector<2x512xf32>
    %313 = vector.extract_strided_slice %312 {offsets = [0, 0], sizes = [2, 128], strides = [1, 1]} : vector<2x512xf32> to vector<2x128xf32>
    %314 = arith.negf %313 : vector<2x128xf32>
    %315 = math.exp %314 : vector<2x128xf32>
    %cst_117 = arith.constant 1.000000e+00 : f32
    %316 = vector.broadcast %cst_117 : f32 to vector<2x128xf32>
    %317 = arith.addf %316, %315 : vector<2x128xf32>
    %318 = arith.divf %316, %317 : vector<2x128xf32>
    %319 = vector.extract_strided_slice %312 {offsets = [0, 128], sizes = [2, 128], strides = [1, 1]} : vector<2x512xf32> to vector<2x128xf32>
    %320 = arith.negf %319 : vector<2x128xf32>
    %321 = math.exp %320 : vector<2x128xf32>
    %cst_118 = arith.constant 1.000000e+00 : f32
    %322 = vector.broadcast %cst_118 : f32 to vector<2x128xf32>
    %323 = arith.addf %322, %321 : vector<2x128xf32>
    %324 = arith.divf %322, %323 : vector<2x128xf32>
    %325 = vector.extract_strided_slice %312 {offsets = [0, 256], sizes = [2, 128], strides = [1, 1]} : vector<2x512xf32> to vector<2x128xf32>
    %326 = math.tanh %325 : vector<2x128xf32>
    %327 = vector.extract_strided_slice %312 {offsets = [0, 384], sizes = [2, 128], strides = [1, 1]} : vector<2x512xf32> to vector<2x128xf32>
    %328 = arith.negf %327 : vector<2x128xf32>
    %329 = math.exp %328 : vector<2x128xf32>
    %cst_119 = arith.constant 1.000000e+00 : f32
    %330 = vector.broadcast %cst_119 : f32 to vector<2x128xf32>
    %331 = arith.addf %330, %329 : vector<2x128xf32>
    %332 = arith.divf %330, %331 : vector<2x128xf32>
    %c0_120 = arith.constant 0 : index
    %c0_121 = arith.constant 0 : index
    %333 = vector.load %arg9[%c0_120, %c0_121] : memref<2x128xf32, #tpu.memory_space<vmem>>, vector<2x128xf32>
    %334 = arith.mulf %324, %333 : vector<2x128xf32>
    %335 = arith.mulf %318, %326 : vector<2x128xf32>
    %336 = arith.addf %334, %335 : vector<2x128xf32>
    %337 = math.tanh %336 : vector<2x128xf32>
    %338 = arith.mulf %332, %337 : vector<2x128xf32>
    %c0_122 = arith.constant 0 : index
    %c0_123 = arith.constant 0 : index
    %339 = vector.load %arg9[%c0_122, %c0_123] : memref<2x128xf32, #tpu.memory_space<vmem>>, vector<2x128xf32>
    tpu.vector_store %arg9[%c0_122, %c0_123], %336 {strides = array<i32>} : memref<2x128xf32, #tpu.memory_space<vmem>>, vector<2x128xf32>,
    %c0_124 = arith.constant 0 : index
    %c0_125 = arith.constant 0 : index
    %340 = vector.load %arg8[%c0_124, %c0_125] : memref<2x128xf32, #tpu.memory_space<vmem>>, vector<2x128xf32>
    tpu.vector_store %arg8[%c0_124, %c0_125], %338 {strides = array<i32>} : memref<2x128xf32, #tpu.memory_space<vmem>>, vector<2x128xf32>,
    %cst_126 = arith.constant dense<0.000000e+00> : vector<2xf32>
    %341 = vector.multi_reduction <add>, %338, %cst_126 [1] : vector<2x128xf32> to vector<2xf32>
    %342 = vector.shape_cast %341 : vector<2xf32> to vector<2x1xf32>
    %cst_127 = arith.constant 1.562500e-02 : f32
    %343 = vector.broadcast %cst_127 : f32 to vector<2x1xf32>
    %344 = arith.mulf %342, %343 : vector<2x1xf32>
    %345 = vector.broadcast %344 : vector<2x1xf32> to vector<2x128xf32>
    %346 = arith.subf %338, %345 : vector<2x128xf32>
    %cst_128 = arith.constant 0.000000e+00 : f32
    %347 = vector.broadcast %cst_128 : f32 to vector<2x128xf32>
    %348 = arith.select %16, %346, %347 : vector<2x128xi1>, vector<2x128xf32>
    %349 = arith.mulf %348, %348 : vector<2x128xf32>
    %cst_129 = arith.constant dense<0.000000e+00> : vector<2xf32>
    %350 = vector.multi_reduction <add>, %349, %cst_129 [1] : vector<2x128xf32> to vector<2xf32>
    %351 = vector.shape_cast %350 : vector<2xf32> to vector<2x1xf32>
    %cst_130 = arith.constant 1.562500e-02 : f32
    %352 = vector.broadcast %cst_130 : f32 to vector<2x1xf32>
    %353 = arith.mulf %351, %352 : vector<2x1xf32>
    %cst_131 = arith.constant 9.99999974E-6 : f32
    %354 = vector.broadcast %cst_131 : f32 to vector<2x1xf32>
    %355 = arith.addf %353, %354 : vector<2x1xf32>
    %356 = math.rsqrt %355 : vector<2x1xf32>
    %357 = vector.broadcast %356 : vector<2x1xf32> to vector<2x128xf32>
    %358 = arith.mulf %348, %357 : vector<2x128xf32>
    %359 = vector.broadcast %12 : vector<1x128xf32> to vector<2x128xf32>
    %360 = arith.mulf %358, %359 : vector<2x128xf32>
    %361 = vector.broadcast %13 : vector<1x128xf32> to vector<2x128xf32>
    %362 = arith.addf %360, %361 : vector<2x128xf32>
    %363 = vector.shape_cast %362 : vector<2x128xf32> to vector<2x1x128xf32>
    %c0_132 = arith.constant 0 : index
    %c5 = arith.constant 5 : index
    %c0_133 = arith.constant 0 : index
    %364 = vector.load %arg7[%c0_132, %c5, %c0_133] : memref<2x8x128xf32, #tpu.memory_space<vmem>>, vector<2x1x128xf32>
    tpu.vector_store %arg7[%c0_132, %c5, %c0_133], %363 {strides = array<i32>} : memref<2x8x128xf32, #tpu.memory_space<vmem>>, vector<2x1x128xf32>,
    %365 = vector.extract_strided_slice %10 {offsets = [0, 6, 0], sizes = [2, 1, 512], strides = [1, 1, 1]} : vector<2x8x512xf32> to vector<2x1x512xf32>
    %366 = vector.shape_cast %365 : vector<2x1x512xf32> to vector<2x512xf32>
    %c0_134 = arith.constant 0 : index
    %c0_135 = arith.constant 0 : index
    %367 = vector.load %arg8[%c0_134, %c0_135] : memref<2x128xf32, #tpu.memory_space<vmem>>, vector<2x128xf32>
    %368 = arith.truncf %367 : vector<2x128xf32> to vector<2x128xbf16>
    %cst_136 = arith.constant dense<0.000000e+00> : vector<2x512xf32>
    %369 = tpu.matmul %368, %11, %cst_136 {dimension_numbers = #tpu.dot_dimension_numbers<[1], [0], [0], [1], [0, 0, 1, 1], [], []>} : vector<2x128xbf16>, vector<128x512xbf16>, vector<2x512xf32> -> vector<2x512xf32>
    %370 = arith.addf %366, %369 : vector<2x512xf32>
    %371 = vector.extract_strided_slice %370 {offsets = [0, 0], sizes = [2, 128], strides = [1, 1]} : vector<2x512xf32> to vector<2x128xf32>
    %372 = arith.negf %371 : vector<2x128xf32>
    %373 = math.exp %372 : vector<2x128xf32>
    %cst_137 = arith.constant 1.000000e+00 : f32
    %374 = vector.broadcast %cst_137 : f32 to vector<2x128xf32>
    %375 = arith.addf %374, %373 : vector<2x128xf32>
    %376 = arith.divf %374, %375 : vector<2x128xf32>
    %377 = vector.extract_strided_slice %370 {offsets = [0, 128], sizes = [2, 128], strides = [1, 1]} : vector<2x512xf32> to vector<2x128xf32>
    %378 = arith.negf %377 : vector<2x128xf32>
    %379 = math.exp %378 : vector<2x128xf32>
    %cst_138 = arith.constant 1.000000e+00 : f32
    %380 = vector.broadcast %cst_138 : f32 to vector<2x128xf32>
    %381 = arith.addf %380, %379 : vector<2x128xf32>
    %382 = arith.divf %380, %381 : vector<2x128xf32>
    %383 = vector.extract_strided_slice %370 {offsets = [0, 256], sizes = [2, 128], strides = [1, 1]} : vector<2x512xf32> to vector<2x128xf32>
    %384 = math.tanh %383 : vector<2x128xf32>
    %385 = vector.extract_strided_slice %370 {offsets = [0, 384], sizes = [2, 128], strides = [1, 1]} : vector<2x512xf32> to vector<2x128xf32>
    %386 = arith.negf %385 : vector<2x128xf32>
    %387 = math.exp %386 : vector<2x128xf32>
    %cst_139 = arith.constant 1.000000e+00 : f32
    %388 = vector.broadcast %cst_139 : f32 to vector<2x128xf32>
    %389 = arith.addf %388, %387 : vector<2x128xf32>
    %390 = arith.divf %388, %389 : vector<2x128xf32>
    %c0_140 = arith.constant 0 : index
    %c0_141 = arith.constant 0 : index
    %391 = vector.load %arg9[%c0_140, %c0_141] : memref<2x128xf32, #tpu.memory_space<vmem>>, vector<2x128xf32>
    %392 = arith.mulf %382, %391 : vector<2x128xf32>
    %393 = arith.mulf %376, %384 : vector<2x128xf32>
    %394 = arith.addf %392, %393 : vector<2x128xf32>
    %395 = math.tanh %394 : vector<2x128xf32>
    %396 = arith.mulf %390, %395 : vector<2x128xf32>
    %c0_142 = arith.constant 0 : index
    %c0_143 = arith.constant 0 : index
    %397 = vector.load %arg9[%c0_142, %c0_143] : memref<2x128xf32, #tpu.memory_space<vmem>>, vector<2x128xf32>
    tpu.vector_store %arg9[%c0_142, %c0_143], %394 {strides = array<i32>} : memref<2x128xf32, #tpu.memory_space<vmem>>, vector<2x128xf32>,
    %c0_144 = arith.constant 0 : index
    %c0_145 = arith.constant 0 : index
    %398 = vector.load %arg8[%c0_144, %c0_145] : memref<2x128xf32, #tpu.memory_space<vmem>>, vector<2x128xf32>
    tpu.vector_store %arg8[%c0_144, %c0_145], %396 {strides = array<i32>} : memref<2x128xf32, #tpu.memory_space<vmem>>, vector<2x128xf32>,
    %cst_146 = arith.constant dense<0.000000e+00> : vector<2xf32>
    %399 = vector.multi_reduction <add>, %396, %cst_146 [1] : vector<2x128xf32> to vector<2xf32>
    %400 = vector.shape_cast %399 : vector<2xf32> to vector<2x1xf32>
    %cst_147 = arith.constant 1.562500e-02 : f32
    %401 = vector.broadcast %cst_147 : f32 to vector<2x1xf32>
    %402 = arith.mulf %400, %401 : vector<2x1xf32>
    %403 = vector.broadcast %402 : vector<2x1xf32> to vector<2x128xf32>
    %404 = arith.subf %396, %403 : vector<2x128xf32>
    %cst_148 = arith.constant 0.000000e+00 : f32
    %405 = vector.broadcast %cst_148 : f32 to vector<2x128xf32>
    %406 = arith.select %16, %404, %405 : vector<2x128xi1>, vector<2x128xf32>
    %407 = arith.mulf %406, %406 : vector<2x128xf32>
    %cst_149 = arith.constant dense<0.000000e+00> : vector<2xf32>
    %408 = vector.multi_reduction <add>, %407, %cst_149 [1] : vector<2x128xf32> to vector<2xf32>
    %409 = vector.shape_cast %408 : vector<2xf32> to vector<2x1xf32>
    %cst_150 = arith.constant 1.562500e-02 : f32
    %410 = vector.broadcast %cst_150 : f32 to vector<2x1xf32>
    %411 = arith.mulf %409, %410 : vector<2x1xf32>
    %cst_151 = arith.constant 9.99999974E-6 : f32
    %412 = vector.broadcast %cst_151 : f32 to vector<2x1xf32>
    %413 = arith.addf %411, %412 : vector<2x1xf32>
    %414 = math.rsqrt %413 : vector<2x1xf32>
    %415 = vector.broadcast %414 : vector<2x1xf32> to vector<2x128xf32>
    %416 = arith.mulf %406, %415 : vector<2x128xf32>
    %417 = vector.broadcast %12 : vector<1x128xf32> to vector<2x128xf32>
    %418 = arith.mulf %416, %417 : vector<2x128xf32>
    %419 = vector.broadcast %13 : vector<1x128xf32> to vector<2x128xf32>
    %420 = arith.addf %418, %419 : vector<2x128xf32>
    %421 = vector.shape_cast %420 : vector<2x128xf32> to vector<2x1x128xf32>
    %c0_152 = arith.constant 0 : index
    %c6 = arith.constant 6 : index
    %c0_153 = arith.constant 0 : index
    %422 = vector.load %arg7[%c0_152, %c6, %c0_153] : memref<2x8x128xf32, #tpu.memory_space<vmem>>, vector<2x1x128xf32>
    tpu.vector_store %arg7[%c0_152, %c6, %c0_153], %421 {strides = array<i32>} : memref<2x8x128xf32, #tpu.memory_space<vmem>>, vector<2x1x128xf32>,
    %423 = vector.extract_strided_slice %10 {offsets = [0, 7, 0], sizes = [2, 1, 512], strides = [1, 1, 1]} : vector<2x8x512xf32> to vector<2x1x512xf32>
    %424 = vector.shape_cast %423 : vector<2x1x512xf32> to vector<2x512xf32>
    %c0_154 = arith.constant 0 : index
    %c0_155 = arith.constant 0 : index
    %425 = vector.load %arg8[%c0_154, %c0_155] : memref<2x128xf32, #tpu.memory_space<vmem>>, vector<2x128xf32>
    %426 = arith.truncf %425 : vector<2x128xf32> to vector<2x128xbf16>
    %cst_156 = arith.constant dense<0.000000e+00> : vector<2x512xf32>
    %427 = tpu.matmul %426, %11, %cst_156 {dimension_numbers = #tpu.dot_dimension_numbers<[1], [0], [0], [1], [0, 0, 1, 1], [], []>} : vector<2x128xbf16>, vector<128x512xbf16>, vector<2x512xf32> -> vector<2x512xf32>
    %428 = arith.addf %424, %427 : vector<2x512xf32>
    %429 = vector.extract_strided_slice %428 {offsets = [0, 0], sizes = [2, 128], strides = [1, 1]} : vector<2x512xf32> to vector<2x128xf32>
    %430 = arith.negf %429 : vector<2x128xf32>
    %431 = math.exp %430 : vector<2x128xf32>
    %cst_157 = arith.constant 1.000000e+00 : f32
    %432 = vector.broadcast %cst_157 : f32 to vector<2x128xf32>
    %433 = arith.addf %432, %431 : vector<2x128xf32>
    %434 = arith.divf %432, %433 : vector<2x128xf32>
    %435 = vector.extract_strided_slice %428 {offsets = [0, 128], sizes = [2, 128], strides = [1, 1]} : vector<2x512xf32> to vector<2x128xf32>
    %436 = arith.negf %435 : vector<2x128xf32>
    %437 = math.exp %436 : vector<2x128xf32>
    %cst_158 = arith.constant 1.000000e+00 : f32
    %438 = vector.broadcast %cst_158 : f32 to vector<2x128xf32>
    %439 = arith.addf %438, %437 : vector<2x128xf32>
    %440 = arith.divf %438, %439 : vector<2x128xf32>
    %441 = vector.extract_strided_slice %428 {offsets = [0, 256], sizes = [2, 128], strides = [1, 1]} : vector<2x512xf32> to vector<2x128xf32>
    %442 = math.tanh %441 : vector<2x128xf32>
    %443 = vector.extract_strided_slice %428 {offsets = [0, 384], sizes = [2, 128], strides = [1, 1]} : vector<2x512xf32> to vector<2x128xf32>
    %444 = arith.negf %443 : vector<2x128xf32>
    %445 = math.exp %444 : vector<2x128xf32>
    %cst_159 = arith.constant 1.000000e+00 : f32
    %446 = vector.broadcast %cst_159 : f32 to vector<2x128xf32>
    %447 = arith.addf %446, %445 : vector<2x128xf32>
    %448 = arith.divf %446, %447 : vector<2x128xf32>
    %c0_160 = arith.constant 0 : index
    %c0_161 = arith.constant 0 : index
    %449 = vector.load %arg9[%c0_160, %c0_161] : memref<2x128xf32, #tpu.memory_space<vmem>>, vector<2x128xf32>
    %450 = arith.mulf %440, %449 : vector<2x128xf32>
    %451 = arith.mulf %434, %442 : vector<2x128xf32>
    %452 = arith.addf %450, %451 : vector<2x128xf32>
    %453 = math.tanh %452 : vector<2x128xf32>
    %454 = arith.mulf %448, %453 : vector<2x128xf32>
    %c0_162 = arith.constant 0 : index
    %c0_163 = arith.constant 0 : index
    %455 = vector.load %arg9[%c0_162, %c0_163] : memref<2x128xf32, #tpu.memory_space<vmem>>, vector<2x128xf32>
    tpu.vector_store %arg9[%c0_162, %c0_163], %452 {strides = array<i32>} : memref<2x128xf32, #tpu.memory_space<vmem>>, vector<2x128xf32>,
    %c0_164 = arith.constant 0 : index
    %c0_165 = arith.constant 0 : index
    %456 = vector.load %arg8[%c0_164, %c0_165] : memref<2x128xf32, #tpu.memory_space<vmem>>, vector<2x128xf32>
    tpu.vector_store %arg8[%c0_164, %c0_165], %454 {strides = array<i32>} : memref<2x128xf32, #tpu.memory_space<vmem>>, vector<2x128xf32>,
    %cst_166 = arith.constant dense<0.000000e+00> : vector<2xf32>
    %457 = vector.multi_reduction <add>, %454, %cst_166 [1] : vector<2x128xf32> to vector<2xf32>
    %458 = vector.shape_cast %457 : vector<2xf32> to vector<2x1xf32>
    %cst_167 = arith.constant 1.562500e-02 : f32
    %459 = vector.broadcast %cst_167 : f32 to vector<2x1xf32>
    %460 = arith.mulf %458, %459 : vector<2x1xf32>
    %461 = vector.broadcast %460 : vector<2x1xf32> to vector<2x128xf32>
    %462 = arith.subf %454, %461 : vector<2x128xf32>
    %cst_168 = arith.constant 0.000000e+00 : f32
    %463 = vector.broadcast %cst_168 : f32 to vector<2x128xf32>
    %464 = arith.select %16, %462, %463 : vector<2x128xi1>, vector<2x128xf32>
    %465 = arith.mulf %464, %464 : vector<2x128xf32>
    %cst_169 = arith.constant dense<0.000000e+00> : vector<2xf32>
    %466 = vector.multi_reduction <add>, %465, %cst_169 [1] : vector<2x128xf32> to vector<2xf32>
    %467 = vector.shape_cast %466 : vector<2xf32> to vector<2x1xf32>
    %cst_170 = arith.constant 1.562500e-02 : f32
    %468 = vector.broadcast %cst_170 : f32 to vector<2x1xf32>
    %469 = arith.mulf %467, %468 : vector<2x1xf32>
    %cst_171 = arith.constant 9.99999974E-6 : f32
    %470 = vector.broadcast %cst_171 : f32 to vector<2x1xf32>
    %471 = arith.addf %469, %470 : vector<2x1xf32>
    %472 = math.rsqrt %471 : vector<2x1xf32>
    %473 = vector.broadcast %472 : vector<2x1xf32> to vector<2x128xf32>
    %474 = arith.mulf %464, %473 : vector<2x128xf32>
    %475 = vector.broadcast %12 : vector<1x128xf32> to vector<2x128xf32>
    %476 = arith.mulf %474, %475 : vector<2x128xf32>
    %477 = vector.broadcast %13 : vector<1x128xf32> to vector<2x128xf32>
    %478 = arith.addf %476, %477 : vector<2x128xf32>
    %479 = vector.shape_cast %478 : vector<2x128xf32> to vector<2x1x128xf32>
    %c0_172 = arith.constant 0 : index
    %c7 = arith.constant 7 : index
    %c0_173 = arith.constant 0 : index
    %480 = vector.load %arg7[%c0_172, %c7, %c0_173] : memref<2x8x128xf32, #tpu.memory_space<vmem>>, vector<2x1x128xf32>
    tpu.vector_store %arg7[%c0_172, %c7, %c0_173], %479 {strides = array<i32>} : memref<2x8x128xf32, #tpu.memory_space<vmem>>, vector<2x1x128xf32>,
    return
  }
  func.func @transform_0(%arg0: i32) -> (i32, i32, i32) {
    %c0_i32 = arith.constant 0 : i32
    %c0_i32_0 = arith.constant 0 : i32
    %c0_i32_1 = arith.constant 0 : i32
    return %c0_i32, %arg0, %c0_i32_0 : i32, i32, i32
  }
  func.func @transform_1(%arg0: i32) -> (i32, i32) {
    %c0_i32 = arith.constant 0 : i32
    %c0_i32_0 = arith.constant 0 : i32
    %c0_i32_1 = arith.constant 0 : i32
    return %c0_i32, %c0_i32_0 : i32, i32
  }
  func.func @transform_2(%arg0: i32) -> (i32, i32) {
    %c0_i32 = arith.constant 0 : i32
    %c0_i32_0 = arith.constant 0 : i32
    %c0_i32_1 = arith.constant 0 : i32
    return %c0_i32, %c0_i32_0 : i32, i32
  }
  func.func @transform_3(%arg0: i32) -> (i32, i32) {
    %c0_i32 = arith.constant 0 : i32
    %c0_i32_0 = arith.constant 0 : i32
    %c0_i32_1 = arith.constant 0 : i32
    return %c0_i32, %c0_i32_0 : i32, i32
  }
  func.func @transform_4(%arg0: i32) -> (i32, i32) {
    %c0_i32 = arith.constant 0 : i32
    %c0_i32_0 = arith.constant 0 : i32
    %c0_i32_1 = arith.constant 0 : i32
    return %c0_i32, %c0_i32_0 : i32, i32
  }
  func.func @transform_5(%arg0: i32) -> (i32, i32) {
    %c0_i32 = arith.constant 0 : i32
    %c0_i32_0 = arith.constant 0 : i32
    %c0_i32_1 = arith.constant 0 : i32
    return %c0_i32, %c0_i32_0 : i32, i32
  }
  func.func @transform_6(%arg0: i32) -> (i32, i32, i32) {
    %c0_i32 = arith.constant 0 : i32
    %c0_i32_0 = arith.constant 0 : i32
    %c0_i32_1 = arith.constant 0 : i32
    return %c0_i32, %arg0, %c0_i32_0 : i32, i32, i32
  }
}

</mosaic_0001>

<bundles_post_ra>
// kernel: tpu_custom_call.1
= control target key start
LH: loop header
LB: loop body
LE: loop exit
PB: predicated region body
PF: predicated region fallthrough
CT: control target
= control target key end

     0   :  { %11 = vsyncpa [#allocation5], 0  ;;  %s4512_s0 = inlined_call_operand.hbm [shape: bf16[2,24,128], index: 0, kind: input, shape index: {}]   ;;  %s4513_s1 = inlined_call_operand.hbm [shape: bf16[128,512], index: 1, kind: input, shape index: {}]   ;;  %s4514_s2 = inlined_call_operand.hbm [shape: bf16[128,512], index: 2, kind: input, shape index: {}]   ;;  %s4515_s3 = inlined_call_operand.vmem [shape: f32[1,512], index: 3, kind: input, shape index: {}]   ;;  %s4516_s4 = inlined_call_operand.vmem [shape: f32[1,128], index: 4, kind: input, shape index: {}]   ;;  %s4517_s5 = inlined_call_operand.vmem [shape: f32[1,128], index: 5, kind: input, shape index: {}]   ;;  %s4518_s6 = inlined_call_operand.hbm [shape: f32[2,24,128], index: 6, kind: output, shape index: {}]  }
   0x1   :  { %13 = vsyncpa [#allocation5 + $0x1], 0 }
   0x2   :  { %14 = vsyncpa [#allocation8], 0 }
   0x3   :  { %15 = vsyncpa [#allocation6], 0 }
   0x4   :  { %17 = vsyncpa [#allocation6 + $0x1], 0  ;;  %s3628_s21 = smov 0   ;;  %s3630_s22 = smov 0  }
   0x5   :  { %s3632_s23 = smov 0   ;;  %s3634_s24 = smov 0  }
   0x6 LB: > { %s3649_s25 = sadd.s32 4294967295, %s3576_s24   ;;  %s2793_s26 = sadd.s32 4294967294, %s3576_s24   ;;  %s3576_s24 = sphi %s3634_s24, %s4578_s24   ;;  %s3572_s23 = sphi %s3632_s23, %s4577_s23   ;;  %s3568_s22 = sphi %s3630_s22, %s4576_s22   ;;  %s3564_s21 = sphi %s3628_s21, %s4575_s21  }
   0x7   : > { %s3653_s27 = sadd.s32 1, %s3576_s24   ;;  %s30_s28 = sadd.s32 1, %s3572_s23 }
   0x8   : > { %s27_s29 = ssub.s32 %s3576_s24, %s3653_s27  ;;  %p37_p0 = scmp.ne.s32.totalorder %s3572_s23, %s3568_s22 }
   0x9   : > { %p28_p1 = scmp.eq.s32.totalorder %s27_s29, 0  ;;  %p38_p2 = scmp.eq.s32.totalorder %s3576_s24, 0 }
   0xa   : > { %p43_p3 = scmp.ne.s32.totalorder %s3568_s22, %s3564_s21  ;;  %p4519_p4 = scmp.eq.s32.totalorder %s3649_s25, 0 }
   0xb   : > { %s3665_s30 = scalar_select %p28_p1, %s3572_s23, %s30_s28  }
   0xc   : > { %p3667_p5 = por %p38_p2, %p37_p0  ;;  %p3673_p6 = por %p4519_p4, %p43_p3 }
   0xd   : > { %4536 = sst [smem:[#allocation14_spill]] %s3665_s30  ;;  %p172_p7 = scmp.eq.s32.totalorder %s3649_s25, 2 }
   0xe   : > { %s4537_s7 = scalar_select %p3667_p5, 1, 0 }
   0xf   : > { %s4538_s8 = scalar_select %p3673_p6, 1, 0 }
  0x10   : > { %p178_p8 = scmp.eq.s32.totalorder %s2793_s26, 2  ;;  %p2794_p9 = scmp.ge.s32.totalorder %s3576_s24, 1 }
  0x11   : > { %p185_p10 = scmp.lt.s32.totalorder %s3576_s24, 4  ;;  %p3680_p11 = por %p172_p7, %p37_p0 }
  0x12   : > { %p3684_p12 = por %p178_p8, %p43_p3  ;;  %s3578_s12 = smov [#allocation7]  }
  0x13   : > { %s4539_s9 = scalar_select %p3680_p11, 1, 0 }
  0x14   : > { %s4540_s10 = scalar_select %p3684_p12, 1, 0 }
  0x15   : > { %p3688_p13 = pnand %p2794_p9, %p185_p10  ;;  %s197_s13 = sshll.u32 %s3578_s12, 4  ;;  %s198_s13 = int_to_ptr.vmem [resolvable:$true] %s197_s13 }
  0x16   : > { %s3579_s15 = smov [#allocation9]   ;;  %s3420_s19 = scalar_lea.hbm %s4513_s1, 4096 }
  0x17   : > { %s4541_s11 = scalar_select %p3688_p13, 1, 0 }
  0x18   : > { %p2953_p2 = pneg %p3688_p13  ;;  %s210_s16 = sshll.u32 %s3579_s15, 4  ;;  %s211_s16 = int_to_ptr.vmem [resolvable:$true] %s210_s16 }
  0x19   : > { %p3421_p7 = scmp.ne.s32.totalorder %s4513_s1, %s3420_s19 }
  0x1a   : > { %p3697_p0 = pnand %p2953_p2, %p4519_p4  ;;  %p3427_p2 = scmp.lt.u32.totalorder %s3420_s19, %s4513_s1 }
  0x1c   : > { %p3422_p8 = pneg %p3697_p0 }
  0x1e   : > { %p3423_p9 = pnand %p3422_p8, %p3421_p7 }
  0x20   : > { %p3424_p10 = pneg %p3423_p9 }
  0x22   : > { %p3429_p1 = pnand %p3427_p2, %p3424_p10 }
  0x24   : > { %3432 = shalt.err (!%p3429_p1)
}
  0x25   : > { %s3433_s12 = scalar_lea.vmem %s198_s13, 4096  ;;  %p3441_p11 = scmp.lt.s32.totalorder %s198_s13, %s198_s13 }
  0x26   : > { %p3434_p4 = scmp.ne.s32.totalorder %s198_s13, %s3433_s12  ;;  %p3442_p6 = scmp.lt.s32.totalorder %s3433_s12, %s3433_s12 }
  0x28   : > { %p3436_p3 = pnand %p3434_p4, %p3422_p8  ;;  %p3443_p13 = por %p3442_p6, %p3441_p11 }
  0x2a   : > { %p3437_p12 = pneg %p3436_p3 }
  0x2c   : > { %p3444_p5 = pnand %p3443_p13, %p3437_p12 }
  0x2e   : > { %3447 = shalt.err (!%p3444_p5)
}
  0x2f   : > { %s3580_s15 = smov 256   ;;  %s3581_s17 = smov 16  }
  0x30   : > { %2956 = dma.hbm_to_vmem [thread:$0]  (!%p3697_p0), %s4513_s1, 4096, %s198_s13, [#allocation8], %s3580_s15, %s3580_s15, %s3581_s17  }
  0x31   : > { %p4543_p1 = scmp.ne.s32.totalorder %s4537_s7, 0  ;;  %p4544_p7 = scmp.lt.s32.totalorder %s3576_s24, 3 }
  0x32   : > { %s3448_s29 = scalar_lea.hbm %s4514_s2, 4096 }
  0x33   : > { %p3728_p4 = pnand %p4544_p7, %p4543_p1  ;;  %p3449_p5 = scmp.ne.s32.totalorder %s4514_s2, %s3448_s29 }
  0x34   : > { %p3455_p12 = scmp.lt.u32.totalorder %s3448_s29, %s4514_s2 }
  0x35   : > { %s4545_s20 = scalar_select %p3728_p4, 1, 0 }
  0x36   : > { %p3451_p6 = pnand %p3449_p5, %p3422_p8 }
  0x38   : > { %p3452_p11 = pneg %p3451_p6 }
  0x3a   : > { %p3457_p13 = pnand %p3455_p12, %p3452_p11 }
  0x3c   : > { %3460 = shalt.err (!%p3457_p13)
}
  0x3d   : > { %s3461_s18 = scalar_lea.vmem %s211_s16, 4096  ;;  %p3469_p2 = scmp.lt.s32.totalorder %s211_s16, %s211_s16 }
  0x3e   : > { %p3462_p3 = scmp.ne.s32.totalorder %s211_s16, %s3461_s18  ;;  %p3470_p1 = scmp.lt.s32.totalorder %s3461_s18, %s3461_s18 }
  0x40   : > { %p3464_p9 = pnand %p3462_p3, %p3422_p8  ;;  %p3471_p7 = por %p3470_p1, %p3469_p2 }
  0x42   : > { %p3465_p10 = pneg %p3464_p9 }
  0x44   : > { %p3472_p4 = pnand %p3471_p7, %p3465_p10 }
  0x46   : > { %3475 = shalt.err (!%p3472_p4)
}
  0x47   : > { %2959 = dma.hbm_to_vmem [thread:$0]  (!%p3697_p0), %s4514_s2, 4096, %s211_s16, [#allocation8], %s3580_s15, %s3580_s15, %s3581_s17  }
  0x48   : > { %s233_s26 = sand.u32 1, %s3572_s23   ;;  %s2799_s29 = sshll.u32 %s3576_s24, 6 }
  0x49   : > { %s2798_s28 = sshll.u32 %s233_s26, 3  ;;  %s3757_s7 = scalar_lea.hbm %s4512_s0, %s2799_s29 }
  0x4a   : > { %s237_s14 = scalar_lea.vmem [#allocation4], %s2798_s28  ;;  %s3761_s30 = scalar_lea.sflag [#allocation5], %s233_s26 }
  0x4b   : > { %s243_s18 = sshll.u32 %s237_s14, 4  ;;  %s3476_s19 = scalar_lea.hbm %s3757_s7, 128  ;;  %s3759_s18 = int_to_ptr.vmem [resolvable:$true] %s243_s18 }
  0x4c   : > { %p3477_p0 = scmp.ne.s32.totalorder %s3757_s7, %s3476_s19  ;;  %p4546_p8 = scmp.ne.s32.totalorder %s4545_s20, 0 }
  0x4d   : > { %s3481_s17 = scalar_lea.hbm %s4512_s0, 384  ;;  %p3482_p11 = scmp.lt.u32.totalorder %s3757_s7, %s4512_s0 }
  0x4e   : > { %p3478_p4 = pneg %p4546_p8  ;;  %p3483_p12 = scmp.lt.u32.totalorder %s3481_s17, %s3476_s19 }
  0x4f   : > { %p3485_p3 = scmp.lt.u32.totalorder %s3476_s19, %s3757_s7 }
  0x50   : > { %p3479_p5 = pnand %p3478_p4, %p3477_p0  ;;  %p3484_p13 = por %p3483_p12, %p3482_p11 }
  0x52   : > { %p3480_p6 = pneg %p3479_p5  ;;  %p3486_p9 = por %p3485_p3, %p3484_p13 }
  0x54   : > { %p3487_p10 = pnand %p3486_p9, %p3480_p6 }
  0x56   : > { %3490 = shalt.err (!%p3487_p10)
}
  0x57   : > { %s3491_s26 = scalar_lea.vmem %s3759_s18, 128  ;;  %s3582_s28 = smov [#allocation4]  }
  0x58   : > { %p3492_p2 = scmp.ne.s32.totalorder %s3759_s18, %s3491_s26  ;;  %s3496_s13 = sshll.u32 %s3582_s28, 4  ;;  %s3497_s13 = int_to_ptr.vmem [resolvable:$false] %s3496_s13 }
  0x59   : > { %s3498_s14 = scalar_lea.vmem %s3497_s13, 256  ;;  %p3499_p0 = scmp.lt.s32.totalorder %s3759_s18, %s3497_s13 }
  0x5a   : > { %p3494_p1 = pnand %p3492_p2, %p3478_p4  ;;  %p3500_p5 = scmp.lt.s32.totalorder %s3498_s14, %s3491_s26 }
  0x5c   : > { %p3495_p7 = pneg %p3494_p1  ;;  %p3501_p11 = por %p3500_p5, %p3499_p0 }
  0x5e   : > { %p3502_p12 = pnand %p3501_p11, %p3495_p7 }
  0x60   : > { %3505 = shalt.err (!%p3502_p12)
}
  0x61   : > { %s3583_s19 = smov 192   ;;  %s3584_s16 = smov 64  }
  0x62   : > { %s3585_s15 = smov 4   ;;  %p4547_p4 = scmp.ne.s32.totalorder %s4541_s11, 0 }
  0x63   : > { %2963 = dma.hbm_to_vmem [thread:$0]  (!%p4546_p8), %s3757_s7, 128, %s3759_s18, %s3761_s30, %s3583_s19, %s3584_s16, %s3585_s15  }
  0x64   : > { %255 = sbr.rel (%p4547_p4) target bundleno = 2717 (0xa9d), region = 44 }
  0x6b   : > { %s3792_s17 = sand.u32 1, %s3568_s22   ;;  %p4548_p6 = scmp.ne.s32.totalorder %s4538_s8, 0 }
  0x6c   : > { %s2801_s29 = sshll.u32 %s3792_s17, 3  ;;  %s258_s12 = scalar_lea.sflag [#allocation5], %s3792_s17 }
  0x6d   : > { %s3796_s26 = scalar_lea.vmem [#allocation4], %s2801_s29 }
  0x6e   : > { %3551 = dma.done.wait (%p4548_p6), %s258_s12, 128  }
  0x6f   : > { %3553 = vsyncadd (%p4548_p6), %s258_s12, 4294967168  ;;  %p4549_p8 = scmp.eq.s32.totalorder %s3649_s25, 0 }
  0x71   : > { %3555 = dma.done.wait (%p4549_p8), [#allocation8], 8192   ;;  %p4550_p13 = pmov %p4549_p8 }
  0x72   : > { %s2804_s11 = sshll.u32 %s3792_s17, 4  ;;  %p4551_p3 = scmp.ne.s32.totalorder %s3649_s25, 0 }
  0x73   : > { %3557 = vsyncadd (%p4550_p13), [#allocation8], 4294959104  ;;  %s3807_s20 = scalar_lea.vmem [#allocation10], %s2804_s11  ;;  %v3586_v0 = vmov (!%p4551_p3), 0.0  }
  0x74   : > { %302 = sbr.rel (%p4551_p3) target bundleno = 123 (0x7b), region = 60  ;;  %303 = vst [vmem:[#allocation2] sm:$0x3] (!%p4551_p3), %v3586_v0  ;;  %304 = vst [vmem:[#allocation3] sm:$0x3] (!%p4551_p3), %v3586_v0 }
  0x7b PF: > { %v3019_v1 = vld [vmem:[#allocation7 + $0x4] ss:$16 sps:$4 sm:$0xff]   ;;  %v3021_v2 = vld [vmem:[#allocation7 + $0xc] ss:$16 sps:$4 sm:$0xff]   ;;  %v4525_v3 = vmov 0   ;;  %vm974_vm0 = vcmask 1041409  }
  0x7c   : > { %559 = vmatprep.mubr.bf16.mxu0 %v4525_v3  ;;  %602 = vmatprep.mubr.bf16.mxu1 %v4525_v3  ;;  %v3023_v4 = vld [vmem:[#allocation7] ss:$16 sps:$4 sm:$0xff]   ;;  %v3024_v5 = vld [vmem:[#allocation7 + $0x8] ss:$16 sps:$4 sm:$0xff]   ;;  %v3025_v6 = vld [vmem:[#allocation7 + $0x24] ss:$16 sps:$4 sm:$0xff]  }
  0x7d   : > { %527 = vmatprep.subr.bf16.mxu0 %v3019_v1  ;;  %570 = vmatprep.subr.bf16.mxu1 %v3021_v2  ;;  %v3027_v7 = vld [vmem:[#allocation7 + $0x2c] ss:$16 sps:$4 sm:$0xff]   ;;  %v3029_v8 = vld [vmem:[#allocation7 + $0x20] ss:$16 sps:$4 sm:$0xff]   ;;  %v3030_v9 = vld [vmem:[#allocation7 + $0x28] ss:$16 sps:$4 sm:$0xff]  }
  0x7e   : > { %528 = vmatpush1.bf16.msra.mxu0 %v3023_v4  ;;  %571 = vmatpush1.bf16.msra.mxu1 %v3024_v5  ;;  %v3031_v10 = vld [vmem:[#allocation7 + $0x44] ss:$16 sps:$4 sm:$0xff]   ;;  %v3033_v11 = vld [vmem:[#allocation7 + $0x4c] ss:$16 sps:$4 sm:$0xff]   ;;  %v3035_v12 = vld [vmem:[#allocation7 + $0x40] ss:$16 sps:$4 sm:$0xff]  }
  0x7f   : > { %529 = vmatprep.subr.bf16.mxu0 %v3025_v6  ;;  %572 = vmatprep.subr.bf16.mxu1 %v3027_v7  ;;  %v3036_v13 = vld [vmem:[#allocation7 + $0x48] ss:$16 sps:$4 sm:$0xff]   ;;  %v3037_v14 = vld [vmem:[#allocation7 + $0x64] ss:$16 sps:$4 sm:$0xff]   ;;  %v3039_v15 = vld [vmem:[#allocation7 + $0x6c] ss:$16 sps:$4 sm:$0xff]  }
  0x80   : > { %v3041_v16 = vld [vmem:[#allocation7 + $0x60] ss:$16 sps:$4 sm:$0xff]   ;;  %v3042_v17 = vld [vmem:[#allocation7 + $0x68] ss:$16 sps:$4 sm:$0xff]   ;;  %v3043_v18 = vld [vmem:[#allocation7 + $0x84] ss:$16 sps:$4 sm:$0xff]  }
  0x81   : > { %v3045_v19 = vld [vmem:[#allocation7 + $0x8c] ss:$16 sps:$4 sm:$0xff]   ;;  %v3047_v20 = vld [vmem:[#allocation7 + $0x80] ss:$16 sps:$4 sm:$0xff]   ;;  %v3048_v21 = vld [vmem:[#allocation7 + $0x88] ss:$16 sps:$4 sm:$0xff]  }
  0x82   : > { %530 = vmatpush1.bf16.msra.mxu0 %v3029_v8  ;;  %573 = vmatpush1.bf16.msra.mxu1 %v3030_v9  ;;  %v3049_v22 = vld [vmem:[#allocation7 + $0xa4] ss:$16 sps:$4 sm:$0xff]   ;;  %v3051_v23 = vld [vmem:[#allocation7 + $0xac] ss:$16 sps:$4 sm:$0xff]   ;;  %v3053_v24 = vld [vmem:[#allocation7 + $0xa0] ss:$16 sps:$4 sm:$0xff]  }
  0x83   : > { %531 = vmatprep.subr.bf16.mxu0 %v3031_v10  ;;  %574 = vmatprep.subr.bf16.mxu1 %v3033_v11  ;;  %v3054_v25 = vld [vmem:[#allocation7 + $0xa8] ss:$16 sps:$4 sm:$0xff]   ;;  %v3055_v26 = vld [vmem:[#allocation7 + $0xc4] ss:$16 sps:$4 sm:$0xff]   ;;  %v3057_v27 = vld [vmem:[#allocation7 + $0xcc] ss:$16 sps:$4 sm:$0xff]  }
  0x84   : > { %v3059_v28 = vld [vmem:[#allocation7 + $0xc0] ss:$16 sps:$4 sm:$0xff]   ;;  %v3060_v29 = vld [vmem:[#allocation7 + $0xc8] ss:$16 sps:$4 sm:$0xff]   ;;  %v3061_v30 = vld [vmem:[#allocation7 + $0xe4] ss:$16 sps:$4 sm:$0xff]  }
  0x85   : > { %v3063_v31 = vld [vmem:[#allocation7 + $0xec] ss:$16 sps:$4 sm:$0xff]   ;;  %v3065_v32 = vld [vmem:[#allocation7 + $0xe0] ss:$16 sps:$4 sm:$0xff]   ;;  %v3066_v33 = vld [vmem:[#allocation7 + $0xe8] ss:$16 sps:$4 sm:$0xff]  }
  0x86   : > { %532 = vmatpush1.bf16.msra.mxu0 %v3035_v12  ;;  %575 = vmatpush1.bf16.msra.mxu1 %v3036_v13  ;;  %v3813_v34 = vld [vmem:[#allocation9 + $0x4] ss:$16 sps:$4 sm:$0xff]   ;;  %v3815_v35 = vld [vmem:[#allocation9 + $0xc] ss:$16 sps:$4 sm:$0xff]   ;;  %v3818_v37 = vld [vmem:[#allocation9] ss:$16 sps:$4 sm:$0xff]  }
  0x87   : > { %533 = vmatprep.subr.bf16.mxu0 %v3037_v14  ;;  %576 = vmatprep.subr.bf16.mxu1 %v3039_v15  ;;  %v3067_v36 = vld [vmem:[%s3796_s26] sm:$0xff]   ;;  %v650_v4 = vld [vmem:[#allocation2] sm:$0x3]  ;;  %v4524_v14 = vlaneseq  ;;  %vm984_vm1 = vcmask 1041408   ;;  %vm1214_vm2 = vcmask 1042434   ;;  %vm1447_vm3 = vcmask 1043459  }
  0x88   : > { %v3820_v38 = vld [vmem:[#allocation9 + $0x8] ss:$16 sps:$4 sm:$0xff]   ;;  %v3822_v39 = vld [vmem:[#allocation9 + $0x24] ss:$16 sps:$4 sm:$0xff]   ;;  %v3826_v40 = vld [vmem:[#allocation9 + $0x2c] ss:$16 sps:$4 sm:$0xff]   ;;  %v651_v5 = vpack.c.bf16 %v650_v4, %v650_v4 }
  0x89   : > { %v3828_v41 = vld [vmem:[#allocation9 + $0x20] ss:$16 sps:$4 sm:$0xff]   ;;  %v3832_v42 = vld [vmem:[#allocation9 + $0x28] ss:$16 sps:$4 sm:$0xff]   ;;  %v3836_v43 = vld [vmem:[#allocation9 + $0x44] ss:$16 sps:$4 sm:$0xff]  }
  0x8a   : > { %534 = vmatpush1.bf16.msra.mxu0 %v3041_v16  ;;  %577 = vmatpush1.bf16.msra.mxu1 %v3042_v17  ;;  %v3838_v44 = vld [vmem:[#allocation9 + $0x4c] ss:$16 sps:$4 sm:$0xff]   ;;  %v3844_v45 = vld [vmem:[#allocation9 + $0x40] ss:$16 sps:$4 sm:$0xff]   ;;  %v3846_v46 = vld [vmem:[#allocation9 + $0x48] ss:$16 sps:$4 sm:$0xff]  }
  0x8b   : > { %535 = vmatprep.subr.bf16.mxu0 %v3043_v18  ;;  %578 = vmatprep.subr.bf16.mxu1 %v3045_v19  ;;  %v3848_v47 = vld [vmem:[#allocation9 + $0x64] ss:$16 sps:$4 sm:$0xff]   ;;  %v3852_v48 = vld [vmem:[#allocation9 + $0x6c] ss:$16 sps:$4 sm:$0xff]   ;;  %v3856_v49 = vld [vmem:[#allocation9 + $0x60] ss:$16 sps:$4 sm:$0xff]  }
  0x8c   : > { %v3858_v50 = vld [vmem:[#allocation9 + $0x68] ss:$16 sps:$4 sm:$0xff]   ;;  %v3862_v51 = vld [vmem:[#allocation9 + $0x84] ss:$16 sps:$4 sm:$0xff]   ;;  %v3864_v52 = vld [vmem:[#allocation9 + $0x8c] ss:$16 sps:$4 sm:$0xff]  }
  0x8d   : > { %v3868_v53 = vld [vmem:[#allocation9 + $0x80] ss:$16 sps:$4 sm:$0xff]   ;;  %v3870_v54 = vld [vmem:[#allocation9 + $0x88] ss:$16 sps:$4 sm:$0xff]   ;;  %v3874_v55 = vld [vmem:[#allocation9 + $0xa4] ss:$16 sps:$4 sm:$0xff]  }
  0x8e   : > { %536 = vmatpush1.bf16.msra.mxu0 %v3047_v20  ;;  %579 = vmatpush1.bf16.msra.mxu1 %v3048_v21  ;;  %v3876_v56 = vld [vmem:[#allocation9 + $0xac] ss:$16 sps:$4 sm:$0xff]   ;;  %v3880_v57 = vld [vmem:[#allocation9 + $0xa0] ss:$16 sps:$4 sm:$0xff]   ;;  %v3882_v58 = vld [vmem:[#allocation9 + $0xa8] ss:$16 sps:$4 sm:$0xff]  }
  0x8f   : > { %537 = vmatprep.subr.bf16.mxu0 %v3049_v22  ;;  %580 = vmatprep.subr.bf16.mxu1 %v3051_v23  ;;  %v3886_v59 = vld [vmem:[#allocation9 + $0xc4] ss:$16 sps:$4 sm:$0xff]   ;;  %v3888_v60 = vld [vmem:[#allocation9 + $0xcc] ss:$16 sps:$4 sm:$0xff]   ;;  %v3892_v61 = vld [vmem:[#allocation9 + $0xc0] ss:$16 sps:$4 sm:$0xff]  }
  0x90   : > { %v3894_v62 = vld [vmem:[#allocation9 + $0xc8] ss:$16 sps:$4 sm:$0xff]   ;;  %v3898_v63 = vld [vmem:[#allocation9 + $0xe4] ss:$16 sps:$4 sm:$0xff]   ;;  %v3900_v0 = vld [vmem:[#allocation9 + $0xec] ss:$16 sps:$4 sm:$0xff]  }
  0x91   : > { %v3904_v1 = vld [vmem:[#allocation9 + $0xe0] ss:$16 sps:$4 sm:$0xff]   ;;  %v3906_v2 = vld [vmem:[#allocation9 + $0xe8] ss:$16 sps:$4 sm:$0xff]   ;;  %v3949_v15 = vshrl.u32 %v4524_v14, 7  ;;  %vm1457_vm4 = vcmask 1043458  }
  0x92   : > { %538 = vmatpush1.bf16.msra.mxu0 %v3053_v24  ;;  %581 = vmatpush1.bf16.msra.mxu1 %v3054_v25  ;;  %v339_v17 = vld [vmem:[%s4515_s3] sm:$0xf]  ;;  %vm1681_vm5 = vcmask 1044484   ;;  %vm1691_vm6 = vcmask 1044483   ;;  %vm1915_vm7 = vcmask 1045509   ;;  %vm1925_vm8 = vcmask 1045508  }
  0x93   : > { %539 = vmatprep.subr.bf16.mxu0 %v3055_v26  ;;  %582 = vmatprep.subr.bf16.mxu1 %v3057_v27  ;;  %4552 = vst [vmem:[#allocation15_spill] sm:$0xff] %v3949_v15  ;;  %v343_v16 = vsub.s32 0, %v3949_v15  ;;  %v347_v18 = vsub.s32 1, %v3949_v15  ;;  %v355_v21 = vsub.s32 3, %v3949_v15  ;;  %v351_v27 = vsub.s32 2, %v3949_v15  ;;  %s2938_s14 = sshll.u32 %s3649_s25, 7 }
  0x94   : > { %vm2149_vm9 = vcmask 1046534   ;;  %vm2159_vm10 = vcmask 1046533   ;;  %vm2383_vm11 = vcmask 1047559   ;;  %vm2393_vm12 = vcmask 1047558   ;;  %s2701_s19 = sshll.u32 %s3807_s20, 4  ;;  %s4465_s29 = scalar_lea.hbm %s4518_s6, %s2938_s14  ;;  %s4467_s19 = int_to_ptr.vmem [resolvable:$true] %s2701_s19 }
  0x95   : > { %v344_v19 = vrot.slane %v339_v17, %v343_v16  ;;  %v348_v20 = vrot.slane %v339_v17, %v347_v18  ;;  %vm1224_vm14 = vcmask 1042433   ;;  %vm2631_vm15 = vcmask 1040384   ;;  %s2689_s12 = scalar_lea.sflag [#allocation6], %s3792_s17  ;;  %s3506_s25 = scalar_lea.vmem %s4467_s19, 256 }
  0x96   : > { %540 = vmatpush1.bf16.msra.mxu0 %v3059_v28  ;;  %583 = vmatpush1.bf16.msra.mxu1 %v3060_v29  ;;  %p3507_p9 = scmp.ne.s32.totalorder %s4467_s19, %s3506_s25  ;;  %p4572_p10 = scmp.ne.s32.totalorder %s4539_s9, 0 }
  0x97   : > { %541 = vmatprep.subr.bf16.mxu0 %v3061_v30  ;;  %584 = vmatprep.subr.bf16.mxu1 %v3063_v31  ;;  %s3589_s26 = smov [#allocation10]  }
  0x98   : > { %p3508_p2 = pnand %p3507_p9, %p4572_p10  ;;  %s3510_s11 = sshll.u32 %s3589_s26, 4  ;;  %s3511_s11 = int_to_ptr.vmem [resolvable:$false] %s3510_s11 }
  0x99   : > { %s3512_s8 = scalar_lea.vmem %s3511_s11, 512  ;;  %p3513_p7 = scmp.lt.s32.totalorder %s4467_s19, %s3511_s11 }
  0x9a   : > { %542 = vmatpush1.bf16.msra.mxu0 %v3065_v32  ;;  %585 = vmatpush1.bf16.msra.mxu1 %v3066_v33  ;;  %v356_v33 = vrot.slane %v339_v17, %v355_v21  ;;  %p3509_p1 = pneg %p3508_p2  ;;  %p3514_p0 = scmp.lt.s32.totalorder %s3512_s8, %s3506_s25 }
  0x9b   : > { %812 = vmatprep.subr.bf16.mxu0 %v3813_v34  ;;  %853 = vmatprep.subr.bf16.mxu1 %v3815_v35 }
  0x9c   : > { %p3515_p5 = por %p3514_p0, %p3513_p7 }
  0x9d   : > { %560 = vmatmul.mubr.bf16.vlgmr.msra.gmra.mrb[0].mxu0 %v3067_v36  ;;  %603 = vmatmul.mubr.bf16.vlgmr.msra.gmra.mrb[0].mxu1 %v3067_v36 }
  0x9e   : > { %813 = vmatpush1.bf16.msra.mxu0 %v3818_v37  ;;  %854 = vmatpush1.bf16.msra.mxu1 %v3820_v38  ;;  %p3516_p11 = pnand %p3515_p5, %p3509_p1 }
  0x9f   : > { %814 = vmatprep.subr.bf16.mxu0 %v3822_v39  ;;  %855 = vmatprep.subr.bf16.mxu1 %v3826_v40 }
  0xa0   : > { %844 = vmatprep.mubr.bf16.mxu0 %v4525_v3  ;;  %885 = vmatprep.mubr.bf16.mxu1 %v4525_v3 }
  0xa2   : > { %815 = vmatpush1.bf16.msra.mxu0 %v3828_v41  ;;  %856 = vmatpush1.bf16.msra.mxu1 %v3832_v42 }
  0xa3   : > { %816 = vmatprep.subr.bf16.mxu0 %v3836_v43  ;;  %857 = vmatprep.subr.bf16.mxu1 %v3838_v44 }
  0xa6   : > { %817 = vmatpush1.bf16.msra.mxu0 %v3844_v45  ;;  %858 = vmatpush1.bf16.msra.mxu1 %v3846_v46 }
  0xa7   : > { %818 = vmatprep.subr.bf16.mxu0 %v3848_v47  ;;  %859 = vmatprep.subr.bf16.mxu1 %v3852_v48 }
  0xaa   : > { %819 = vmatpush1.bf16.msra.mxu0 %v3856_v49  ;;  %860 = vmatpush1.bf16.msra.mxu1 %v3858_v50 }
  0xab   : > { %820 = vmatprep.subr.bf16.mxu0 %v3862_v51  ;;  %861 = vmatprep.subr.bf16.mxu1 %v3864_v52 }
  0xae   : > { %821 = vmatpush1.bf16.msra.mxu0 %v3868_v53  ;;  %862 = vmatpush1.bf16.msra.mxu1 %v3870_v54 }
  0xaf   : > { %822 = vmatprep.subr.bf16.mxu0 %v3874_v55  ;;  %863 = vmatprep.subr.bf16.mxu1 %v3876_v56 }
  0xb2   : > { %823 = vmatpush1.bf16.msra.mxu0 %v3880_v57  ;;  %864 = vmatpush1.bf16.msra.mxu1 %v3882_v58 }
  0xb3   : > { %824 = vmatprep.subr.bf16.mxu0 %v3886_v59  ;;  %865 = vmatprep.subr.bf16.mxu1 %v3888_v60 }
  0xb6   : > { %825 = vmatpush1.bf16.msra.mxu0 %v3892_v61  ;;  %866 = vmatpush1.bf16.msra.mxu1 %v3894_v62 }
  0xb7   : > { %826 = vmatprep.subr.bf16.mxu0 %v3898_v63  ;;  %867 = vmatprep.subr.bf16.mxu1 %v3900_v0 }
  0xba   : > { %827 = vmatpush1.bf16.msra.mxu0 %v3904_v1  ;;  %868 = vmatpush1.bf16.msra.mxu1 %v3906_v2 }
  0xbb   : > { %1052 = vmatprep.subr.bf16.mxu0 %v3813_v34  ;;  %1093 = vmatprep.subr.bf16.mxu1 %v3815_v35 }
  0xbd   : > { %845 = vmatmul.mubr.bf16.vlgmr.msra.gmra.mrb[4].mxu0 %v651_v5  ;;  %886 = vmatmul.mubr.bf16.vlgmr.msra.gmra.mrb[4].mxu1 %v651_v5 }
  0xbe   : > { %1053 = vmatpush1.bf16.msra.mxu0 %v3818_v37  ;;  %1094 = vmatpush1.bf16.msra.mxu1 %v3820_v38 }
  0xbf   : > { %1054 = vmatprep.subr.bf16.mxu0 %v3822_v39  ;;  %1095 = vmatprep.subr.bf16.mxu1 %v3826_v40 }
  0xc0   : > { %1084 = vmatprep.mubr.bf16.mxu0 %v4525_v3  ;;  %1125 = vmatprep.mubr.bf16.mxu1 %v4525_v3  ;;  %v352_v3 = vrot.slane %v339_v17, %v351_v27 }
  0xc2   : > { %1055 = vmatpush1.bf16.msra.mxu0 %v3828_v41  ;;  %1096 = vmatpush1.bf16.msra.mxu1 %v3832_v42 }
  0xc3   : > { %1056 = vmatprep.subr.bf16.mxu0 %v3836_v43  ;;  %1097 = vmatprep.subr.bf16.mxu1 %v3838_v44 }
  0xc6   : > { %1057 = vmatpush1.bf16.msra.mxu0 %v3844_v45  ;;  %1098 = vmatpush1.bf16.msra.mxu1 %v3846_v46 }
  0xc7   : > { %1058 = vmatprep.subr.bf16.mxu0 %v3848_v47  ;;  %1099 = vmatprep.subr.bf16.mxu1 %v3852_v48 }
  0xca   : > { %1059 = vmatpush1.bf16.msra.mxu0 %v3856_v49  ;;  %1100 = vmatpush1.bf16.msra.mxu1 %v3858_v50 }
  0xcb   : > { %1060 = vmatprep.subr.bf16.mxu0 %v3862_v51  ;;  %1101 = vmatprep.subr.bf16.mxu1 %v3864_v52 }
  0xce   : > { %1061 = vmatpush1.bf16.msra.mxu0 %v3868_v53  ;;  %1102 = vmatpush1.bf16.msra.mxu1 %v3870_v54 }
  0xcf   : > { %1062 = vmatprep.subr.bf16.mxu0 %v3874_v55  ;;  %1103 = vmatprep.subr.bf16.mxu1 %v3876_v56 }
  0xd2   : > { %1063 = vmatpush1.bf16.msra.mxu0 %v3880_v57  ;;  %1104 = vmatpush1.bf16.msra.mxu1 %v3882_v58 }
  0xd3   : > { %1064 = vmatprep.subr.bf16.mxu0 %v3886_v59  ;;  %1105 = vmatprep.subr.bf16.mxu1 %v3888_v60 }
  0xd6   : > { %1065 = vmatpush1.bf16.msra.mxu0 %v3892_v61  ;;  %1106 = vmatpush1.bf16.msra.mxu1 %v3894_v62 }
  0xd7   : > { %1066 = vmatprep.subr.bf16.mxu0 %v3898_v63  ;;  %1107 = vmatprep.subr.bf16.mxu1 %v3900_v0 }
  0xda   : > { %1067 = vmatpush1.bf16.msra.mxu0 %v3904_v1  ;;  %1108 = vmatpush1.bf16.msra.mxu1 %v3906_v2 }
  0xdb   : > { %1280 = vmatprep.subr.bf16.mxu0 %v3813_v34  ;;  %1321 = vmatprep.subr.bf16.mxu1 %v3815_v35 }
 0x170   : > { %v561_v6 = vpop.f32.mrb[0].mxu0  ;;  %v604_v7 = vpop.f32.mrb[0].mxu1 }
 0x171   : > { %v563_v8 = vpop.f32.mrb[1].mxu0  ;;  %v606_v9 = vpop.f32.mrb[1].mxu1  ;;  %v3957_v22 = vadd.f32 %v561_v6, %v344_v19 }
 0x172   : > { %v565_v10 = vpop.f32.mrb[2].mxu0  ;;  %v608_v11 = vpop.f32.mrb[2].mxu1  ;;  %v3959_v23 = vadd.f32 %v563_v8, %v348_v20 }
 0x173   : > { %v567_v12 = vpop.f32.mrb[3].mxu0  ;;  %v610_v13 = vpop.f32.mrb[3].mxu1  ;;  %v3961_v26 = vadd.f32 %v565_v10, %v344_v19 }
 0x174   : > { %v3965_v32 = vadd.f32 %v567_v12, %v348_v20  ;;  %v3970_v12 = vadd.f32 %v606_v9, %v356_v33  ;;  %v3972_v21 = vadd.f32 %v610_v13, %v356_v33 }
 0x190   : > { %v846_v24 = vpop.f32.mrb[4].mxu0  ;;  %v887_v25 = vpop.f32.mrb[4].mxu1 }
 0x191   : > { %v898_v28 = vrot.slane %v846_v24, 1  ;;  %v910_v29 = vadd.f32 %v846_v24, %v3957_v22  ;;  %v848_v30 = vpop.f32.mrb[5].mxu0  ;;  %v889_v31 = vpop.f32.mrb[5].mxu1 }
 0x192   : > { %v899_v36 = vrot.slane %v848_v30, 1  ;;  %v911_v4 = vadd.f32 %v848_v30, %v3959_v23  ;;  %v850_v5 = vpop.f32.mrb[6].mxu0  ;;  %v891_v6 = vpop.f32.mrb[6].mxu1  ;;  %v901_v15 = vrot.slane %v889_v31, 1  ;;  %v913_v30 = vadd.f32 %v889_v31, %v3970_v12 }
 0x193   : > { %v914_v8 = vadd.f32 %v898_v28, %v3961_v26  ;;  %v2871_v16 = vmul.f32 -1.442695, %v910_v29  ;;  %v851_v10 = vpop.f32.mrb[7].mxu0  ;;  %v892_v18 = vpop.f32.mrb[7].mxu1  ;;  %v3975_v28 = vadd.f32 %v604_v7, %v352_v3 }
 0x194   : > { %v915_v19 = vadd.f32 %v899_v36, %v3965_v32  ;;  %v2873_v14 = vmul.f32 -1.442695, %v911_v4  ;;  %v917_v29 = vadd.f32 %v901_v15, %v3972_v21  ;;  %v900_v36 = vrot.slane %v887_v25, 1 }
 0x195   : > { %3116 = vpow2.f32 %v2871_v16  ;;  %v2872_v24 = vmul.f32 -1.442695, %v914_v8  ;;  %v912_v17 = vadd.f32 %v887_v25, %v3975_v28  ;;  %v2875_v27 = vmul.f32 -1.442695, %v913_v30  ;;  %v956_v8 = vld [vmem:[#allocation3] sm:$0x3] }
 0x196   : > { %v2874_v20 = vmul.f32 -1.442695, %v915_v19  ;;  %v3979_v4 = vadd.f32 %v608_v11, %v352_v3  ;;  %v2876_v9 = vmul.f32 -1.442695, %v917_v29 }
 0x197   : > { %3118 = vpow2.f32 %v2872_v24  ;;  %v958_v24 = vrot.slane %v956_v8, 1 }
 0x198   : > { %3120 = vpow2.f32 %v2873_v14  ;;  %v916_v13 = vadd.f32 %v900_v36, %v3979_v4 }
 0x199   : > { %3122 = vpow2.f32 %v2874_v20 }
 0x19a   : > { %3124 = vtanh.f32 %v912_v17 }
 0x19b   : > { %3126 = vpow2.f32 %v2875_v27 }
 0x19c   : > { %3128 = vpow2.f32 %v2876_v9 }
 0x19f   : > { %v3117_v5 = vpop.eup %3116 }
 0x1a0   : > { %v924_v33 = vadd.f32 1.0, %v3117_v5 }
 0x1a1   : > { %v3119_v14 = vpop.eup %3118 }
 0x1a2   : > { %v3121_v7 = vpop.eup %3120  ;;  %v925_v31 = vadd.f32 1.0, %v3119_v14  ;;  %3130 = vrcp.f32 %v924_v33 }
 0x1a3   : > { %v3123_v6 = vpop.eup %3122  ;;  %3132 = vtanh.f32 %v916_v13  ;;  %v936_v15 = vadd.f32 1.0, %v3121_v7 }
 0x1a4   : > { %3134 = vrcp.f32 %v925_v31  ;;  %v937_v25 = vadd.f32 1.0, %v3123_v6  ;;  %v3125_v3 = vpop.eup %3124 }
 0x1a5   : > { %3136 = vrcp.f32 %v936_v15  ;;  %v3127_v11 = vpop.eup %3126 }
 0x1a6   : > { %3138 = vrcp.f32 %v937_v25  ;;  %v3129_v16 = vpop.eup %3128  ;;  %v950_v30 = vadd.f32 1.0, %v3127_v11 }
 0x1a7   : > { %v951_v17 = vadd.f32 1.0, %v3129_v16 }
 0x1a8   : > { %3140 = vrcp.f32 %v950_v30 }
 0x1a9   : > { %3142 = vrcp.f32 %v951_v17 }
 0x1ac   : > { %v3131_v10 = vpop.eup %3130 }
 0x1ad   : > { %v3133_v18 = vpop.eup %3132  ;;  %v963_v19 = vmul.f32 %v3131_v10, %v3125_v3 }
 0x1ae   : > { %v3135_v20 = vpop.eup %3134 }
 0x1af   : > { %v3137_v29 = vpop.eup %3136  ;;  %v964_v36 = vmul.f32 %v3135_v20, %v3133_v18 }
 0x1b0   : > { %v3139_v27 = vpop.eup %3138  ;;  %v961_v9 = vmul.f32 %v3137_v29, %v956_v8 }
 0x1b1   : > { %v962_v5 = vmul.f32 %v3139_v27, %v958_v24  ;;  %v4554_v24 = vmov 0  }
 0x1b2   : > { %v965_v13 = vadd.f32 %v963_v19, %v961_v9  ;;  %v3141_v31 = vpop.eup %3140 }
 0x1b3   : > { %v966_v33 = vadd.f32 %v964_v36, %v962_v5  ;;  %v3143_v6 = vpop.eup %3142 }
 0x1b4   : > { %3144 = vtanh.f32 %v965_v13 }
 0x1b5   : > { %3146 = vtanh.f32 %v966_v33  ;;  %v973_v14 = vrot.slane %v966_v33, 7 }
 0x1b7   : > { %v975_v7 = vsel %vm974_vm0, %v973_v14, %v965_v13 }
 0x1b8   : > { %977 = vst [vmem:[#allocation3] sm:$0x3] %v975_v7 }
 0x1be   : > { %v3145_v15 = vpop.eup %3144 }
 0x1bf   : > { %v3147_v25 = vpop.eup %3146  ;;  %v3983_v3 = vmul.f32 %v3145_v15, %v3141_v31 }
 0x1c0   : > { %v3985_v11 = vmul.f32 %v3147_v25, %v3143_v6 }
 0x1c1   : > { %4553 = vst [vmem:[#allocation16_spill] sm:$0xff] %v3983_v3 }
 0x1c2   : > { %v980_v8 = vrot.slane %v3985_v11, 7 }
 0x1c4   : > { %v981_v16 = vsel %vm974_vm0, %v980_v8, %v3983_v3 }
 0x1c5   : > { %v985_v10 = vsel %vm984_vm1, %v981_v16, 0.0  ;;  %983 = vst [vmem:[#allocation2] sm:$0x3] %v981_v16 }
 0x1c6   : > { %986 = vadd.xlane.f32.xlu0 %v985_v10 }
 0x1cc   : > { %v1050_v18 = vld [vmem:[#allocation2] sm:$0x3] }
 0x1cd   : > { %v1051_v19 = vpack.c.bf16 %v1050_v18, %v1050_v18 }
 0x1cf   : > { %1085 = vmatmul.mubr.bf16.vlgmr.msra.gmra.mrb[8].mxu0 %v1051_v19  ;;  %1126 = vmatmul.mubr.bf16.vlgmr.msra.gmra.mrb[8].mxu1 %v1051_v19 }
 0x1d0   : > { %1281 = vmatpush1.bf16.msra.mxu0 %v3818_v37  ;;  %1322 = vmatpush1.bf16.msra.mxu1 %v3820_v38 }
 0x1d1   : > { %1282 = vmatprep.subr.bf16.mxu0 %v3822_v39  ;;  %1323 = vmatprep.subr.bf16.mxu1 %v3826_v40 }
 0x1d2   : > { %1312 = vmatprep.mubr.bf16.mxu0 %v4554_v24  ;;  %1353 = vmatprep.mubr.bf16.mxu1 %v4554_v24 }
 0x1d4   : > { %1283 = vmatpush1.bf16.msra.mxu0 %v3828_v41  ;;  %1324 = vmatpush1.bf16.msra.mxu1 %v3832_v42 }
 0x1d5   : > { %1284 = vmatprep.subr.bf16.mxu0 %v3836_v43  ;;  %1325 = vmatprep.subr.bf16.mxu1 %v3838_v44 }
 0x1d8   : > { %1285 = vmatpush1.bf16.msra.mxu0 %v3844_v45  ;;  %1326 = vmatpush1.bf16.msra.mxu1 %v3846_v46 }
 0x1d9   : > { %1286 = vmatprep.subr.bf16.mxu0 %v3848_v47  ;;  %1327 = vmatprep.subr.bf16.mxu1 %v3852_v48 }
 0x1dc   : > { %1287 = vmatpush1.bf16.msra.mxu0 %v3856_v49  ;;  %1328 = vmatpush1.bf16.msra.mxu1 %v3858_v50 }
 0x1dd   : > { %1288 = vmatprep.subr.bf16.mxu0 %v3862_v51  ;;  %1329 = vmatprep.subr.bf16.mxu1 %v3864_v52 }
 0x1e0   : > { %1289 = vmatpush1.bf16.msra.mxu0 %v3868_v53  ;;  %1330 = vmatpush1.bf16.msra.mxu1 %v3870_v54 }
 0x1e1   : > { %1290 = vmatprep.subr.bf16.mxu0 %v3874_v55  ;;  %1331 = vmatprep.subr.bf16.mxu1 %v3876_v56 }
 0x1e4   : > { %1291 = vmatpush1.bf16.msra.mxu0 %v3880_v57  ;;  %1332 = vmatpush1.bf16.msra.mxu1 %v3882_v58 }
 0x1e5   : > { %1292 = vmatprep.subr.bf16.mxu0 %v3886_v59  ;;  %1333 = vmatprep.subr.bf16.mxu1 %v3888_v60 }
 0x1e8   : > { %1293 = vmatpush1.bf16.msra.mxu0 %v3892_v61  ;;  %1334 = vmatpush1.bf16.msra.mxu1 %v3894_v62 }
 0x1e9   : > { %1294 = vmatprep.subr.bf16.mxu0 %v3898_v63  ;;  %1335 = vmatprep.subr.bf16.mxu1 %v3900_v0 }
 0x1ec   : > { %1295 = vmatpush1.bf16.msra.mxu0 %v3904_v1  ;;  %1336 = vmatpush1.bf16.msra.mxu1 %v3906_v2 }
 0x1ed   : > { %1514 = vmatprep.subr.bf16.mxu0 %v3813_v34  ;;  %1555 = vmatprep.subr.bf16.mxu1 %v3815_v35 }
 0x2a2   : > { %v1086_v20 = vpop.f32.mrb[8].mxu0  ;;  %v1127_v30 = vpop.f32.mrb[8].mxu1 }
 0x2a3   : > { %v1138_v29 = vrot.slane %v1086_v20, 7  ;;  %v1154_v36 = vadd.f32 %v1086_v20, %v3961_v26  ;;  %v1088_v17 = vpop.f32.mrb[9].mxu0  ;;  %v1129_v27 = vpop.f32.mrb[9].mxu1  ;;  %v1140_v20 = vrot.slane %v1127_v30, 7 }
 0x2a4   : > { %v1139_v9 = vrot.slane %v1088_v17, 7  ;;  %v1155_v5 = vadd.f32 %v1088_v17, %v3965_v32  ;;  %v1090_v13 = vpop.f32.mrb[10].mxu0  ;;  %v1131_v33 = vpop.f32.mrb[10].mxu1  ;;  %v1141_v25 = vrot.slane %v1129_v27, 7  ;;  %v1157_v19 = vadd.f32 %v1129_v27, %v3972_v21 }
 0x2a5   : > { %v1150_v14 = vadd.f32 %v1138_v29, %v3957_v22  ;;  %v2882_v7 = vmul.f32 -1.442695, %v1154_v36  ;;  %v1091_v31 = vpop.f32.mrb[11].mxu0  ;;  %v1132_v6 = vpop.f32.mrb[11].mxu1  ;;  %v1156_v29 = vadd.f32 %v1127_v30, %v3979_v4 }
 0x2a6   : > { %v1151_v15 = vadd.f32 %v1139_v9, %v3959_v23  ;;  %v2884_v16 = vmul.f32 -1.442695, %v1155_v5  ;;  %v1153_v18 = vadd.f32 %v1141_v25, %v3970_v12  ;;  %v2886_v17 = vmul.f32 -1.442695, %v1157_v19 }
 0x2a7   : > { %v2881_v8 = vmul.f32 -1.442695, %v1150_v14  ;;  %3148 = vpow2.f32 %v2882_v7  ;;  %v1152_v9 = vadd.f32 %v1140_v20, %v3975_v28 }
 0x2a8   : > { %v2883_v10 = vmul.f32 -1.442695, %v1151_v15  ;;  %v2885_v36 = vmul.f32 -1.442695, %v1153_v18 }
 0x2a9   : > { %3150 = vpow2.f32 %v2881_v8  ;;  %v1196_v8 = vld [vmem:[#allocation3] sm:$0x3] }
 0x2aa   : > { %3152 = vpow2.f32 %v2883_v10  ;;  %v1198_v20 = vrot.slane %v1196_v8, 7 }
 0x2ab   : > { %3154 = vpow2.f32 %v2884_v16 }
 0x2ac   : > { %3156 = vtanh.f32 %v1156_v29 }
 0x2ad   : > { %3158 = vpow2.f32 %v2885_v36 }
 0x2ae   : > { %3160 = vpow2.f32 %v2886_v17 }
 0x2b1   : > { %v3149_v13 = vpop.eup %3148 }
 0x2b2   : > { %v1165_v33 = vadd.f32 1.0, %v3149_v13 }
 0x2b3   : > { %v3151_v5 = vpop.eup %3150 }
 0x2b4   : > { %v3153_v14 = vpop.eup %3152  ;;  %v1164_v7 = vadd.f32 1.0, %v3151_v5  ;;  %3162 = vrcp.f32 %v1165_v33 }
 0x2b5   : > { %v3155_v31 = vpop.eup %3154  ;;  %3164 = vtanh.f32 %v1152_v9  ;;  %v1176_v6 = vadd.f32 1.0, %v3153_v14 }
 0x2b6   : > { %3166 = vrcp.f32 %v1164_v7  ;;  %v1177_v27 = vadd.f32 1.0, %v3155_v31  ;;  %v3157_v30 = vpop.eup %3156 }
 0x2b7   : > { %3168 = vrcp.f32 %v1176_v6  ;;  %v3159_v15 = vpop.eup %3158 }
 0x2b8   : > { %3170 = vrcp.f32 %v1177_v27  ;;  %v3161_v25 = vpop.eup %3160  ;;  %v1190_v29 = vadd.f32 1.0, %v3159_v15 }
 0x2b9   : > { %v1191_v13 = vadd.f32 1.0, %v3161_v25 }
 0x2ba   : > { %3172 = vrcp.f32 %v1190_v29 }
 0x2bb   : > { %3174 = vrcp.f32 %v1191_v13 }
 0x2be   : > { %v3163_v16 = vpop.eup %3162 }
 0x2bf   : > { %v3165_v10 = vpop.eup %3164  ;;  %v1204_v18 = vmul.f32 %v3163_v16, %v3157_v30 }
 0x2c0   : > { %v3167_v19 = vpop.eup %3166 }
 0x2c1   : > { %v3169_v36 = vpop.eup %3168  ;;  %v1203_v17 = vmul.f32 %v3167_v19, %v3165_v10 }
 0x2c2   : > { %v3171_v33 = vpop.eup %3170  ;;  %v1201_v9 = vmul.f32 %v3169_v36, %v1198_v20 }
 0x2c3   : > { %v1202_v5 = vmul.f32 %v3171_v33, %v1196_v8 }
 0x2c4   : > { %v1205_v14 = vadd.f32 %v1203_v17, %v1201_v9  ;;  %v3173_v27 = vpop.eup %3172 }
 0x2c5   : > { %v1206_v7 = vadd.f32 %v1204_v18, %v1202_v5  ;;  %v3175_v30 = vpop.eup %3174 }
 0x2c6   : > { %3176 = vtanh.f32 %v1205_v14 }
 0x2c7   : > { %3178 = vtanh.f32 %v1206_v7  ;;  %v1213_v31 = vrot.slane %v1206_v7, 7 }
 0x2c9   : > { %v1215_v6 = vsel %vm1214_vm2, %v1213_v31, %v1205_v14 }
 0x2ca   : > { %1217 = vst [vmem:[#allocation3 - $0x1] sm:$0x6] %v1215_v6 }
 0x2d0   : > { %v3177_v16 = vpop.eup %3176 }
 0x2d1   : > { %v3179_v15 = vpop.eup %3178  ;;  %v4033_v3 = vmul.f32 %v3177_v16, %v3173_v27 }
 0x2d2   : > { %v4035_v25 = vmul.f32 %v3179_v15, %v3175_v30 }
 0x2d3   : > { %4555 = vst [vmem:[#allocation17_spill] sm:$0xff] %v4033_v3 }
 0x2d4   : > { %4556 = vst [vmem:[#allocation18_spill] sm:$0xff] %v4035_v25  ;;  %v1220_v8 = vrot.slane %v4035_v25, 7 }
 0x2d6   : > { %v4039_v10 = vsel %vm1214_vm2, %v1220_v8, %v4033_v3 }
 0x2d7   : > { %4557 = vst [vmem:[#allocation19_spill] sm:$0xff] %v4039_v10  ;;  %1223 = vst [vmem:[#allocation2 - $0x1] sm:$0x6] %v4039_v10 }
 0x2de   : > { %v1278_v18 = vld [vmem:[#allocation2] sm:$0x3] }
 0x2df   : > { %v1279_v19 = vpack.c.bf16 %v1278_v18, %v1278_v18 }
 0x2e1   : > { %1313 = vmatmul.mubr.bf16.vlgmr.msra.gmra.mrb[12].mxu0 %v1279_v19  ;;  %1354 = vmatmul.mubr.bf16.vlgmr.msra.gmra.mrb[12].mxu1 %v1279_v19 }
 0x2e2   : > { %1515 = vmatpush1.bf16.msra.mxu0 %v3818_v37  ;;  %1556 = vmatpush1.bf16.msra.mxu1 %v3820_v38 }
 0x2e3   : > { %1516 = vmatprep.subr.bf16.mxu0 %v3822_v39  ;;  %1557 = vmatprep.subr.bf16.mxu1 %v3826_v40 }
 0x2e4   : > { %1546 = vmatprep.mubr.bf16.mxu0 %v4554_v24  ;;  %1587 = vmatprep.mubr.bf16.mxu1 %v4554_v24 }
 0x2e6   : > { %1517 = vmatpush1.bf16.msra.mxu0 %v3828_v41  ;;  %1558 = vmatpush1.bf16.msra.mxu1 %v3832_v42 }
 0x2e7   : > { %1518 = vmatprep.subr.bf16.mxu0 %v3836_v43  ;;  %1559 = vmatprep.subr.bf16.mxu1 %v3838_v44 }
 0x2ea   : > { %1519 = vmatpush1.bf16.msra.mxu0 %v3844_v45  ;;  %1560 = vmatpush1.bf16.msra.mxu1 %v3846_v46 }
 0x2eb   : > { %1520 = vmatprep.subr.bf16.mxu0 %v3848_v47  ;;  %1561 = vmatprep.subr.bf16.mxu1 %v3852_v48 }
 0x2ee   : > { %1521 = vmatpush1.bf16.msra.mxu0 %v3856_v49  ;;  %1562 = vmatpush1.bf16.msra.mxu1 %v3858_v50 }
 0x2ef   : > { %1522 = vmatprep.subr.bf16.mxu0 %v3862_v51  ;;  %1563 = vmatprep.subr.bf16.mxu1 %v3864_v52 }
 0x2f2   : > { %1523 = vmatpush1.bf16.msra.mxu0 %v3868_v53  ;;  %1564 = vmatpush1.bf16.msra.mxu1 %v3870_v54 }
 0x2f3   : > { %1524 = vmatprep.subr.bf16.mxu0 %v3874_v55  ;;  %1565 = vmatprep.subr.bf16.mxu1 %v3876_v56 }
 0x2f6   : > { %1525 = vmatpush1.bf16.msra.mxu0 %v3880_v57  ;;  %1566 = vmatpush1.bf16.msra.mxu1 %v3882_v58 }
 0x2f7   : > { %1526 = vmatprep.subr.bf16.mxu0 %v3886_v59  ;;  %1567 = vmatprep.subr.bf16.mxu1 %v3888_v60 }
 0x2fa   : > { %1527 = vmatpush1.bf16.msra.mxu0 %v3892_v61  ;;  %1568 = vmatpush1.bf16.msra.mxu1 %v3894_v62 }
 0x2fb   : > { %1528 = vmatprep.subr.bf16.mxu0 %v3898_v63  ;;  %1569 = vmatprep.subr.bf16.mxu1 %v3900_v0 }
 0x2fe   : > { %1529 = vmatpush1.bf16.msra.mxu0 %v3904_v1  ;;  %1570 = vmatpush1.bf16.msra.mxu1 %v3906_v2 }
 0x2ff   : > { %1748 = vmatprep.subr.bf16.mxu0 %v3813_v34  ;;  %1789 = vmatprep.subr.bf16.mxu1 %v3815_v35 }
 0x3b4   : > { %v1314_v20 = vpop.f32.mrb[12].mxu0  ;;  %v1355_v29 = vpop.f32.mrb[12].mxu1 }
 0x3b5   : > { %v1366_v36 = vrot.slane %v1314_v20, 6  ;;  %v1370_v17 = vrot.slane %v1314_v20, 7  ;;  %v1316_v13 = vpop.f32.mrb[13].mxu0  ;;  %v1357_v33 = vpop.f32.mrb[13].mxu1 }
 0x3b6   : > { %v1367_v9 = vrot.slane %v1316_v13, 6  ;;  %v1371_v5 = vrot.slane %v1316_v13, 7  ;;  %v1318_v14 = vpop.f32.mrb[14].mxu0  ;;  %v1359_v7 = vpop.f32.mrb[14].mxu1  ;;  %v1369_v19 = vrot.slane %v1357_v33, 6  ;;  %v1373_v20 = vrot.slane %v1357_v33, 7 }
 0x3b7   : > { %v1382_v31 = vadd.f32 %v1366_v36, %v3957_v22  ;;  %v1386_v6 = vadd.f32 %v1370_v17, %v3961_v26  ;;  %v1319_v27 = vpop.f32.mrb[15].mxu0  ;;  %v1360_v30 = vpop.f32.mrb[15].mxu1  ;;  %v1368_v13 = vrot.slane %v1355_v29, 6  ;;  %v1372_v14 = vrot.slane %v1355_v29, 7 }
 0x3b8   : > { %v1383_v34 = vadd.f32 %v1367_v9, %v3959_v23  ;;  %v1387_v35 = vadd.f32 %v1371_v5, %v3965_v32  ;;  %v1385_v36 = vadd.f32 %v1369_v19, %v3970_v12  ;;  %v1389_v17 = vadd.f32 %v1373_v20, %v3972_v21  ;;  %v1428_v19 = vld [vmem:[#allocation3] sm:$0x3] }
 0x3b9   : > { %v2889_v16 = vmul.f32 -1.442695, %v1382_v31  ;;  %v2890_v15 = vmul.f32 -1.442695, %v1386_v6  ;;  %v1384_v9 = vadd.f32 %v1368_v13, %v3975_v28  ;;  %v1388_v5 = vadd.f32 %v1372_v14, %v3979_v4 }
 0x3ba   : > { %v2891_v8 = vmul.f32 -1.442695, %v1383_v34  ;;  %v2892_v18 = vmul.f32 -1.442695, %v1387_v35  ;;  %v2893_v7 = vmul.f32 -1.442695, %v1385_v36 }
 0x3bb   : > { %3180 = vpow2.f32 %v2889_v16  ;;  %v2894_v31 = vmul.f32 -1.442695, %v1389_v17  ;;  %v1430_v17 = vrot.slane %v1428_v19, 6 }
 0x3bc   : > { %3182 = vpow2.f32 %v2890_v15 }
 0x3bd   : > { %3184 = vpow2.f32 %v2891_v8 }
 0x3be   : > { %3186 = vpow2.f32 %v2892_v18 }
 0x3bf   : > { %3188 = vtanh.f32 %v1384_v9 }
 0x3c0   : > { %3190 = vtanh.f32 %v1388_v5 }
 0x3c1   : > { %3192 = vpow2.f32 %v2893_v7 }
 0x3c2   : > { %3194 = vpow2.f32 %v2894_v31  ;;  %v1431_v31 = vrot.slane %v1428_v19, 7 }
 0x3c5   : > { %v3181_v6 = vpop.eup %3180 }
 0x3c6   : > { %v3183_v27 = vpop.eup %3182  ;;  %v1396_v33 = vadd.f32 1.0, %v3181_v6 }
 0x3c7   : > { %v3185_v30 = vpop.eup %3184  ;;  %v1397_v29 = vadd.f32 1.0, %v3183_v27 }
 0x3c8   : > { %v3187_v34 = vpop.eup %3186  ;;  %3196 = vrcp.f32 %v1396_v33  ;;  %v1408_v35 = vadd.f32 1.0, %v3185_v30 }
 0x3c9   : > { %3198 = vrcp.f32 %v1397_v29  ;;  %v1409_v16 = vadd.f32 1.0, %v3187_v34  ;;  %v3189_v15 = vpop.eup %3188 }
 0x3ca   : > { %3200 = vrcp.f32 %v1408_v35  ;;  %v3191_v8 = vpop.eup %3190 }
 0x3cb   : > { %3202 = vrcp.f32 %v1409_v16  ;;  %v3193_v18 = vpop.eup %3192 }
 0x3cc   : > { %v3195_v20 = vpop.eup %3194  ;;  %v1422_v36 = vadd.f32 1.0, %v3193_v18 }
 0x3cd   : > { %v1423_v7 = vadd.f32 1.0, %v3195_v20 }
 0x3ce   : > { %3204 = vrcp.f32 %v1422_v36 }
 0x3cf   : > { %3206 = vrcp.f32 %v1423_v7 }
 0x3d2   : > { %v3197_v13 = vpop.eup %3196 }
 0x3d3   : > { %v3199_v14 = vpop.eup %3198  ;;  %v1436_v9 = vmul.f32 %v3197_v13, %v3189_v15 }
 0x3d4   : > { %v3201_v5 = vpop.eup %3200  ;;  %v1437_v6 = vmul.f32 %v3199_v14, %v3191_v8 }
 0x3d5   : > { %v3203_v27 = vpop.eup %3202  ;;  %v1434_v33 = vmul.f32 %v3201_v5, %v1430_v17 }
 0x3d6   : > { %v1435_v30 = vmul.f32 %v3203_v27, %v1431_v31 }
 0x3d7   : > { %v1438_v29 = vadd.f32 %v1436_v9, %v1434_v33 }
 0x3d8   : > { %v1439_v34 = vadd.f32 %v1437_v6, %v1435_v30  ;;  %v3205_v18 = vpop.eup %3204 }
 0x3d9   : > { %3208 = vtanh.f32 %v1438_v29  ;;  %v3207_v25 = vpop.eup %3206 }
 0x3da   : > { %3210 = vtanh.f32 %v1439_v34  ;;  %v1446_v35 = vrot.slane %v1439_v34, 7 }
 0x3dc   : > { %v1448_v16 = vsel %vm1447_vm3, %v1446_v35, %v1438_v29 }
 0x3dd   : > { %1450 = vst [vmem:[#allocation3 - $0x2] sm:$0xc] %v1448_v16 }
 0x3e3   : > { %v3209_v15 = vpop.eup %3208 }
 0x3e4   : > { %v3211_v13 = vpop.eup %3210  ;;  %v4084_v20 = vmul.f32 %v3209_v15, %v3205_v18  ;;  %v1662_v15 = vld [vmem:[#allocation3] sm:$0x3] }
 0x3e5   : > { %v4086_v8 = vmul.f32 %v3211_v13, %v3207_v25 }
 0x3e6   : > { %4558 = vst [vmem:[#allocation20_spill] sm:$0xff] %v4084_v20 }
 0x3e7   : > { %4559 = vst [vmem:[#allocation21_spill] sm:$0xff] %v4086_v8  ;;  %v1453_v19 = vrot.slane %v4086_v8, 7 }
 0x3e9   : > { %v1454_v14 = vsel %vm1447_vm3, %v1453_v19, %v4084_v20 }
 0x3ea   : > { %v1458_v36 = vsel %vm1457_vm4, %v1454_v14, 0.0  ;;  %1456 = vst [vmem:[#allocation2 - $0x2] sm:$0xc] %v1454_v14 }
 0x3eb   : > { %1459 = vadd.xlane.f32.xlu0 %v1458_v36 }
 0x3f1   : > { %v1512_v17 = vld [vmem:[#allocation2] sm:$0x3] }
 0x3f2   : > { %v1513_v9 = vpack.c.bf16 %v1512_v17, %v1512_v17  ;;  %v1664_v17 = vrot.slane %v1662_v15, 5 }
 0x3f4   : > { %1547 = vmatmul.mubr.bf16.vlgmr.msra.gmra.mrb[16].mxu0 %v1513_v9  ;;  %1588 = vmatmul.mubr.bf16.vlgmr.msra.gmra.mrb[16].mxu1 %v1513_v9 }
 0x3f5   : > { %1749 = vmatpush1.bf16.msra.mxu0 %v3818_v37  ;;  %1790 = vmatpush1.bf16.msra.mxu1 %v3820_v38  ;;  %v4122_v37 = vld [vmem:[#allocation9 + $0x4] ss:$16 sps:$4 sm:$0xff]   ;;  %v4125_v38 = vld [vmem:[#allocation9 + $0xc] ss:$16 sps:$4 sm:$0xff]  }
 0x3f6   : > { %1750 = vmatprep.subr.bf16.mxu0 %v3822_v39  ;;  %1791 = vmatprep.subr.bf16.mxu1 %v3826_v40 }
 0x3f7   : > { %1780 = vmatprep.mubr.bf16.mxu0 %v4554_v24  ;;  %1821 = vmatprep.mubr.bf16.mxu1 %v4554_v24 }
 0x3f9   : > { %1751 = vmatpush1.bf16.msra.mxu0 %v3828_v41  ;;  %1792 = vmatpush1.bf16.msra.mxu1 %v3832_v42 }
 0x3fa   : > { %1752 = vmatprep.subr.bf16.mxu0 %v3836_v43  ;;  %1793 = vmatprep.subr.bf16.mxu1 %v3838_v44 }
 0x3fd   : > { %1753 = vmatpush1.bf16.msra.mxu0 %v3844_v45  ;;  %1794 = vmatpush1.bf16.msra.mxu1 %v3846_v46 }
 0x3fe   : > { %1754 = vmatprep.subr.bf16.mxu0 %v3848_v47  ;;  %1795 = vmatprep.subr.bf16.mxu1 %v3852_v48 }
 0x401   : > { %1755 = vmatpush1.bf16.msra.mxu0 %v3856_v49  ;;  %1796 = vmatpush1.bf16.msra.mxu1 %v3858_v50 }
 0x402   : > { %1756 = vmatprep.subr.bf16.mxu0 %v3862_v51  ;;  %1797 = vmatprep.subr.bf16.mxu1 %v3864_v52 }
 0x405   : > { %1757 = vmatpush1.bf16.msra.mxu0 %v3868_v53  ;;  %1798 = vmatpush1.bf16.msra.mxu1 %v3870_v54 }
 0x406   : > { %1758 = vmatprep.subr.bf16.mxu0 %v3874_v55  ;;  %1799 = vmatprep.subr.bf16.mxu1 %v3876_v56 }
 0x409   : > { %1759 = vmatpush1.bf16.msra.mxu0 %v3880_v57  ;;  %1800 = vmatpush1.bf16.msra.mxu1 %v3882_v58 }
 0x40a   : > { %1760 = vmatprep.subr.bf16.mxu0 %v3886_v59  ;;  %1801 = vmatprep.subr.bf16.mxu1 %v3888_v60 }
 0x40d   : > { %1761 = vmatpush1.bf16.msra.mxu0 %v3892_v61  ;;  %1802 = vmatpush1.bf16.msra.mxu1 %v3894_v62 }
 0x40e   : > { %1762 = vmatprep.subr.bf16.mxu0 %v3898_v63  ;;  %1803 = vmatprep.subr.bf16.mxu1 %v3900_v0 }
 0x411   : > { %1763 = vmatpush1.bf16.msra.mxu0 %v3904_v1  ;;  %1804 = vmatpush1.bf16.msra.mxu1 %v3906_v2 }
 0x412   : > { %1982 = vmatprep.subr.bf16.mxu0 %v4122_v37  ;;  %2023 = vmatprep.subr.bf16.mxu1 %v4125_v38 }
 0x4c7   : > { %v1548_v39 = vpop.f32.mrb[16].mxu0  ;;  %v1589_v40 = vpop.f32.mrb[16].mxu1 }
 0x4c8   : > { %v1600_v41 = vrot.slane %v1548_v39, 5  ;;  %v1604_v42 = vrot.slane %v1548_v39, 6  ;;  %v1550_v43 = vpop.f32.mrb[17].mxu0  ;;  %v1591_v44 = vpop.f32.mrb[17].mxu1  ;;  %v1602_v61 = vrot.slane %v1589_v40, 5  ;;  %v1606_v62 = vrot.slane %v1589_v40, 6 }
 0x4c9   : > { %v1601_v45 = vrot.slane %v1550_v43, 5  ;;  %v1605_v46 = vrot.slane %v1550_v43, 6  ;;  %v1552_v47 = vpop.f32.mrb[18].mxu0  ;;  %v1593_v48 = vpop.f32.mrb[18].mxu1  ;;  %v1603_v59 = vrot.slane %v1591_v44, 5  ;;  %v1607_v60 = vrot.slane %v1591_v44, 6 }
 0x4ca   : > { %v1616_v49 = vadd.f32 %v1600_v41, %v3957_v22  ;;  %v1620_v50 = vadd.f32 %v1604_v42, %v3961_v26  ;;  %v1553_v51 = vpop.f32.mrb[19].mxu0  ;;  %v1594_v52 = vpop.f32.mrb[19].mxu1  ;;  %v1618_v1 = vadd.f32 %v1602_v61, %v3975_v28  ;;  %v1622_v2 = vadd.f32 %v1606_v62, %v3979_v4  ;;  %v4142_v61 = vld [vmem:[#allocation9] ss:$16 sps:$4 sm:$0xff]   ;;  %v4145_v62 = vld [vmem:[#allocation9 + $0x8] ss:$16 sps:$4 sm:$0xff]  }
 0x4cb   : > { %v1617_v53 = vadd.f32 %v1601_v45, %v3959_v23  ;;  %v1621_v54 = vadd.f32 %v1605_v46, %v3965_v32  ;;  %v1619_v63 = vadd.f32 %v1603_v59, %v3970_v12  ;;  %v1623_v0 = vadd.f32 %v1607_v60, %v3972_v21 }
 0x4cc   : > { %v2897_v55 = vmul.f32 -1.442695, %v1616_v49  ;;  %v2898_v56 = vmul.f32 -1.442695, %v1620_v50  ;;  %v1665_v41 = vrot.slane %v1662_v15, 6 }
 0x4cd   : > { %v2899_v57 = vmul.f32 -1.442695, %v1617_v53  ;;  %v2900_v58 = vmul.f32 -1.442695, %v1621_v54  ;;  %v2901_v25 = vmul.f32 -1.442695, %v1619_v63 }
 0x4ce   : > { %3212 = vpow2.f32 %v2897_v55  ;;  %v2902_v5 = vmul.f32 -1.442695, %v1623_v0  ;;  %v4148_v63 = vld [vmem:[#allocation9 + $0x24] ss:$16 sps:$4 sm:$0xff]   ;;  %v4151_v0 = vld [vmem:[#allocation9 + $0x2c] ss:$16 sps:$4 sm:$0xff]  }
 0x4cf   : > { %3214 = vpow2.f32 %v2898_v56  ;;  %v4201_v15 = vld [vmem:[#allocation9 + $0xac] ss:$16 sps:$4 sm:$0xff]  }
 0x4d0   : > { %3216 = vpow2.f32 %v2899_v57 }
 0x4d1   : > { %3218 = vpow2.f32 %v2900_v58 }
 0x4d2   : > { %3220 = vtanh.f32 %v1618_v1  ;;  %v4156_v1 = vld [vmem:[#allocation9 + $0x20] ss:$16 sps:$4 sm:$0xff]  }
 0x4d3   : > { %3222 = vtanh.f32 %v1622_v2  ;;  %v4159_v2 = vld [vmem:[#allocation9 + $0x28] ss:$16 sps:$4 sm:$0xff]  }
 0x4d4   : > { %3224 = vpow2.f32 %v2901_v25  ;;  %v4162_v25 = vld [vmem:[#allocation9 + $0x44] ss:$16 sps:$4 sm:$0xff]  }
 0x4d5   : > { %3226 = vpow2.f32 %v2902_v5  ;;  %v4165_v5 = vld [vmem:[#allocation9 + $0x4c] ss:$16 sps:$4 sm:$0xff]  }
 0x4d8   : > { %v3213_v7 = vpop.eup %3212 }
 0x4d9   : > { %v3215_v31 = vpop.eup %3214  ;;  %v1630_v6 = vadd.f32 1.0, %v3213_v7  ;;  %v4168_v7 = vld [vmem:[#allocation9 + $0x40] ss:$16 sps:$4 sm:$0xff]  }
 0x4da   : > { %v3217_v27 = vpop.eup %3216  ;;  %v1631_v33 = vadd.f32 1.0, %v3215_v31  ;;  %v4171_v31 = vld [vmem:[#allocation9 + $0x48] ss:$16 sps:$4 sm:$0xff]  }
 0x4db   : > { %v3219_v30 = vpop.eup %3218  ;;  %3228 = vrcp.f32 %v1630_v6  ;;  %v1642_v29 = vadd.f32 1.0, %v3217_v27  ;;  %v4174_v6 = vld [vmem:[#allocation9 + $0x64] ss:$16 sps:$4 sm:$0xff]   ;;  %v4177_v27 = vld [vmem:[#allocation9 + $0x6c] ss:$16 sps:$4 sm:$0xff]  }
 0x4dc   : > { %3230 = vrcp.f32 %v1631_v33  ;;  %v1643_v34 = vadd.f32 1.0, %v3219_v30  ;;  %v3221_v35 = vpop.eup %3220  ;;  %v4180_v33 = vld [vmem:[#allocation9 + $0x60] ss:$16 sps:$4 sm:$0xff]   ;;  %v4183_v30 = vld [vmem:[#allocation9 + $0x68] ss:$16 sps:$4 sm:$0xff]  }
 0x4dd   : > { %3232 = vrcp.f32 %v1642_v29  ;;  %v3223_v16 = vpop.eup %3222  ;;  %v4186_v29 = vld [vmem:[#allocation9 + $0x84] ss:$16 sps:$4 sm:$0xff]  }
 0x4de   : > { %3234 = vrcp.f32 %v1643_v34  ;;  %v3225_v18 = vpop.eup %3224  ;;  %v4189_v34 = vld [vmem:[#allocation9 + $0x8c] ss:$16 sps:$4 sm:$0xff]  }
 0x4df   : > { %v3227_v13 = vpop.eup %3226  ;;  %v1656_v36 = vadd.f32 1.0, %v3225_v18  ;;  %v4198_v18 = vld [vmem:[#allocation9 + $0xa4] ss:$16 sps:$4 sm:$0xff]  }
 0x4e0   : > { %v1657_v40 = vadd.f32 1.0, %v3227_v13  ;;  %v4204_v13 = vld [vmem:[#allocation9 + $0xa0] ss:$16 sps:$4 sm:$0xff]  }
 0x4e1   : > { %3236 = vrcp.f32 %v1656_v36  ;;  %v4213_v36 = vld [vmem:[#allocation9 + $0xcc] ss:$16 sps:$4 sm:$0xff]  }
 0x4e2   : > { %3238 = vrcp.f32 %v1657_v40  ;;  %v4225_v40 = vld [vmem:[#allocation9 + $0xec] ss:$16 sps:$4 sm:$0xff]  }
 0x4e5   : > { %v3229_v19 = vpop.eup %3228 }
 0x4e6   : > { %v3231_v14 = vpop.eup %3230  ;;  %v1670_v9 = vmul.f32 %v3229_v19, %v3221_v35  ;;  %v4192_v35 = vld [vmem:[#allocation9 + $0x80] ss:$16 sps:$4 sm:$0xff]   ;;  %v4207_v19 = vld [vmem:[#allocation9 + $0xa8] ss:$16 sps:$4 sm:$0xff]  }
 0x4e7   : > { %v3233_v39 = vpop.eup %3232  ;;  %v1671_v42 = vmul.f32 %v3231_v14, %v3223_v16  ;;  %v4195_v16 = vld [vmem:[#allocation9 + $0x88] ss:$16 sps:$4 sm:$0xff]   ;;  %v4210_v14 = vld [vmem:[#allocation9 + $0xc4] ss:$16 sps:$4 sm:$0xff]  }
 0x4e8   : > { %v3235_v43 = vpop.eup %3234  ;;  %v1668_v44 = vmul.f32 %v3233_v39, %v1664_v17  ;;  %v4216_v17 = vld [vmem:[#allocation9 + $0xc0] ss:$16 sps:$4 sm:$0xff]   ;;  %v4222_v39 = vld [vmem:[#allocation9 + $0xe4] ss:$16 sps:$4 sm:$0xff]  }
 0x4e9   : > { %v1669_v45 = vmul.f32 %v3235_v43, %v1665_v41  ;;  %v4228_v41 = vld [vmem:[#allocation9 + $0xe0] ss:$16 sps:$4 sm:$0xff]  }
 0x4ea   : > { %v1672_v46 = vadd.f32 %v1670_v9, %v1668_v44  ;;  %v4219_v9 = vld [vmem:[#allocation9 + $0xc8] ss:$16 sps:$4 sm:$0xff]  }
 0x4eb   : > { %v1673_v47 = vadd.f32 %v1671_v42, %v1669_v45  ;;  %v3237_v50 = vpop.eup %3236  ;;  %v4231_v42 = vld [vmem:[#allocation9 + $0xe8] ss:$16 sps:$4 sm:$0xff]  }
 0x4ec   : > { %3240 = vtanh.f32 %v1672_v46  ;;  %v3239_v51 = vpop.eup %3238 }
 0x4ed   : > { %3242 = vtanh.f32 %v1673_v47  ;;  %v1680_v48 = vrot.slane %v1673_v47, 7 }
 0x4ef   : > { %v1682_v49 = vsel %vm1681_vm5, %v1680_v48, %v1672_v46 }
 0x4f0   : > { %1684 = vst [vmem:[#allocation3 - $0x3] sm:$0x18] %v1682_v49 }
 0x4f6   : > { %v3241_v52 = vpop.eup %3240 }
 0x4f7   : > { %v3243_v53 = vpop.eup %3242  ;;  %v4136_v54 = vmul.f32 %v3241_v52, %v3237_v50 }
 0x4f8   : > { %v4138_v55 = vmul.f32 %v3243_v53, %v3239_v51 }
 0x4f9   : > { %4560 = vst [vmem:[#allocation22_spill] sm:$0xff] %v4136_v54 }
 0x4fa   : > { %4561 = vst [vmem:[#allocation23_spill] sm:$0xff] %v4138_v55  ;;  %v1687_v56 = vrot.slane %v4138_v55, 7 }
 0x4fc   : > { %v1688_v57 = vsel %vm1681_vm5, %v1687_v56, %v4136_v54 }
 0x4fd   : > { %v1692_v58 = vsel %vm1691_vm6, %v1688_v57, 0.0  ;;  %1690 = vst [vmem:[#allocation2 - $0x3] sm:$0x18] %v1688_v57 }
 0x4fe   : > { %1693 = vadd.xlane.f32.xlu1 %v1692_v58 }
 0x504   : > { %v1746_v59 = vld [vmem:[#allocation2] sm:$0x3] }
 0x505   : > { %v1747_v60 = vpack.c.bf16 %v1746_v59, %v1746_v59 }
 0x507   : > { %1781 = vmatmul.mubr.bf16.vlgmr.msra.gmra.mrb[20].mxu0 %v1747_v60  ;;  %1822 = vmatmul.mubr.bf16.vlgmr.msra.gmra.mrb[20].mxu1 %v1747_v60 }
 0x508   : > { %1983 = vmatpush1.bf16.msra.mxu0 %v4142_v61  ;;  %2024 = vmatpush1.bf16.msra.mxu1 %v4145_v62 }
 0x509   : > { %1984 = vmatprep.subr.bf16.mxu0 %v4148_v63  ;;  %2025 = vmatprep.subr.bf16.mxu1 %v4151_v0 }
 0x50a   : > { %2014 = vmatprep.mubr.bf16.mxu0 %v4554_v24  ;;  %2055 = vmatprep.mubr.bf16.mxu1 %v4554_v24 }
 0x50c   : > { %1985 = vmatpush1.bf16.msra.mxu0 %v4156_v1  ;;  %2026 = vmatpush1.bf16.msra.mxu1 %v4159_v2 }
 0x50d   : > { %1986 = vmatprep.subr.bf16.mxu0 %v4162_v25  ;;  %2027 = vmatprep.subr.bf16.mxu1 %v4165_v5 }
 0x510   : > { %1987 = vmatpush1.bf16.msra.mxu0 %v4168_v7  ;;  %2028 = vmatpush1.bf16.msra.mxu1 %v4171_v31 }
 0x511   : > { %1988 = vmatprep.subr.bf16.mxu0 %v4174_v6  ;;  %2029 = vmatprep.subr.bf16.mxu1 %v4177_v27 }
 0x514   : > { %1989 = vmatpush1.bf16.msra.mxu0 %v4180_v33  ;;  %2030 = vmatpush1.bf16.msra.mxu1 %v4183_v30 }
 0x515   : > { %1990 = vmatprep.subr.bf16.mxu0 %v4186_v29  ;;  %2031 = vmatprep.subr.bf16.mxu1 %v4189_v34 }
 0x518   : > { %1991 = vmatpush1.bf16.msra.mxu0 %v4192_v35  ;;  %2032 = vmatpush1.bf16.msra.mxu1 %v4195_v16 }
 0x519   : > { %1992 = vmatprep.subr.bf16.mxu0 %v4198_v18  ;;  %2033 = vmatprep.subr.bf16.mxu1 %v4201_v15 }
 0x51c   : > { %1993 = vmatpush1.bf16.msra.mxu0 %v4204_v13  ;;  %2034 = vmatpush1.bf16.msra.mxu1 %v4207_v19 }
 0x51d   : > { %1994 = vmatprep.subr.bf16.mxu0 %v4210_v14  ;;  %2035 = vmatprep.subr.bf16.mxu1 %v4213_v36 }
 0x520   : > { %1995 = vmatpush1.bf16.msra.mxu0 %v4216_v17  ;;  %2036 = vmatpush1.bf16.msra.mxu1 %v4219_v9 }
 0x521   : > { %1996 = vmatprep.subr.bf16.mxu0 %v4222_v39  ;;  %2037 = vmatprep.subr.bf16.mxu1 %v4225_v40 }
 0x524   : > { %1997 = vmatpush1.bf16.msra.mxu0 %v4228_v41  ;;  %2038 = vmatpush1.bf16.msra.mxu1 %v4231_v42 }
 0x525   : > { %2216 = vmatprep.subr.bf16.mxu0 %v4122_v37  ;;  %2257 = vmatprep.subr.bf16.mxu1 %v4125_v38 }
 0x5da   : > { %v1782_v43 = vpop.f32.mrb[20].mxu0  ;;  %v1823_v44 = vpop.f32.mrb[20].mxu1 }
 0x5db   : > { %v1834_v45 = vrot.slane %v1782_v43, 4  ;;  %v1838_v46 = vrot.slane %v1782_v43, 5  ;;  %v1784_v47 = vpop.f32.mrb[21].mxu0  ;;  %v1825_v48 = vpop.f32.mrb[21].mxu1 }
 0x5dc   : > { %v1835_v49 = vrot.slane %v1784_v47, 4  ;;  %v1839_v50 = vrot.slane %v1784_v47, 5  ;;  %v1786_v51 = vpop.f32.mrb[22].mxu0  ;;  %v1827_v52 = vpop.f32.mrb[22].mxu1  ;;  %v1837_v10 = vrot.slane %v1825_v48, 4  ;;  %v1841_v20 = vrot.slane %v1825_v48, 5 }
 0x5dd   : > { %v1850_v53 = vadd.f32 %v1834_v45, %v3957_v22  ;;  %v1854_v56 = vadd.f32 %v1838_v46, %v3961_v26  ;;  %v1787_v57 = vpop.f32.mrb[23].mxu0  ;;  %v1828_v58 = vpop.f32.mrb[23].mxu1  ;;  %v1836_v47 = vrot.slane %v1823_v44, 4  ;;  %v1840_v51 = vrot.slane %v1823_v44, 5 }
 0x5de   : > { %v1851_v59 = vadd.f32 %v1835_v49, %v3959_v23  ;;  %v1855_v60 = vadd.f32 %v1839_v50, %v3965_v32  ;;  %v1853_v45 = vadd.f32 %v1837_v10, %v3970_v12  ;;  %v1857_v46 = vadd.f32 %v1841_v20, %v3972_v21 }
 0x5df   : > { %v2905_v54 = vmul.f32 -1.442695, %v1850_v53  ;;  %v2906_v55 = vmul.f32 -1.442695, %v1854_v56  ;;  %v1852_v49 = vadd.f32 %v1836_v47, %v3975_v28  ;;  %v1856_v50 = vadd.f32 %v1840_v51, %v3979_v4 }
 0x5e0   : > { %v2907_v3 = vmul.f32 -1.442695, %v1851_v59  ;;  %v2908_v43 = vmul.f32 -1.442695, %v1855_v60  ;;  %v2909_v52 = vmul.f32 -1.442695, %v1853_v45 }
 0x5e1   : > { %3244 = vpow2.f32 %v2905_v54  ;;  %v2910_v53 = vmul.f32 -1.442695, %v1857_v46  ;;  %v1896_v60 = vld [vmem:[#allocation3] sm:$0x3] }
 0x5e2   : > { %3246 = vpow2.f32 %v2906_v55  ;;  %v1898_v46 = vrot.slane %v1896_v60, 4 }
 0x5e3   : > { %3248 = vpow2.f32 %v2907_v3 }
 0x5e4   : > { %3250 = vpow2.f32 %v2908_v43 }
 0x5e5   : > { %3252 = vtanh.f32 %v1852_v49 }
 0x5e6   : > { %3254 = vtanh.f32 %v1856_v50 }
 0x5e7   : > { %3256 = vpow2.f32 %v2909_v52 }
 0x5e8   : > { %3258 = vpow2.f32 %v2910_v53  ;;  %v1899_v53 = vrot.slane %v1896_v60, 5 }
 0x5eb   : > { %v3245_v56 = vpop.eup %3244 }
 0x5ec   : > { %v3247_v54 = vpop.eup %3246  ;;  %v1864_v48 = vadd.f32 1.0, %v3245_v56 }
 0x5ed   : > { %v3249_v55 = vpop.eup %3248  ;;  %v1865_v44 = vadd.f32 1.0, %v3247_v54 }
 0x5ee   : > { %v3251_v3 = vpop.eup %3250  ;;  %3260 = vrcp.f32 %v1864_v48  ;;  %v1876_v10 = vadd.f32 1.0, %v3249_v55 }
 0x5ef   : > { %3262 = vrcp.f32 %v1865_v44  ;;  %v1877_v20 = vadd.f32 1.0, %v3251_v3  ;;  %v3253_v57 = vpop.eup %3252 }
 0x5f0   : > { %3264 = vrcp.f32 %v1876_v10  ;;  %v3255_v58 = vpop.eup %3254 }
 0x5f1   : > { %3266 = vrcp.f32 %v1877_v20  ;;  %v3257_v59 = vpop.eup %3256 }
 0x5f2   : > { %v3259_v43 = vpop.eup %3258  ;;  %v1890_v45 = vadd.f32 1.0, %v3257_v59 }
 0x5f3   : > { %v1891_v52 = vadd.f32 1.0, %v3259_v43 }
 0x5f4   : > { %3268 = vrcp.f32 %v1890_v45 }
 0x5f5   : > { %3270 = vrcp.f32 %v1891_v52 }
 0x5f8   : > { %v3261_v47 = vpop.eup %3260 }
 0x5f9   : > { %v3263_v51 = vpop.eup %3262  ;;  %v1904_v49 = vmul.f32 %v3261_v47, %v3253_v57 }
 0x5fa   : > { %v3265_v50 = vpop.eup %3264  ;;  %v1905_v56 = vmul.f32 %v3263_v51, %v3255_v58 }
 0x5fb   : > { %v3267_v54 = vpop.eup %3266  ;;  %v1902_v48 = vmul.f32 %v3265_v50, %v1898_v46 }
 0x5fc   : > { %v1903_v55 = vmul.f32 %v3267_v54, %v1899_v53 }
 0x5fd   : > { %v1906_v44 = vadd.f32 %v1904_v49, %v1902_v48 }
 0x5fe   : > { %v1907_v3 = vadd.f32 %v1905_v56, %v1903_v55  ;;  %v3269_v59 = vpop.eup %3268 }
 0x5ff   : > { %3272 = vtanh.f32 %v1906_v44  ;;  %v3271_v8 = vpop.eup %3270 }
 0x600   : > { %3274 = vtanh.f32 %v1907_v3  ;;  %v1914_v10 = vrot.slane %v1907_v3, 7 }
 0x602   : > { %v1916_v20 = vsel %vm1915_vm7, %v1914_v10, %v1906_v44 }
 0x603   : > { %1918 = vst [vmem:[#allocation3 - $0x4] sm:$0x30] %v1916_v20 }
 0x609   : > { %v3273_v57 = vpop.eup %3272 }
 0x60a   : > { %v3275_v47 = vpop.eup %3274  ;;  %v4244_v43 = vmul.f32 %v3273_v57, %v3269_v59 }
 0x60b   : > { %v4246_v58 = vmul.f32 %v3275_v47, %v3271_v8 }
 0x60d   : > { %v1921_v60 = vrot.slane %v4246_v58, 7 }
 0x60f   : > { %v1922_v51 = vsel %vm1915_vm7, %v1921_v60, %v4244_v43 }
 0x610   : > { %v1926_v45 = vsel %vm1925_vm8, %v1922_v51, 0.0  ;;  %1924 = vst [vmem:[#allocation2 - $0x4] sm:$0x30] %v1922_v51 }
 0x611   : > { %1927 = vadd.xlane.f32.xlu1 %v1926_v45 }
 0x617   : > { %v1980_v46 = vld [vmem:[#allocation2] sm:$0x3] }
 0x618   : > { %v1981_v49 = vpack.c.bf16 %v1980_v46, %v1980_v46 }
 0x61a   : > { %2015 = vmatmul.mubr.bf16.vlgmr.msra.gmra.mrb[24].mxu0 %v1981_v49  ;;  %2056 = vmatmul.mubr.bf16.vlgmr.msra.gmra.mrb[24].mxu1 %v1981_v49 }
 0x61b   : > { %2217 = vmatpush1.bf16.msra.mxu0 %v4142_v61  ;;  %2258 = vmatpush1.bf16.msra.mxu1 %v4145_v62 }
 0x61c   : > { %2218 = vmatprep.subr.bf16.mxu0 %v4148_v63  ;;  %2259 = vmatprep.subr.bf16.mxu1 %v4151_v0 }
 0x61d   : > { %2248 = vmatprep.mubr.bf16.mxu0 %v4554_v24  ;;  %2289 = vmatprep.mubr.bf16.mxu1 %v4554_v24 }
 0x61f   : > { %2219 = vmatpush1.bf16.msra.mxu0 %v4156_v1  ;;  %2260 = vmatpush1.bf16.msra.mxu1 %v4159_v2 }
 0x620   : > { %2220 = vmatprep.subr.bf16.mxu0 %v4162_v25  ;;  %2261 = vmatprep.subr.bf16.mxu1 %v4165_v5 }
 0x623   : > { %2221 = vmatpush1.bf16.msra.mxu0 %v4168_v7  ;;  %2262 = vmatpush1.bf16.msra.mxu1 %v4171_v31 }
 0x624   : > { %2222 = vmatprep.subr.bf16.mxu0 %v4174_v6  ;;  %2263 = vmatprep.subr.bf16.mxu1 %v4177_v27 }
 0x627   : > { %2223 = vmatpush1.bf16.msra.mxu0 %v4180_v33  ;;  %2264 = vmatpush1.bf16.msra.mxu1 %v4183_v30 }
 0x628   : > { %2224 = vmatprep.subr.bf16.mxu0 %v4186_v29  ;;  %2265 = vmatprep.subr.bf16.mxu1 %v4189_v34 }
 0x62b   : > { %2225 = vmatpush1.bf16.msra.mxu0 %v4192_v35  ;;  %2266 = vmatpush1.bf16.msra.mxu1 %v4195_v16 }
 0x62c   : > { %2226 = vmatprep.subr.bf16.mxu0 %v4198_v18  ;;  %2267 = vmatprep.subr.bf16.mxu1 %v4201_v15 }
 0x62f   : > { %2227 = vmatpush1.bf16.msra.mxu0 %v4204_v13  ;;  %2268 = vmatpush1.bf16.msra.mxu1 %v4207_v19 }
 0x630   : > { %2228 = vmatprep.subr.bf16.mxu0 %v4210_v14  ;;  %2269 = vmatprep.subr.bf16.mxu1 %v4213_v36 }
 0x633   : > { %2229 = vmatpush1.bf16.msra.mxu0 %v4216_v17  ;;  %2270 = vmatpush1.bf16.msra.mxu1 %v4219_v9 }
 0x634   : > { %2230 = vmatprep.subr.bf16.mxu0 %v4222_v39  ;;  %2271 = vmatprep.subr.bf16.mxu1 %v4225_v40 }
 0x637   : > { %2231 = vmatpush1.bf16.msra.mxu0 %v4228_v41  ;;  %2272 = vmatpush1.bf16.msra.mxu1 %v4231_v42 }
 0x638   : > { %2450 = vmatprep.subr.bf16.mxu0 %v4122_v37  ;;  %2491 = vmatprep.subr.bf16.mxu1 %v4125_v38 }
 0x6ed   : > { %v2016_v8 = vpop.f32.mrb[24].mxu0  ;;  %v2057_v50 = vpop.f32.mrb[24].mxu1 }
 0x6ee   : > { %v2068_v52 = vrot.slane %v2016_v8, 3  ;;  %v2072_v53 = vrot.slane %v2016_v8, 4  ;;  %v2018_v56 = vpop.f32.mrb[25].mxu0  ;;  %v2059_v54 = vpop.f32.mrb[25].mxu1  ;;  %v2070_v8 = vrot.slane %v2057_v50, 3 }
 0x6ef   : > { %v2069_v48 = vrot.slane %v2018_v56, 3  ;;  %v2073_v55 = vrot.slane %v2018_v56, 4  ;;  %v2020_v44 = vpop.f32.mrb[26].mxu0  ;;  %v2061_v3 = vpop.f32.mrb[26].mxu1  ;;  %v2071_v46 = vrot.slane %v2059_v54, 3  ;;  %v2075_v49 = vrot.slane %v2059_v54, 4 }
 0x6f0   : > { %v2084_v10 = vadd.f32 %v2068_v52, %v3957_v22  ;;  %v2088_v20 = vadd.f32 %v2072_v53, %v3961_v26  ;;  %v2021_v59 = vpop.f32.mrb[27].mxu0  ;;  %v2062_v57 = vpop.f32.mrb[27].mxu1  ;;  %v2074_v56 = vrot.slane %v2057_v50, 4 }
 0x6f1   : > { %v2085_v37 = vadd.f32 %v2069_v48, %v3959_v23  ;;  %v2089_v38 = vadd.f32 %v2073_v55, %v3965_v32  ;;  %v2087_v52 = vadd.f32 %v2071_v46, %v3970_v12  ;;  %v2091_v53 = vadd.f32 %v2075_v49, %v3972_v21 }
 0x6f2   : > { %v2913_v47 = vmul.f32 -1.442695, %v2084_v10  ;;  %v2914_v60 = vmul.f32 -1.442695, %v2088_v20  ;;  %v2086_v48 = vadd.f32 %v2070_v8, %v3975_v28  ;;  %v2090_v55 = vadd.f32 %v2074_v56, %v3979_v4 }
 0x6f3   : > { %v2915_v51 = vmul.f32 -1.442695, %v2085_v37  ;;  %v2916_v45 = vmul.f32 -1.442695, %v2089_v38  ;;  %v2917_v44 = vmul.f32 -1.442695, %v2087_v52 }
 0x6f4   : > { %3276 = vpow2.f32 %v2913_v47  ;;  %v2918_v3 = vmul.f32 -1.442695, %v2091_v53 }
 0x6f5   : > { %3278 = vpow2.f32 %v2914_v60 }
 0x6f6   : > { %3280 = vpow2.f32 %v2915_v51 }
 0x6f7   : > { %3282 = vpow2.f32 %v2916_v45  ;;  %v2130_v45 = vld [vmem:[#allocation3] sm:$0x3] }
 0x6f8   : > { %3284 = vtanh.f32 %v2086_v48  ;;  %v2132_v52 = vrot.slane %v2130_v45, 3 }
 0x6f9   : > { %3286 = vtanh.f32 %v2090_v55 }
 0x6fa   : > { %3288 = vpow2.f32 %v2917_v44  ;;  %v2133_v44 = vrot.slane %v2130_v45, 4 }
 0x6fb   : > { %3290 = vpow2.f32 %v2918_v3 }
 0x6fe   : > { %v3277_v10 = vpop.eup %3276 }
 0x6ff   : > { %v3279_v20 = vpop.eup %3278  ;;  %v2098_v54 = vadd.f32 1.0, %v3277_v10 }
 0x700   : > { %v3281_v59 = vpop.eup %3280  ;;  %v2099_v50 = vadd.f32 1.0, %v3279_v20 }
 0x701   : > { %v3283_v57 = vpop.eup %3282  ;;  %3292 = vrcp.f32 %v2098_v54  ;;  %v2110_v37 = vadd.f32 1.0, %v3281_v59 }
 0x702   : > { %3294 = vrcp.f32 %v2099_v50  ;;  %v2111_v38 = vadd.f32 1.0, %v3283_v57  ;;  %v3285_v47 = vpop.eup %3284 }
 0x703   : > { %3296 = vrcp.f32 %v2110_v37  ;;  %v3287_v60 = vpop.eup %3286 }
 0x704   : > { %3298 = vrcp.f32 %v2111_v38  ;;  %v3289_v51 = vpop.eup %3288 }
 0x705   : > { %v3291_v46 = vpop.eup %3290  ;;  %v2124_v56 = vadd.f32 1.0, %v3289_v51 }
 0x706   : > { %v2125_v55 = vadd.f32 1.0, %v3291_v46 }
 0x707   : > { %3300 = vrcp.f32 %v2124_v56 }
 0x708   : > { %3302 = vrcp.f32 %v2125_v55 }
 0x70b   : > { %v3293_v49 = vpop.eup %3292 }
 0x70c   : > { %v3295_v8 = vpop.eup %3294  ;;  %v2138_v53 = vmul.f32 %v3293_v49, %v3285_v47 }
 0x70d   : > { %v3297_v48 = vpop.eup %3296  ;;  %v2139_v3 = vmul.f32 %v3295_v8, %v3287_v60 }
 0x70e   : > { %v3299_v10 = vpop.eup %3298  ;;  %v2136_v20 = vmul.f32 %v3297_v48, %v2132_v52 }
 0x70f   : > { %v2137_v54 = vmul.f32 %v3299_v10, %v2133_v44 }
 0x710   : > { %v2140_v59 = vadd.f32 %v2138_v53, %v2136_v20 }
 0x711   : > { %v2141_v50 = vadd.f32 %v2139_v3, %v2137_v54  ;;  %v3301_v38 = vpop.eup %3300 }
 0x712   : > { %3304 = vtanh.f32 %v2140_v59  ;;  %v3303_v51 = vpop.eup %3302 }
 0x713   : > { %3306 = vtanh.f32 %v2141_v50  ;;  %v2148_v57 = vrot.slane %v2141_v50, 7 }
 0x715   : > { %v2150_v37 = vsel %vm2149_vm9, %v2148_v57, %v2140_v59 }
 0x716   : > { %2152 = vst [vmem:[#allocation3 - $0x5] sm:$0x60] %v2150_v37 }
 0x71c   : > { %v3305_v47 = vpop.eup %3304 }
 0x71d   : > { %v3307_v49 = vpop.eup %3306  ;;  %v4292_v46 = vmul.f32 %v3305_v47, %v3301_v38  ;;  %v2364_v37 = vld [vmem:[#allocation3] sm:$0x3] }
 0x71e   : > { %v4294_v60 = vmul.f32 %v3307_v49, %v3303_v51 }
 0x720   : > { %v2155_v45 = vrot.slane %v4294_v60, 7 }
 0x722   : > { %v2156_v8 = vsel %vm2149_vm9, %v2155_v45, %v4292_v46  ;;  %v2366_v45 = vrot.slane %v2364_v37, 2 }
 0x723   : > { %v2160_v56 = vsel %vm2159_vm10, %v2156_v8, 0.0  ;;  %2158 = vst [vmem:[#allocation2 - $0x5] sm:$0x60] %v2156_v8 }
 0x724   : > { %2161 = vadd.xlane.f32.xlu0 %v2160_v56 }
 0x72a   : > { %v2214_v52 = vld [vmem:[#allocation2] sm:$0x3] }
 0x72b   : > { %v2215_v53 = vpack.c.bf16 %v2214_v52, %v2214_v52 }
 0x72d   : > { %2249 = vmatmul.mubr.bf16.vlgmr.msra.gmra.mrb[28].mxu0 %v2215_v53  ;;  %2290 = vmatmul.mubr.bf16.vlgmr.msra.gmra.mrb[28].mxu1 %v2215_v53  ;;  %v2367_v53 = vrot.slane %v2364_v37, 3 }
 0x72e   : > { %2451 = vmatpush1.bf16.msra.mxu0 %v4142_v61  ;;  %2492 = vmatpush1.bf16.msra.mxu1 %v4145_v62 }
 0x72f   : > { %2452 = vmatprep.subr.bf16.mxu0 %v4148_v63  ;;  %2493 = vmatprep.subr.bf16.mxu1 %v4151_v0 }
 0x730   : > { %2482 = vmatprep.mubr.bf16.mxu0 %v4554_v24  ;;  %2523 = vmatprep.mubr.bf16.mxu1 %v4554_v24 }
 0x732   : > { %2453 = vmatpush1.bf16.msra.mxu0 %v4156_v1  ;;  %2494 = vmatpush1.bf16.msra.mxu1 %v4159_v2 }
 0x733   : > { %2454 = vmatprep.subr.bf16.mxu0 %v4162_v25  ;;  %2495 = vmatprep.subr.bf16.mxu1 %v4165_v5 }
 0x736   : > { %2455 = vmatpush1.bf16.msra.mxu0 %v4168_v7  ;;  %2496 = vmatpush1.bf16.msra.mxu1 %v4171_v31 }
 0x737   : > { %2456 = vmatprep.subr.bf16.mxu0 %v4174_v6  ;;  %2497 = vmatprep.subr.bf16.mxu1 %v4177_v27 }
 0x73a   : > { %2457 = vmatpush1.bf16.msra.mxu0 %v4180_v33  ;;  %2498 = vmatpush1.bf16.msra.mxu1 %v4183_v30 }
 0x73b   : > { %2458 = vmatprep.subr.bf16.mxu0 %v4186_v29  ;;  %2499 = vmatprep.subr.bf16.mxu1 %v4189_v34 }
 0x73e   : > { %2459 = vmatpush1.bf16.msra.mxu0 %v4192_v35  ;;  %2500 = vmatpush1.bf16.msra.mxu1 %v4195_v16 }
 0x73f   : > { %2460 = vmatprep.subr.bf16.mxu0 %v4198_v18  ;;  %2501 = vmatprep.subr.bf16.mxu1 %v4201_v15 }
 0x742   : > { %2461 = vmatpush1.bf16.msra.mxu0 %v4204_v13  ;;  %2502 = vmatpush1.bf16.msra.mxu1 %v4207_v19 }
 0x743   : > { %2462 = vmatprep.subr.bf16.mxu0 %v4210_v14  ;;  %2503 = vmatprep.subr.bf16.mxu1 %v4213_v36 }
 0x746   : > { %2463 = vmatpush1.bf16.msra.mxu0 %v4216_v17  ;;  %2504 = vmatpush1.bf16.msra.mxu1 %v4219_v9 }
 0x747   : > { %2464 = vmatprep.subr.bf16.mxu0 %v4222_v39  ;;  %2505 = vmatprep.subr.bf16.mxu1 %v4225_v40 }
 0x74a   : > { %2465 = vmatpush1.bf16.msra.mxu0 %v4228_v41  ;;  %2506 = vmatpush1.bf16.msra.mxu1 %v4231_v42 }
 0x800   : > { %v2250_v24 = vpop.f32.mrb[28].mxu0  ;;  %v2291_v61 = vpop.f32.mrb[28].mxu1 }
 0x801   : > { %v2302_v62 = vrot.slane %v2250_v24, 2  ;;  %v2306_v63 = vrot.slane %v2250_v24, 3  ;;  %v2252_v0 = vpop.f32.mrb[29].mxu0  ;;  %v2293_v1 = vpop.f32.mrb[29].mxu1  ;;  %v2304_v19 = vrot.slane %v2291_v61, 2  ;;  %v2308_v14 = vrot.slane %v2291_v61, 3 }
 0x802   : > { %v2303_v2 = vrot.slane %v2252_v0, 2  ;;  %v2307_v25 = vrot.slane %v2252_v0, 3  ;;  %v2254_v5 = vpop.f32.mrb[30].mxu0  ;;  %v2295_v7 = vpop.f32.mrb[30].mxu1  ;;  %v2305_v15 = vrot.slane %v2293_v1, 2  ;;  %v2309_v13 = vrot.slane %v2293_v1, 3 }
 0x803   : > { %v2318_v31 = vadd.f32 %v2302_v62, %v3957_v22  ;;  %v2322_v6 = vadd.f32 %v2306_v63, %v3961_v26  ;;  %v2255_v27 = vpop.f32.mrb[31].mxu0  ;;  %v2296_v33 = vpop.f32.mrb[31].mxu1  ;;  %v2320_v9 = vadd.f32 %v2304_v19, %v3975_v28  ;;  %v2324_v39 = vadd.f32 %v2308_v14, %v3979_v4 }
 0x804   : > { %v2319_v30 = vadd.f32 %v2303_v2, %v3959_v23  ;;  %v2323_v29 = vadd.f32 %v2307_v25, %v3965_v32  ;;  %v2321_v36 = vadd.f32 %v2305_v15, %v3970_v12  ;;  %v2325_v17 = vadd.f32 %v2309_v13, %v3972_v21  ;;  %v987_v62 = vpop.xlane.xlu0 %986  ;;  %v4338_v7 = vpop.xlane.xlu1 %1693 }
 0x805   : > { %v2921_v34 = vmul.f32 -1.442695, %v2318_v31  ;;  %v2922_v35 = vmul.f32 -1.442695, %v2322_v6  ;;  %v988_v2 = vmul.f32 0.015625, %v987_v62  ;;  %v4562_v13 = vlaneseq }
 0x806   : > { %v2923_v16 = vmul.f32 -1.442695, %v2319_v30  ;;  %v2924_v18 = vmul.f32 -1.442695, %v2323_v29  ;;  %v2925_v40 = vmul.f32 -1.442695, %v2321_v36 }
 0x807   : > { %3308 = vpow2.f32 %v2921_v34  ;;  %v2926_v41 = vmul.f32 -1.442695, %v2325_v17  ;;  %v990_v6 = vrot.slane %v988_v2, 1  ;;  %v4343_v19 = vand.u32 127, %v4562_v13  ;;  %v4563_v17 = vld [vmem:[#allocation21_spill] sm:$0xff] }
 0x808   : > { %3310 = vpow2.f32 %v2922_v35  ;;  %v1460_v5 = vpop.xlane.xlu0 %1459  ;;  %v1928_v30 = vpop.xlane.xlu1 %1927 }
 0x809   : > { %3312 = vpow2.f32 %v2923_v16  ;;  %v1461_v27 = vmul.f32 0.015625, %v1460_v5  ;;  %v994_v29 = vsub.f32 %v3985_v11, %v990_v6  ;;  %v1929_v35 = vmul.f32 0.015625, %v1928_v30 }
 0x80a   : > { %3314 = vpow2.f32 %v2924_v18  ;;  %vm649_vm13 = vcmp.lt.s32.totalorder %v4343_v19, 64 }
 0x80b   : > { %3316 = vtanh.f32 %v2320_v9  ;;  %v1463_v34 = vrot.slane %v1461_v27, 1  ;;  %v997_v36 = vrot.slane %v994_v29, 7 }
 0x80c   : > { %3318 = vtanh.f32 %v2324_v39  ;;  %v1931_v39 = vrot.slane %v1929_v35, 1 }
 0x80d   : > { %3320 = vpow2.f32 %v2925_v40  ;;  %v1467_v9 = vsub.f32 %v4563_v17, %v1463_v34 }
 0x80e   : > { %3322 = vpow2.f32 %v2926_v41 }
 0x811   : > { %v3309_v42 = vpop.eup %3308 }
 0x812   : > { %v3311_v48 = vpop.eup %3310  ;;  %v2332_v55 = vadd.f32 1.0, %v3309_v42  ;;  %v4564_v42 = vld [vmem:[#allocation16_spill] sm:$0xff] }
 0x813   : > { %v3313_v44 = vpop.eup %3312  ;;  %v2333_v3 = vadd.f32 1.0, %v3311_v48  ;;  %v993_v48 = vsub.f32 %v4564_v42, %v988_v2 }
 0x814   : > { %v3315_v10 = vpop.eup %3314  ;;  %3324 = vrcp.f32 %v2332_v55  ;;  %v2344_v20 = vadd.f32 1.0, %v3313_v44  ;;  %v4565_v55 = vld [vmem:[#allocation20_spill] sm:$0xff] }
 0x815   : > { %3326 = vrcp.f32 %v2333_v3  ;;  %v2345_v54 = vadd.f32 1.0, %v3315_v10  ;;  %v3317_v59 = vpop.eup %3316  ;;  %v1466_v44 = vsub.f32 %v4565_v55, %v1461_v27  ;;  %v1471_v3 = vrot.slane %v1467_v9, 1  ;;  %v4378_v55 = vld [vmem:[%s4516_s4] ss:$0 sm:$0xff] }
 0x816   : > { %3328 = vrcp.f32 %v2344_v20  ;;  %v3319_v50 = vpop.eup %3318  ;;  %v1935_v10 = vsub.f32 %v4246_v58, %v1931_v39  ;;  %v998_v20 = vsel %vm974_vm0, %v997_v36, %v993_v48  ;;  %v3588_v39 = vmov 1966171168  }
 0x817   : > { %3330 = vrcp.f32 %v2345_v54  ;;  %v3321_v57 = vpop.eup %3320  ;;  %v1000_v37 = vsel %vm649_vm13, %v998_v20, 0.0 }
 0x818   : > { %v3323_v38 = vpop.eup %3322  ;;  %v2358_v49 = vadd.f32 1.0, %v3321_v57 }
 0x819   : > { %v2359_v52 = vadd.f32 1.0, %v3323_v38  ;;  %v1939_v38 = vrot.slane %v1935_v10, 3 }
 0x81a   : > { %3332 = vrcp.f32 %v2358_v49 }
 0x81b   : > { %3334 = vrcp.f32 %v2359_v52 }
 0x81e   : > { %v3325_v51 = vpop.eup %3324 }
 0x81f   : > { %v3327_v47 = vpop.eup %3326  ;;  %v2372_v8 = vmul.f32 %v3325_v51, %v3317_v59  ;;  %v1470_v59 = vrot.slane %v1466_v44, 2 }
 0x820   : > { %v3329_v56 = vpop.eup %3328  ;;  %v2373_v24 = vmul.f32 %v3327_v47, %v3319_v50  ;;  %v1934_v50 = vsub.f32 %v4244_v43, %v1929_v35  ;;  %v4566_v47 = vld [vmem:[#allocation19_spill] sm:$0xff] }
 0x821   : > { %v3331_v61 = vpop.eup %3330  ;;  %v2370_v63 = vmul.f32 %v3329_v56, %v2366_v45  ;;  %v1472_v51 = vsel %vm974_vm0, %v1471_v3, %v1470_v59  ;;  %v1225_v49 = vsel %vm1224_vm14, %v4566_v47, 0.0  ;;  %v1001_v45 = vmul.f32 %v1000_v37, %v1000_v37  ;;  %v4567_v3 = vld [vmem:[#allocation15_spill] sm:$0xff] }
 0x822   : > { %v2371_v0 = vmul.f32 %v3331_v61, %v2367_v53  ;;  %v1938_v58 = vrot.slane %v1934_v50, 4 }
 0x823   : > { %v2374_v1 = vadd.f32 %v2372_v8, %v2370_v63  ;;  %v1474_v8 = vsel %vm649_vm13, %v1472_v51, 0.0  ;;  %v1002_v52 = vsel %vm984_vm1, %v1001_v45, 0.0 }
 0x824   : > { %v2375_v25 = vadd.f32 %v2373_v24, %v2371_v0  ;;  %v3333_v16 = vpop.eup %3332  ;;  %v1940_v43 = vsel %vm974_vm0, %v1939_v38, %v1938_v58  ;;  %v1475_v24 = vmul.f32 %v1474_v8, %v1474_v8 }
 0x825   : > { %3336 = vtanh.f32 %v2374_v1  ;;  %v3335_v18 = vpop.eup %3334  ;;  %v1942_v61 = vsel %vm649_vm13, %v1940_v43, 0.0 }
 0x826   : > { %3338 = vtanh.f32 %v2375_v25  ;;  %v2382_v31 = vrot.slane %v2375_v25, 7  ;;  %v1476_v62 = vsel %vm984_vm1, %v1475_v24, 0.0  ;;  %v1943_v63 = vmul.f32 %v1942_v61, %v1942_v61 }
 0x828   : > { %v2384_v33 = vsel %vm2383_vm11, %v2382_v31, %v2374_v1  ;;  %v1944_v0 = vsel %vm984_vm1, %v1943_v63, 0.0 }
 0x829   : > { %2386 = vst [vmem:[#allocation3 - $0x6] sm:$0xc0] %v2384_v33 }
 0x82f   : > { %v3337_v15 = vpop.eup %3336 }
 0x830   : > { %v3339_v14 = vpop.eup %3338  ;;  %v2378_v40 = vmul.f32 %v3337_v15, %v3333_v16 }
 0x831   : > { %v2379_v41 = vmul.f32 %v3339_v14, %v3335_v18 }
 0x833   : > { %v2389_v11 = vrot.slane %v2379_v41, 7 }
 0x835   : > { %v2390_v54 = vsel %vm2383_vm11, %v2389_v11, %v2378_v40  ;;  %v4383_v11 = vld [vmem:[%s4517_s5] ss:$0 sm:$0xff] }
 0x836   : > { %v2394_v57 = vsel %vm2393_vm12, %v2390_v54, 0.0  ;;  %2392 = vst [vmem:[#allocation2 - $0x6] sm:$0xc0] %v2390_v54 }
 0x837   : > { %2395 = vadd.xlane.f32.xlu1 %v2394_v57 }
 0x83b   : > { %1226 = vadd.xlane.f32.xlu1 %v1225_v49 }
 0x83d   : > { %v2448_v56 = vld [vmem:[#allocation2] sm:$0x3] }
 0x83e   : > { %v2449_v53 = vpack.c.bf16 %v2448_v56, %v2448_v56 }
 0x83f   : > { %1003 = vadd.xlane.f32.xlu1 %v1002_v52 }
 0x840   : > { %2483 = vmatmul.mubr.bf16.vlgmr.msra.gmra.mrb[32].mxu0 %v2449_v53  ;;  %2524 = vmatmul.mubr.bf16.vlgmr.msra.gmra.mrb[32].mxu1 %v2449_v53 }
 0x843   : > { %1477 = vadd.xlane.f32.xlu1 %v1476_v62 }
 0x847   : > { %1945 = vadd.xlane.f32.xlu1 %v1944_v0 }
 0x8c4   : > { %v2396_v1 = vpop.xlane.xlu1 %2395 }
 0x8c5   : > { %v2397_v2 = vmul.f32 0.015625, %v2396_v1 }
 0x8c7   : > { %v2399_v25 = vrot.slane %v2397_v2, 1  ;;  %v2402_v5 = vsub.f32 %v2378_v40, %v2397_v2  ;;  %v1025_v40 = vunpack.c.l.s4 %v3588_v39 }
 0x8c8   : > { %v4365_v31 = vpop.xlane.xlu1 %1226 }
 0x8c9   : > { %v2403_v6 = vsub.f32 %v2379_v41, %v2399_v25  ;;  %v2406_v27 = vrot.slane %v2402_v5, 6  ;;  %v1026_v42 = vunpack.c.0.s8 %v1025_v40 }
 0x8cb   : > { %v2407_v33 = vrot.slane %v2403_v6, 5  ;;  %v4386_v10 = vsub.s32 %v1026_v42, %v4567_v3 }
 0x8cc   : > { %v1004_v30 = vpop.xlane.xlu1 %1003 }
 0x8cd   : > { %v1005_v29 = vmul.f32 0.015625, %v1004_v30  ;;  %v2408_v34 = vsel %vm974_vm0, %v2407_v33, %v2406_v27 }
 0x8ce   : > { %v4370_v35 = vsel %vm649_vm13, %v2408_v34, 0.0 }
 0x8cf   : > { %v1006_v16 = vadd.f32 1e-05, %v1005_v29  ;;  %v2411_v18 = vmul.f32 %v4370_v35, %v4370_v35 }
 0x8d0   : > { %v1478_v15 = vpop.xlane.xlu1 %1477 }
 0x8d1   : > { %3340 = vrsqrt.f32 %v1006_v16  ;;  %v1479_v13 = vmul.f32 0.015625, %v1478_v15  ;;  %v2412_v14 = vsel %vm984_vm1, %v2411_v18, 0.0 }
 0x8d2   : > { %2413 = vadd.xlane.f32.xlu1 %v2412_v14 }
 0x8d3   : > { %v1480_v36 = vadd.f32 1e-05, %v1479_v13 }
 0x8d4   : > { %v1946_v17 = vpop.xlane.xlu1 %1945 }
 0x8d5   : > { %3342 = vrsqrt.f32 %v1480_v36  ;;  %v1947_v9 = vmul.f32 0.015625, %v1946_v17 }
 0x8d7   : > { %v1948_v41 = vadd.f32 1e-05, %v1947_v9 }
 0x8d9   : > { %3344 = vrsqrt.f32 %v1948_v41 }
 0x8db   : > { %v3341_v48 = vpop.eup %3340 }
 0x8dc   : > { %v1008_v44 = vmul.f32 %v3341_v48, %v1000_v37 }
 0x8de   : > { %v1015_v20 = vmul.f32 %v4378_v55, %v1008_v44 }
 0x8df   : > { %v3343_v54 = vpop.eup %3342 }
 0x8e0   : > { %v1022_v59 = vadd.f32 %v4383_v11, %v1015_v20  ;;  %v1482_v50 = vmul.f32 %v3343_v54, %v1474_v8 }
 0x8e2   : > { %v1030_v57 = vrot.slane %v1022_v59, %v4386_v10  ;;  %v1483_v37 = vmul.f32 %v4378_v55, %v1482_v50  ;;  %v2598_v59 = vld [vmem:[#allocation3] sm:$0x3] }
 0x8e3   : > { %v3345_v38 = vpop.eup %3344 }
 0x8e4   : > { %v1031_v51 = vcombine.high %v1030_v57, %v1030_v57  ;;  %2879 = vst.sshfl [vmem:[%s3807_s20] sm:$0x1 pattern:$0x73625140] %v1030_v57  ;;  %v1484_v58 = vadd.f32 %v4383_v11, %v1483_v37  ;;  %v1950_v47 = vmul.f32 %v3345_v38, %v1942_v61 }
 0x8e6   : > { %2880 = vst.sshfl [vmem:[%s3807_s20 + $0x8] sm:$0x1 pattern:$0x73625140] %v1031_v51  ;;  %v1492_v49 = vrot.slane %v1484_v58, %v4386_v10  ;;  %v1951_v45 = vmul.f32 %v4378_v55, %v1950_v47  ;;  %v2600_v51 = vrot.slane %v2598_v59, 1 }
 0x8e8   : > { %v1493_v43 = vcombine.high %v1492_v49, %v1492_v49  ;;  %2895 = vst.sshfl [vmem:[%s3807_s20 + $0x2] sm:$0x1 pattern:$0x73625140] %v1492_v49  ;;  %v1952_v8 = vadd.f32 %v4383_v11, %v1951_v45  ;;  %v2601_v45 = vrot.slane %v2598_v59, 2 }
 0x8ea   : > { %2896 = vst.sshfl [vmem:[%s3807_s20 + $0xa] sm:$0x1 pattern:$0x73625140] %v1493_v43  ;;  %v1960_v56 = vrot.slane %v1952_v8, %v4386_v10 }
 0x8ec   : > { %v1961_v52 = vcombine.high %v1960_v56, %v1960_v56  ;;  %2911 = vst.sshfl [vmem:[%s3807_s20 + $0x4] sm:$0x1 pattern:$0x73625140] %v1960_v56 }
 0x8ee   : > { %2912 = vst.sshfl [vmem:[%s3807_s20 + $0xc] sm:$0x1 pattern:$0x73625140] %v1961_v52 }
 0x913   : > { %v2484_v53 = vpop.f32.mrb[32].mxu0  ;;  %v2525_v24 = vpop.f32.mrb[32].mxu1 }
 0x914   : > { %v2536_v62 = vrot.slane %v2484_v53, 1  ;;  %v2540_v63 = vrot.slane %v2484_v53, 2  ;;  %v2486_v61 = vpop.f32.mrb[33].mxu0  ;;  %v2527_v0 = vpop.f32.mrb[33].mxu1  ;;  %v2538_v17 = vrot.slane %v2525_v24, 1  ;;  %v2542_v9 = vrot.slane %v2525_v24, 2 }
 0x915   : > { %v2537_v1 = vrot.slane %v2486_v61, 1  ;;  %v2541_v2 = vrot.slane %v2486_v61, 2  ;;  %v2488_v25 = vpop.f32.mrb[34].mxu0  ;;  %v2529_v5 = vpop.f32.mrb[34].mxu1  ;;  %v2539_v14 = vrot.slane %v2527_v0, 1  ;;  %v2543_v36 = vrot.slane %v2527_v0, 2 }
 0x916   : > { %v2552_v6 = vadd.f32 %v2536_v62, %v3957_v22  ;;  %v2556_v27 = vadd.f32 %v2540_v63, %v3961_v26  ;;  %v2489_v33 = vpop.f32.mrb[35].mxu0  ;;  %v2530_v30 = vpop.f32.mrb[35].mxu1  ;;  %v1695_v63 = vmul.f32 0.015625, %v4338_v7  ;;  %v1228_v61 = vmul.f32 0.015625, %v4365_v31  ;;  %v4568_v5 = vld [vmem:[#allocation17_spill] sm:$0xff] }
 0x917   : > { %v2553_v29 = vadd.f32 %v2537_v1, %v3959_v23  ;;  %v2557_v34 = vadd.f32 %v2541_v2, %v3965_v32  ;;  %v2555_v22 = vadd.f32 %v2539_v14, %v3970_v12  ;;  %v2559_v26 = vadd.f32 %v2543_v36, %v3972_v21  ;;  %v2162_v0 = vpop.xlane.xlu0 %2161  ;;  %v4571_v36 = vld [vmem:[#allocation22_spill] sm:$0xff] }
 0x918   : > { %v2929_v16 = vmul.f32 -1.442695, %v2552_v6  ;;  %v2930_v18 = vmul.f32 -1.442695, %v2556_v27  ;;  %v2554_v23 = vadd.f32 %v2538_v17, %v3975_v28  ;;  %v2558_v32 = vadd.f32 %v2542_v9, %v3979_v4 }
 0x919   : > { %v2931_v15 = vmul.f32 -1.442695, %v2553_v29  ;;  %v2932_v13 = vmul.f32 -1.442695, %v2557_v34  ;;  %v2933_v39 = vmul.f32 -1.442695, %v2555_v22  ;;  %v1233_v6 = vsub.f32 %v4568_v5, %v1228_v61 }
 0x91a   : > { %3346 = vpow2.f32 %v2929_v16  ;;  %v2934_v40 = vmul.f32 -1.442695, %v2559_v26  ;;  %v1697_v1 = vrot.slane %v1695_v63, 1  ;;  %v2163_v2 = vmul.f32 0.015625, %v2162_v0  ;;  %v4569_v29 = vld [vmem:[#allocation23_spill] sm:$0xff] }
 0x91b   : > { %3348 = vpow2.f32 %v2930_v18  ;;  %v1230_v25 = vrot.slane %v1228_v61, 1  ;;  %v4570_v18 = vld [vmem:[#allocation18_spill] sm:$0xff]  ;;  %v1700_v31 = vsub.f32 %v4571_v36, %v1695_v63 }
 0x91c   : > { %3350 = vpow2.f32 %v2931_v15  ;;  %v1701_v34 = vsub.f32 %v4569_v29, %v1697_v1  ;;  %v2165_v16 = vrot.slane %v2163_v2, 1 }
 0x91d   : > { %3352 = vpow2.f32 %v2932_v13  ;;  %v1234_v15 = vsub.f32 %v4570_v18, %v1230_v25  ;;  %v1237_v13 = vrot.slane %v1233_v6, 1 }
 0x91e   : > { %3354 = vtanh.f32 %v2554_v23  ;;  %v1705_v9 = vrot.slane %v1701_v34, 2  ;;  %v2169_v22 = vsub.f32 %v4294_v60, %v2165_v16 }
 0x91f   : > { %3356 = vtanh.f32 %v2558_v32  ;;  %v1238_v23 = vsel %vm974_vm0, %v1234_v15, %v1237_v13  ;;  %v1704_v32 = vrot.slane %v1700_v31, 3 }
 0x920   : > { %3358 = vpow2.f32 %v2933_v39  ;;  %v2168_v39 = vsub.f32 %v4292_v46, %v2163_v2 }
 0x921   : > { %3360 = vpow2.f32 %v2934_v40 }
 0x924   : > { %v3347_v41 = vpop.eup %3346 }
 0x925   : > { %v3349_v42 = vpop.eup %3348  ;;  %v2566_v48 = vadd.f32 1.0, %v3347_v41  ;;  %v1240_v41 = vsel %vm649_vm13, %v1238_v23, 0.0 }
 0x926   : > { %v3351_v44 = vpop.eup %3350  ;;  %v2567_v3 = vadd.f32 1.0, %v3349_v42  ;;  %v2173_v42 = vrot.slane %v2169_v22, 4 }
 0x927   : > { %v3353_v20 = vpop.eup %3352  ;;  %3362 = vrcp.f32 %v2566_v48  ;;  %v2578_v12 = vadd.f32 1.0, %v3351_v44  ;;  %v1706_v48 = vsel %vm974_vm0, %v1705_v9, %v1704_v32  ;;  %v2172_v44 = vrot.slane %v2168_v39, 5 }
 0x928   : > { %3364 = vrcp.f32 %v2567_v3  ;;  %v2579_v21 = vadd.f32 1.0, %v3353_v20  ;;  %v3355_v28 = vpop.eup %3354  ;;  %v1241_v20 = vmul.f32 %v1240_v41, %v1240_v41  ;;  %v1708_v60 = vsel %vm649_vm13, %v1706_v48, 0.0 }
 0x929   : > { %3366 = vrcp.f32 %v2578_v12  ;;  %v3357_v4 = vpop.eup %3356  ;;  %v2174_v12 = vsel %vm974_vm0, %v2173_v42, %v2172_v44 }
 0x92a   : > { %3368 = vrcp.f32 %v2579_v21  ;;  %v3359_v54 = vpop.eup %3358  ;;  %v1242_v46 = vsel %vm984_vm1, %v1241_v20, 0.0  ;;  %v1709_v21 = vmul.f32 %v1708_v60, %v1708_v60 }
 0x92b   : > { %v3361_v50 = vpop.eup %3360  ;;  %v2592_v58 = vadd.f32 1.0, %v3359_v54 }
 0x92c   : > { %v2593_v43 = vadd.f32 1.0, %v3361_v50 }
 0x92d   : > { %3370 = vrcp.f32 %v2592_v58 }
 0x92e   : > { %3372 = vrcp.f32 %v2593_v43 }
 0x931   : > { %v3363_v57 = vpop.eup %3362 }
 0x932   : > { %v3365_v37 = vpop.eup %3364  ;;  %v2606_v38 = vmul.f32 %v3363_v57, %v3355_v28  ;;  %v2176_v28 = vsel %vm649_vm13, %v2174_v12, 0.0 }
 0x933   : > { %v3367_v47 = vpop.eup %3366  ;;  %v2607_v49 = vmul.f32 %v3365_v37, %v3357_v4  ;;  %v1710_v4 = vsel %vm984_vm1, %v1709_v21, 0.0  ;;  %v2177_v54 = vmul.f32 %v2176_v28, %v2176_v28 }
 0x934   : > { %v3369_v8 = vpop.eup %3368  ;;  %v2604_v56 = vmul.f32 %v3367_v47, %v2600_v51 }
 0x935   : > { %v2605_v52 = vmul.f32 %v3369_v8, %v2601_v45  ;;  %v2178_v59 = vsel %vm984_vm1, %v2177_v54, 0.0 }
 0x936   : > { %v2608_v53 = vadd.f32 %v2606_v38, %v2604_v56 }
 0x937   : > { %v2609_v24 = vadd.f32 %v2607_v49, %v2605_v52  ;;  %v3371_v27 = vpop.eup %3370 }
 0x938   : > { %3374 = vtanh.f32 %v2608_v53  ;;  %2619 = vst [vmem:[#allocation3 - $0x7] sm:$0x80] %v2608_v53  ;;  %v3373_v33 = vpop.eup %3372 }
 0x939   : > { %3376 = vtanh.f32 %v2609_v24  ;;  %v2616_v62 = vrot.slane %v2609_v24, 7 }
 0x93b   : > { %2620 = vst [vmem:[#allocation3 + $0x1] sm:$0x1] %v2616_v62 }
 0x942   : > { %v3375_v30 = vpop.eup %3374 }
 0x943   : > { %v3377_v14 = vpop.eup %3376  ;;  %v2612_v7 = vmul.f32 %v3375_v30, %v3371_v27 }
 0x944   : > { %v2613_v17 = vmul.f32 %v3377_v14, %v3373_v33 }
 0x945   : > { %2626 = vst [vmem:[#allocation2 - $0x7] sm:$0x80] %v2612_v7  ;;  %v2628_v3 = vsel %vm2383_vm11, %v2612_v7, 0.0 }
 0x946   : > { %v2623_v26 = vrot.slane %v2613_v17, 7 }
 0x948   : > { %v2632_v40 = vsel %vm2631_vm15, %v2623_v26, 0.0  ;;  %2627 = vst [vmem:[#allocation2 + $0x1] sm:$0x1] %v2623_v26 }
 0x949   : > { %2633 = vadd.xlane.f32.xlu0 %v2632_v40 }
 0x94d   : > { %2629 = vadd.xlane.f32.xlu0 %v2628_v3 }
 0x951   : > { %1243 = vadd.xlane.f32.xlu0 %v1242_v46 }
 0x955   : > { %1711 = vadd.xlane.f32.xlu0 %v1710_v4 }
 0x959   : > { %2179 = vadd.xlane.f32.xlu0 %v2178_v59 }
 0x95f   : > { %v2414_v50 = vpop.xlane.xlu1 %2413 }
 0x960   : > { %v2415_v57 = vmul.f32 0.015625, %v2414_v50 }
 0x962   : > { %v2416_v37 = vadd.f32 1e-05, %v2415_v57 }
 0x964   : > { %3378 = vrsqrt.f32 %v2416_v37 }
 0x96e   : > { %v3379_v38 = vpop.eup %3378 }
 0x96f   : > { %v2418_v51 = vmul.f32 %v3379_v38, %v4370_v35 }
 0x971   : > { %v2419_v58 = vmul.f32 %v4378_v55, %v2418_v51 }
 0x973   : > { %v2420_v47 = vadd.f32 %v4383_v11, %v2419_v58 }
 0x975   : > { %v2428_v49 = vrot.slane %v2420_v47, %v4386_v10 }
 0x977   : > { %v2429_v45 = vcombine.high %v2428_v49, %v2428_v49  ;;  %2927 = vst.sshfl [vmem:[%s3807_s20 + $0x6] sm:$0x1 pattern:$0x73625140] %v2428_v49 }
 0x979   : > { %2928 = vst.sshfl [vmem:[%s3807_s20 + $0xe] sm:$0x1 pattern:$0x73625140] %v2429_v45 }
 0x9d6   : > { %v2634_v43 = vpop.xlane.xlu0 %2633 }
 0x9d7   : > { %v2636_v8 = vmul.f32 0.015625, %v2634_v43 }
 0x9d9   : > { %v2639_v56 = vrot.slane %v2636_v8, 1 }
 0x9da   : > { %v2630_v52 = vpop.xlane.xlu0 %2629 }
 0x9db   : > { %v2643_v53 = vsub.f32 %v2613_v17, %v2639_v56  ;;  %v2635_v24 = vmul.f32 0.015625, %v2630_v52 }
 0x9dd   : > { %v2642_v62 = vsub.f32 %v2612_v7, %v2635_v24  ;;  %v2647_v61 = vrot.slane %v2643_v53, 6 }
 0x9de   : > { %v1244_v63 = vpop.xlane.xlu0 %1243 }
 0x9df   : > { %v2646_v0 = vrot.slane %v2642_v62, 7  ;;  %v1245_v35 = vmul.f32 0.015625, %v1244_v63 }
 0x9e1   : > { %v1246_v1 = vadd.f32 1e-05, %v1245_v35  ;;  %v2648_v2 = vsel %vm974_vm0, %v2647_v61, %v2646_v0 }
 0x9e2   : > { %v1712_v25 = vpop.xlane.xlu0 %1711  ;;  %v2650_v5 = vsel %vm649_vm13, %v2648_v2, 0.0 }
 0x9e3   : > { %3380 = vrsqrt.f32 %v1246_v1  ;;  %v1713_v6 = vmul.f32 0.015625, %v1712_v25  ;;  %v2651_v27 = vmul.f32 %v2650_v5, %v2650_v5 }
 0x9e5   : > { %v1714_v33 = vadd.f32 1e-05, %v1713_v6  ;;  %v2652_v30 = vsel %vm984_vm1, %v2651_v27, 0.0 }
 0x9e6   : > { %2653 = vadd.xlane.f32.xlu0 %v2652_v30  ;;  %v2180_v29 = vpop.xlane.xlu0 %2179 }
 0x9e7   : > { %3382 = vrsqrt.f32 %v1714_v33  ;;  %v2181_v34 = vmul.f32 0.015625, %v2180_v29 }
 0x9e9   : > { %v2182_v16 = vadd.f32 1e-05, %v2181_v34 }
 0x9eb   : > { %3384 = vrsqrt.f32 %v2182_v16 }
 0x9ed   : > { %v3381_v18 = vpop.eup %3380 }
 0x9ee   : > { %v1248_v15 = vmul.f32 %v3381_v18, %v1240_v41 }
 0x9f0   : > { %v1249_v19 = vmul.f32 %v4378_v55, %v1248_v15 }
 0x9f1   : > { %v3383_v13 = vpop.eup %3382 }
 0x9f2   : > { %v1250_v14 = vadd.f32 %v4383_v11, %v1249_v19  ;;  %v1716_v7 = vmul.f32 %v3383_v13, %v1708_v60 }
 0x9f4   : > { %v1258_v36 = vrot.slane %v1250_v14, %v4386_v10  ;;  %v1717_v31 = vmul.f32 %v4378_v55, %v1716_v7 }
 0x9f5   : > { %v3385_v17 = vpop.eup %3384 }
 0x9f6   : > { %v1259_v9 = vcombine.high %v1258_v36, %v1258_v36  ;;  %2887 = vst.sshfl [vmem:[%s3807_s20 + $0x1] sm:$0x1 pattern:$0x73625140] %v1258_v36  ;;  %v1718_v22 = vadd.f32 %v4383_v11, %v1717_v31  ;;  %v2184_v26 = vmul.f32 %v3385_v17, %v2176_v28 }
 0x9f8   : > { %2888 = vst.sshfl [vmem:[%s3807_s20 + $0x9] sm:$0x1 pattern:$0x73625140] %v1259_v9  ;;  %v1726_v23 = vrot.slane %v1718_v22, %v4386_v10  ;;  %v2185_v32 = vmul.f32 %v4378_v55, %v2184_v26 }
 0x9fa   : > { %v1727_v39 = vcombine.high %v1726_v23, %v1726_v23  ;;  %2903 = vst.sshfl [vmem:[%s3807_s20 + $0x3] sm:$0x1 pattern:$0x73625140] %v1726_v23  ;;  %v2186_v40 = vadd.f32 %v4383_v11, %v2185_v32 }
 0x9fc   : > { %2904 = vst.sshfl [vmem:[%s3807_s20 + $0xb] sm:$0x1 pattern:$0x73625140] %v1727_v39  ;;  %v2194_v41 = vrot.slane %v2186_v40, %v4386_v10 }
 0x9fe   : > { %v2195_v42 = vcombine.high %v2194_v41, %v2194_v41  ;;  %2919 = vst.sshfl [vmem:[%s3807_s20 + $0x5] sm:$0x1 pattern:$0x73625140] %v2194_v41 }
 0xa00   : > { %2920 = vst.sshfl [vmem:[%s3807_s20 + $0xd] sm:$0x1 pattern:$0x73625140] %v2195_v42 }
 0xa73   : > { %v2654_v48 = vpop.xlane.xlu0 %2653 }
 0xa74   : > { %v2655_v44 = vmul.f32 0.015625, %v2654_v48 }
 0xa76   : > { %v2656_v3 = vadd.f32 1e-05, %v2655_v44 }
 0xa78   : > { %3386 = vrsqrt.f32 %v2656_v3 }
 0xa82   : > { %v3387_v20 = vpop.eup %3386 }
 0xa83   : > { %v2658_v60 = vmul.f32 %v3387_v20, %v2650_v5 }
 0xa85   : > { %v2659_v12 = vmul.f32 %v4378_v55, %v2658_v60 }
 0xa87   : > { %v2660_v46 = vadd.f32 %v4383_v11, %v2659_v12 }
 0xa89   : > { %v2668_v21 = vrot.slane %v2660_v46, %v4386_v10 }
 0xa8b   : > { %v2669_v28 = vcombine.high %v2668_v21, %v2668_v21  ;;  %2935 = vst.sshfl [vmem:[%s3807_s20 + $0x7] sm:$0x1 pattern:$0x73625140] %v2668_v21 }
 0xa8d   : > { %2936 = vst.sshfl [vmem:[%s3807_s20 + $0xf] sm:$0x1 pattern:$0x73625140] %v2669_v28 }
 0xa8e   : > { %3519 = shalt.err (!%p3516_p11)
}
 0xa8f   : > { %s3520_s20 = scalar_lea.hbm %s4465_s29, 256  ;;  %s3524_s30 = scalar_lea.hbm %s4518_s6, 768 }
 0xa90   : > { %p3521_p12 = scmp.ne.s32.totalorder %s4465_s29, %s3520_s20  ;;  %p3525_p8 = scmp.lt.u32.totalorder %s4465_s29, %s4518_s6 }
 0xa91   : > { %p3526_p13 = scmp.lt.u32.totalorder %s3524_s30, %s3520_s20  ;;  %p3528_p9 = scmp.lt.u32.totalorder %s3520_s20, %s4465_s29 }
 0xa92   : > { %p3522_p4 = pnand %p3521_p12, %p4572_p10 }
 0xa93   : > { %p3527_p3 = por %p3526_p13, %p3525_p8 }
 0xa94   : > { %p3523_p6 = pneg %p3522_p4 }
 0xa95   : > { %p3529_p2 = por %p3528_p9, %p3527_p3 }
 0xa97   : > { %p3530_p1 = pnand %p3529_p2, %p3523_p6 }
 0xa99   : > { %3533 = shalt.err (!%p3530_p1)
}
 0xa9a   : > { %s3590_s14 = smov 128   ;;  %s3591_s16 = smov 384  }
 0xa9b   : > { %s3592_s15 = smov 8  }
 0xa9c   : > { %2951 = dma.vmem_to_hbm [thread:$0]  (%p4572_p10), %s4467_s19, 256, %s4465_s29, %s2689_s12, %s3590_s14, %s3591_s16, %s3592_s15  }
 0xa9d PF: > { %p2973_p7 = scmp.ge.s32.totalorder %s3576_s24, 2  ;;  %s2716_s25 = sand.u32 1, %s3564_s21  }
 0xa9e   : > { %p4573_p0 = scmp.ne.s32.totalorder %s4540_s10, 0  ;;  %s2717_s26 = scalar_lea.sflag [#allocation6], %s2716_s25 }
 0xaa0   : > { %p2965_p5 = pnand %p2973_p7, %p4573_p0 }
 0xaa2   : > { %3559 = dma.done.wait (!%p2965_p5), %s2717_s26, 256  }
 0xaa3   : > { %3561 = vsyncadd (!%p2965_p5), %s2717_s26, 4294967040  ;;  %s4574_s11 = sld [smem:[#allocation14_spill]]  ;;  %p20_p11 = scmp.ge.s32.totalorder %s3653_s27, 5  }
 0xaa4   : > { %s4575_s21 = smov %s3568_s22  ;;  %s4576_s22 = smov %s3572_s23 }
 0xaa5   : > { %s4578_s24 = smov %s3653_s27  ;;  %22 = sbr.rel (!%p20_p11) target bundleno = 6 (0x6), region = 101 }
 0xaa9   : > { %s4577_s23 = smov %s4574_s11 }
 0xaac   :  { %2722 = vsyncpa [#allocation5], 1 }
 0xaad   :  { %2724 = vsyncpa [#allocation5 + $0x1], 1 }
 0xaae   :  { %2725 = vsyncpa [#allocation8], 1 }
 0xaaf   :  { %2726 = vsyncpa [#allocation6], 1 }
 0xab0   :  { %2728 = vsyncpa [#allocation6 + $0x1], 1 }

</bundles_post_ra>
